<compile_context>
chip_gen: v5e
topology: v5e:2x2
jax: 0.10.0
libtpu: 0.0.40
codegen_flags: <defaults>
</compile_context>

<pallas_src>
import functools

import jax
import jax.numpy as jnp
from jax import lax
from jax.experimental import pallas as pl
from jax.experimental.pallas import tpu as pltpu

KSIZE = 7
PAD = 3
CHUNK = 8  # one sublane tile of channels


def _spatial_attention_kernel(w_ref, b_ref, mask_ref, x_ref, o_ref, q_ref, *, W):
    # w_ref: SMEM f32[2*7*7]   BN-scaled conv weights, order [c, kh, kw]
    # b_ref: SMEM f32[1]       folded BN shift
    # mask_ref: VMEM f32[7, 1, 1, HW]  column-validity masks (one per kw)
    # x_ref / o_ref: VMEM (bt, C, HW)  lane-dense blocks
    # q_ref: VMEM f32[2, bt, 1, L]     zero-padded flattened pooled maps
    bt, C, HW = x_ref.shape
    PADF = PAD * W + PAD
    L = q_ref.shape[-1]
    nchunks = (C + CHUNK - 1) // CHUNK

    # ---- ChannelAxisPool('avg') / ('max'): reduce over C, 8-channel chunks ---
    csum = jnp.zeros((bt, 1, HW), jnp.float32)
    cmax = jnp.full((bt, 1, HW), -jnp.inf, jnp.float32)
    for j in range(nchunks):                      # static, fully unrolled
        c0 = j * CHUNK
        csz = min(CHUNK, C - c0)
        xc = x_ref[:, c0:c0 + csz, :].astype(jnp.float32)
        csum = csum + jnp.sum(xc, axis=1, keepdims=True)
        cmax = jnp.maximum(cmax, jnp.max(xc, axis=1, keepdims=True))
    cavg = csum * (1.0 / C)

    # ---- store pooled maps into the zero-padded flat scratch ----------------
    q_ref[...] = jnp.zeros(q_ref.shape, jnp.float32)
    q_ref[0, :, :, PADF:PADF + HW] = cavg
    q_ref[1, :, :, PADF:PADF + HW] = cmax

    # ---- 7x7 conv (2 -> 1 channel) as shifted lane-dense FMAs ---------------
    # out[p] = b + sum_{dh,dw} w[dh,dw] * Q[PADF + p + dh*W + dw] * mask_dw[p]
    acc = jnp.zeros((bt, 1, HW), jnp.float32) + b_ref[0]
    for dw in range(-PAD, PAD + 1):
        part = jnp.zeros((bt, 1, HW), jnp.float32)
        for dh in range(-PAD, PAD + 1):
            off = PADF + dh * W + dw
            idx = (dh + PAD) * KSIZE + (dw + PAD)
            wa = w_ref[idx]                       # avg-map tap
            wm = w_ref[KSIZE * KSIZE + idx]       # max-map tap
            part = part + wa * q_ref[0, :, :, off:off + HW]
            part = part + wm * q_ref[1, :, :, off:off + HW]
        acc = acc + mask_ref[dw + PAD] * part     # kill row-wrap contributions
    gate = jax.nn.sigmoid(acc)                    # (bt, 1, HW), EUP

    # ---- apply gate, broadcast over channels; lane-dense full-width stores --
    for j in range(nchunks):                      # static, fully unrolled
        c0 = j * CHUNK
        csz = min(CHUNK, C - c0)
        xc = x_ref[:, c0:c0 + csz, :].astype(jnp.float32)
        o_ref[:, c0:c0 + csz, :] = (xc * gate).astype(o_ref.dtype)


def spatial_attention(x, conv_w, bn_gamma, bn_beta, bn_mean, bn_var,
                      bn_eps=1e-5):
    """x: (B, C, H, W); conv_w: (1, 2, 7, 7) OIHW, bias-free."""
    B, C, H, W = x.shape
    assert conv_w.shape == (1, 2, KSIZE, KSIZE)
    HW = H * W
    PADF = PAD * W + PAD
    L = HW + 2 * PADF
    itemsize = x.dtype.itemsize

    # Fold the eval-mode BatchNorm affine into the conv weights / bias.
    # TODO(synk): train-mode BatchNorm (batch statistics of the conv output)
    # is not implemented; eval-mode running-stats semantics are used.
    scale = (bn_gamma / jnp.sqrt(bn_var + bn_eps)).astype(jnp.float32)   # (1,)
    shift = (bn_beta - bn_mean * scale).astype(jnp.float32)              # (1,)
    w_flat = (conv_w[0].astype(jnp.float32) * scale[0]).reshape(-1)      # (98,)
    b = shift.reshape(1)

    # Column-validity masks for the flattened conv taps (one per kw offset).
    cols = jnp.arange(HW, dtype=jnp.int32) % W
    masks = [(((cols + dw) >= 0) & ((cols + dw) < W)).astype(jnp.float32)
             for dw in range(-PAD, PAD + 1)]
    colmask = jnp.stack(masks, axis=0).reshape(KSIZE, 1, 1, HW)

    xr = x.reshape(B, C, HW)                      # lane-dense HBM layout

    # --- generation-aware VMEM budgeting -------------------------------------
    try:
        vmem_cap = int(getattr(pltpu.get_tpu_info(), "vmem_capacity_bytes",
                               128 * 1024 * 1024))
    except Exception:
        vmem_cap = 128 * 1024 * 1024
    two_tc = vmem_cap <= 64 * 1024 * 1024         # v7x-class: 64 MiB/TC, 2 TCs

    if two_tc:
        block_budget = 28 * 1024 * 1024
        vmem_limit = 40 * 1024 * 1024
    else:                                         # v5e / v6e: 128 MiB VMEM
        block_budget = 64 * 1024 * 1024
        vmem_limit = 100 * 1024 * 1024

    per_image = C * HW * itemsize
    # 4x per_image for double-buffered in+out, plus the padded-map scratch and
    # the single-sublane f32 intermediates (~32 B/pixel each) kept live.
    denom = 6 * per_image + 256 * HW
    bt = max(1, block_budget // denom)
    if two_tc and B >= 2:
        bt = min(bt, pl.cdiv(B, 2))               # keep both TCs busy on v7x
    bt = int(min(bt, B))
    grid = (pl.cdiv(B, bt),)

    # TODO(synk): halo-tile H (overlapping index_map) when a single image's
    # double-buffered in+out block exceeds the budget; for now just raise the
    # VMEM limit toward physical capacity.
    if 6 * per_image > block_budget:
        vmem_limit = int(vmem_cap * 0.9)

    cost = pl.CostEstimate(
        flops=B * HW * (3 * C + 4 * KSIZE * KSIZE + 2),
        transcendentals=B * HW,
        bytes_accessed=2 * B * C * HW * itemsize,
    )

    kernel = functools.partial(_spatial_attention_kernel, W=W)

    out = pl.pallas_call(
        kernel,
        out_shape=jax.ShapeDtypeStruct((B, C, HW), x.dtype),
        grid_spec=pltpu.PrefetchScalarGridSpec(
            num_scalar_prefetch=2,                # w_flat, b -> SMEM
            grid=grid,
            in_specs=[
                pl.BlockSpec((KSIZE, 1, 1, HW), lambda i, w, bb: (0, 0, 0, 0)),
                pl.BlockSpec((bt, C, HW), lambda i, w, bb: (i, 0, 0)),
            ],
            out_specs=pl.BlockSpec((bt, C, HW), lambda i, w, bb: (i, 0, 0)),
            scratch_shapes=[pltpu.VMEM((2, bt, 1, L), jnp.float32)],
        ),
        compiler_params=pltpu.CompilerParams(
            dimension_semantics=("parallel",),
            vmem_limit_bytes=vmem_limit,
        ),
        cost_estimate=cost,
    )(w_flat, b, colmask, xr)

    return out.reshape(B, C, H, W)


def reference(x, conv_w, bn_gamma, bn_beta, bn_mean, bn_var, bn_eps=1e-5):
    # Pure-JAX reference matching the PyTorch module (eval-mode BN).
    avg = jnp.mean(x, axis=1, keepdims=True)
    mx = jnp.max(x, axis=1, keepdims=True)
    pooled = jnp.concatenate([avg, mx], axis=1)              # (B, 2, H, W)
    conv = lax.conv_general_dilated(
        pooled, conv_w, window_strides=(1, 1),
        padding=((PAD, PAD), (PAD, PAD)),
        dimension_numbers=("NCHW", "OIHW", "NCHW"),
        precision=lax.Precision.HIGHEST)
    inv = (bn_gamma / jnp.sqrt(bn_var + bn_eps)).reshape(1, 1, 1, 1)
    bn = (conv - bn_mean.reshape(1, 1, 1, 1)) * inv + bn_beta.reshape(1, 1, 1, 1)
    return x * jax.nn.sigmoid(bn)


if __name__ == "__main__":
    B, C, H, W = 2, 4, 16, 16

    key = jax.random.PRNGKey(0)
    kx, kw, kg, kb, km, kv = jax.random.split(key, 6)

    x = jax.random.normal(kx, (B, C, H, W), dtype=jnp.float32)
    conv_w = jax.random.normal(kw, (1, 2, KSIZE, KSIZE), dtype=jnp.float32) * 0.2
    bn_gamma = 1.0 + 0.1 * jax.random.normal(kg, (1,), dtype=jnp.float32)
    bn_beta = 0.1 * jax.random.normal(kb, (1,), dtype=jnp.float32)
    bn_mean = 0.1 * jax.random.normal(km, (1,), dtype=jnp.float32)
    bn_var = jnp.abs(jax.random.normal(kv, (1,), dtype=jnp.float32)) + 0.5

    out = spatial_attention(x, conv_w, bn_gamma, bn_beta, bn_mean, bn_var)
    jax.block_until_ready(out)

    ref = reference(x, conv_w, bn_gamma, bn_beta, bn_mean, bn_var)
    assert out.shape == (B, C, H, W)
    assert jnp.allclose(out, ref, atol=1e-5, rtol=1e-5), \
        float(jnp.max(jnp.abs(out - ref)))

    print("KERNEL_OK")
</pallas_src>

<mosaic_0001>
module attributes {stable_mosaic.version = 11 : i64} {
  func.func @_spatial_attention_kernel(%arg0: i32, %arg1: memref<98xf32, #tpu.memory_space<smem>>, %arg2: memref<1xf32, #tpu.memory_space<smem>>, %arg3: memref<7x1x1x256xf32, #tpu.memory_space<vmem>>, %arg4: memref<2x4x256xf32, #tpu.memory_space<vmem>>, %arg5: memref<2x4x256xf32, #tpu.memory_space<vmem>>, %arg6: memref<2x2x1x358xf32, #tpu.memory_space<vmem>>) attributes {dimension_semantics = [#tpu.dimension_semantics<parallel>], iteration_bounds = array<i64: 1>, scalar_prefetch = 2 : i64, scratch_operands = 1 : i64, tpu.core_type = #tpu.core_type<tc>, window_params = [{pipeline_mode = #tpu.pipeline_mode<synchronous>, transform_indices = @transform_0, window_bounds = array<i64: 7, 1, 1, 256>}, {transform_indices = @transform_1, window_bounds = array<i64: 2, 4, 256>}, {transform_indices = @transform_2, window_bounds = array<i64: 2, 4, 256>}]} {
    %cst = arith.constant 0.000000e+00 : f32
    %0 = vector.broadcast %cst : f32 to vector<2x1x256xf32>
    %cst_0 = arith.constant 0xFF800000 : f32
    %1 = vector.broadcast %cst_0 : f32 to vector<2x1x256xf32>
    %c0 = arith.constant 0 : index
    %c0_1 = arith.constant 0 : index
    %c0_2 = arith.constant 0 : index
    %2 = vector.load %arg4[%c0, %c0_1, %c0_2] : memref<2x4x256xf32, #tpu.memory_space<vmem>>, vector<2x4x256xf32>
    %cst_3 = arith.constant dense<0.000000e+00> : vector<2x256xf32>
    %3 = vector.multi_reduction <add>, %2, %cst_3 [1] : vector<2x4x256xf32> to vector<2x256xf32>
    %4 = vector.shape_cast %3 : vector<2x256xf32> to vector<2x1x256xf32>
    %5 = arith.addf %0, %4 : vector<2x1x256xf32>
    %cst_4 = arith.constant dense<0xFF800000> : vector<2x256xf32>
    %6 = vector.multi_reduction <maximumf>, %2, %cst_4 [1] : vector<2x4x256xf32> to vector<2x256xf32>
    %7 = vector.shape_cast %6 : vector<2x256xf32> to vector<2x1x256xf32>
    %8 = arith.maximumf %1, %7 : vector<2x1x256xf32>
    %cst_5 = arith.constant 2.500000e-01 : f32
    %9 = vector.broadcast %cst_5 : f32 to vector<2x1x256xf32>
    %10 = arith.mulf %5, %9 : vector<2x1x256xf32>
    %cst_6 = arith.constant 0.000000e+00 : f32
    %11 = vector.broadcast %cst_6 : f32 to vector<2x2x1x358xf32>
    %c0_7 = arith.constant 0 : index
    %c0_8 = arith.constant 0 : index
    %c0_9 = arith.constant 0 : index
    %c0_10 = arith.constant 0 : index
    %12 = vector.load %arg6[%c0_7, %c0_8, %c0_9, %c0_10] : memref<2x2x1x358xf32, #tpu.memory_space<vmem>>, vector<2x2x1x358xf32>
    tpu.vector_store %arg6[%c0_7, %c0_8, %c0_9, %c0_10], %11 {strides = array<i32>} : memref<2x2x1x358xf32, #tpu.memory_space<vmem>>, vector<2x2x1x358xf32>,
    %c0_11 = arith.constant 0 : index
    %c0_12 = arith.constant 0 : index
    %c0_13 = arith.constant 0 : index
    %c51 = arith.constant 51 : index
    %13 = vector.load %arg6[%c0_11, %c0_12, %c0_13, %c51] : memref<2x2x1x358xf32, #tpu.memory_space<vmem>>, vector<1x2x1x256xf32>
    %14 = vector.shape_cast %13 : vector<1x2x1x256xf32> to vector<2x1x256xf32>
    %15 = vector.shape_cast %10 : vector<2x1x256xf32> to vector<1x2x1x256xf32>
    tpu.vector_store %arg6[%c0_11, %c0_12, %c0_13, %c51], %15 {strides = array<i32>} : memref<2x2x1x358xf32, #tpu.memory_space<vmem>>, vector<1x2x1x256xf32>,
    %c1 = arith.constant 1 : index
    %c0_14 = arith.constant 0 : index
    %c0_15 = arith.constant 0 : index
    %c51_16 = arith.constant 51 : index
    %16 = vector.load %arg6[%c1, %c0_14, %c0_15, %c51_16] : memref<2x2x1x358xf32, #tpu.memory_space<vmem>>, vector<1x2x1x256xf32>
    %17 = vector.shape_cast %16 : vector<1x2x1x256xf32> to vector<2x1x256xf32>
    %18 = vector.shape_cast %8 : vector<2x1x256xf32> to vector<1x2x1x256xf32>
    tpu.vector_store %arg6[%c1, %c0_14, %c0_15, %c51_16], %18 {strides = array<i32>} : memref<2x2x1x358xf32, #tpu.memory_space<vmem>>, vector<1x2x1x256xf32>,
    %cst_17 = arith.constant 0.000000e+00 : f32
    %19 = vector.broadcast %cst_17 : f32 to vector<2x1x256xf32>
    %c0_18 = arith.constant 0 : index
    %20 = memref.load %arg2[%c0_18] : memref<1xf32, #tpu.memory_space<smem>>
    %21 = vector.broadcast %20 : f32 to vector<2x1x256xf32>
    %22 = arith.addf %19, %21 : vector<2x1x256xf32>
    %cst_19 = arith.constant 0.000000e+00 : f32
    %23 = vector.broadcast %cst_19 : f32 to vector<2x1x256xf32>
    %c0_20 = arith.constant 0 : index
    %24 = memref.load %arg1[%c0_20] : memref<98xf32, #tpu.memory_space<smem>>
    %c49 = arith.constant 49 : index
    %25 = memref.load %arg1[%c49] : memref<98xf32, #tpu.memory_space<smem>>
    %c0_21 = arith.constant 0 : index
    %c0_22 = arith.constant 0 : index
    %c0_23 = arith.constant 0 : index
    %c0_24 = arith.constant 0 : index
    %26 = vector.load %arg6[%c0_21, %c0_22, %c0_23, %c0_24] : memref<2x2x1x358xf32, #tpu.memory_space<vmem>>, vector<1x2x1x256xf32>
    %27 = vector.shape_cast %26 : vector<1x2x1x256xf32> to vector<2x1x256xf32>
    %28 = vector.broadcast %24 : f32 to vector<2x1x256xf32>
    %29 = arith.mulf %28, %27 : vector<2x1x256xf32>
    %30 = arith.addf %23, %29 : vector<2x1x256xf32>
    %c1_25 = arith.constant 1 : index
    %c0_26 = arith.constant 0 : index
    %c0_27 = arith.constant 0 : index
    %c0_28 = arith.constant 0 : index
    %31 = vector.load %arg6[%c1_25, %c0_26, %c0_27, %c0_28] : memref<2x2x1x358xf32, #tpu.memory_space<vmem>>, vector<1x2x1x256xf32>
    %32 = vector.shape_cast %31 : vector<1x2x1x256xf32> to vector<2x1x256xf32>
    %33 = vector.broadcast %25 : f32 to vector<2x1x256xf32>
    %34 = arith.mulf %33, %32 : vector<2x1x256xf32>
    %35 = arith.addf %30, %34 : vector<2x1x256xf32>
    %c7 = arith.constant 7 : index
    %36 = memref.load %arg1[%c7] : memref<98xf32, #tpu.memory_space<smem>>
    %c56 = arith.constant 56 : index
    %37 = memref.load %arg1[%c56] : memref<98xf32, #tpu.memory_space<smem>>
    %c0_29 = arith.constant 0 : index
    %c0_30 = arith.constant 0 : index
    %c0_31 = arith.constant 0 : index
    %c16 = arith.constant 16 : index
    %38 = vector.load %arg6[%c0_29, %c0_30, %c0_31, %c16] : memref<2x2x1x358xf32, #tpu.memory_space<vmem>>, vector<1x2x1x256xf32>
    %39 = vector.shape_cast %38 : vector<1x2x1x256xf32> to vector<2x1x256xf32>
    %40 = vector.broadcast %36 : f32 to vector<2x1x256xf32>
    %41 = arith.mulf %40, %39 : vector<2x1x256xf32>
    %42 = arith.addf %35, %41 : vector<2x1x256xf32>
    %c1_32 = arith.constant 1 : index
    %c0_33 = arith.constant 0 : index
    %c0_34 = arith.constant 0 : index
    %c16_35 = arith.constant 16 : index
    %43 = vector.load %arg6[%c1_32, %c0_33, %c0_34, %c16_35] : memref<2x2x1x358xf32, #tpu.memory_space<vmem>>, vector<1x2x1x256xf32>
    %44 = vector.shape_cast %43 : vector<1x2x1x256xf32> to vector<2x1x256xf32>
    %45 = vector.broadcast %37 : f32 to vector<2x1x256xf32>
    %46 = arith.mulf %45, %44 : vector<2x1x256xf32>
    %47 = arith.addf %42, %46 : vector<2x1x256xf32>
    %c14 = arith.constant 14 : index
    %48 = memref.load %arg1[%c14] : memref<98xf32, #tpu.memory_space<smem>>
    %c63 = arith.constant 63 : index
    %49 = memref.load %arg1[%c63] : memref<98xf32, #tpu.memory_space<smem>>
    %c0_36 = arith.constant 0 : index
    %c0_37 = arith.constant 0 : index
    %c0_38 = arith.constant 0 : index
    %c32 = arith.constant 32 : index
    %50 = vector.load %arg6[%c0_36, %c0_37, %c0_38, %c32] : memref<2x2x1x358xf32, #tpu.memory_space<vmem>>, vector<1x2x1x256xf32>
    %51 = vector.shape_cast %50 : vector<1x2x1x256xf32> to vector<2x1x256xf32>
    %52 = vector.broadcast %48 : f32 to vector<2x1x256xf32>
    %53 = arith.mulf %52, %51 : vector<2x1x256xf32>
    %54 = arith.addf %47, %53 : vector<2x1x256xf32>
    %c1_39 = arith.constant 1 : index
    %c0_40 = arith.constant 0 : index
    %c0_41 = arith.constant 0 : index
    %c32_42 = arith.constant 32 : index
    %55 = vector.load %arg6[%c1_39, %c0_40, %c0_41, %c32_42] : memref<2x2x1x358xf32, #tpu.memory_space<vmem>>, vector<1x2x1x256xf32>
    %56 = vector.shape_cast %55 : vector<1x2x1x256xf32> to vector<2x1x256xf32>
    %57 = vector.broadcast %49 : f32 to vector<2x1x256xf32>
    %58 = arith.mulf %57, %56 : vector<2x1x256xf32>
    %59 = arith.addf %54, %58 : vector<2x1x256xf32>
    %c21 = arith.constant 21 : index
    %60 = memref.load %arg1[%c21] : memref<98xf32, #tpu.memory_space<smem>>
    %c70 = arith.constant 70 : index
    %61 = memref.load %arg1[%c70] : memref<98xf32, #tpu.memory_space<smem>>
    %c0_43 = arith.constant 0 : index
    %c0_44 = arith.constant 0 : index
    %c0_45 = arith.constant 0 : index
    %c48 = arith.constant 48 : index
    %62 = vector.load %arg6[%c0_43, %c0_44, %c0_45, %c48] : memref<2x2x1x358xf32, #tpu.memory_space<vmem>>, vector<1x2x1x256xf32>
    %63 = vector.shape_cast %62 : vector<1x2x1x256xf32> to vector<2x1x256xf32>
    %64 = vector.broadcast %60 : f32 to vector<2x1x256xf32>
    %65 = arith.mulf %64, %63 : vector<2x1x256xf32>
    %66 = arith.addf %59, %65 : vector<2x1x256xf32>
    %c1_46 = arith.constant 1 : index
    %c0_47 = arith.constant 0 : index
    %c0_48 = arith.constant 0 : index
    %c48_49 = arith.constant 48 : index
    %67 = vector.load %arg6[%c1_46, %c0_47, %c0_48, %c48_49] : memref<2x2x1x358xf32, #tpu.memory_space<vmem>>, vector<1x2x1x256xf32>
    %68 = vector.shape_cast %67 : vector<1x2x1x256xf32> to vector<2x1x256xf32>
    %69 = vector.broadcast %61 : f32 to vector<2x1x256xf32>
    %70 = arith.mulf %69, %68 : vector<2x1x256xf32>
    %71 = arith.addf %66, %70 : vector<2x1x256xf32>
    %c28 = arith.constant 28 : index
    %72 = memref.load %arg1[%c28] : memref<98xf32, #tpu.memory_space<smem>>
    %c77 = arith.constant 77 : index
    %73 = memref.load %arg1[%c77] : memref<98xf32, #tpu.memory_space<smem>>
    %c0_50 = arith.constant 0 : index
    %c0_51 = arith.constant 0 : index
    %c0_52 = arith.constant 0 : index
    %c64 = arith.constant 64 : index
    %74 = vector.load %arg6[%c0_50, %c0_51, %c0_52, %c64] : memref<2x2x1x358xf32, #tpu.memory_space<vmem>>, vector<1x2x1x256xf32>
    %75 = vector.shape_cast %74 : vector<1x2x1x256xf32> to vector<2x1x256xf32>
    %76 = vector.broadcast %72 : f32 to vector<2x1x256xf32>
    %77 = arith.mulf %76, %75 : vector<2x1x256xf32>
    %78 = arith.addf %71, %77 : vector<2x1x256xf32>
    %c1_53 = arith.constant 1 : index
    %c0_54 = arith.constant 0 : index
    %c0_55 = arith.constant 0 : index
    %c64_56 = arith.constant 64 : index
    %79 = vector.load %arg6[%c1_53, %c0_54, %c0_55, %c64_56] : memref<2x2x1x358xf32, #tpu.memory_space<vmem>>, vector<1x2x1x256xf32>
    %80 = vector.shape_cast %79 : vector<1x2x1x256xf32> to vector<2x1x256xf32>
    %81 = vector.broadcast %73 : f32 to vector<2x1x256xf32>
    %82 = arith.mulf %81, %80 : vector<2x1x256xf32>
    %83 = arith.addf %78, %82 : vector<2x1x256xf32>
    %c35 = arith.constant 35 : index
    %84 = memref.load %arg1[%c35] : memref<98xf32, #tpu.memory_space<smem>>
    %c84 = arith.constant 84 : index
    %85 = memref.load %arg1[%c84] : memref<98xf32, #tpu.memory_space<smem>>
    %c0_57 = arith.constant 0 : index
    %c0_58 = arith.constant 0 : index
    %c0_59 = arith.constant 0 : index
    %c80 = arith.constant 80 : index
    %86 = vector.load %arg6[%c0_57, %c0_58, %c0_59, %c80] : memref<2x2x1x358xf32, #tpu.memory_space<vmem>>, vector<1x2x1x256xf32>
    %87 = vector.shape_cast %86 : vector<1x2x1x256xf32> to vector<2x1x256xf32>
    %88 = vector.broadcast %84 : f32 to vector<2x1x256xf32>
    %89 = arith.mulf %88, %87 : vector<2x1x256xf32>
    %90 = arith.addf %83, %89 : vector<2x1x256xf32>
    %c1_60 = arith.constant 1 : index
    %c0_61 = arith.constant 0 : index
    %c0_62 = arith.constant 0 : index
    %c80_63 = arith.constant 80 : index
    %91 = vector.load %arg6[%c1_60, %c0_61, %c0_62, %c80_63] : memref<2x2x1x358xf32, #tpu.memory_space<vmem>>, vector<1x2x1x256xf32>
    %92 = vector.shape_cast %91 : vector<1x2x1x256xf32> to vector<2x1x256xf32>
    %93 = vector.broadcast %85 : f32 to vector<2x1x256xf32>
    %94 = arith.mulf %93, %92 : vector<2x1x256xf32>
    %95 = arith.addf %90, %94 : vector<2x1x256xf32>
    %c42 = arith.constant 42 : index
    %96 = memref.load %arg1[%c42] : memref<98xf32, #tpu.memory_space<smem>>
    %c91 = arith.constant 91 : index
    %97 = memref.load %arg1[%c91] : memref<98xf32, #tpu.memory_space<smem>>
    %c0_64 = arith.constant 0 : index
    %c0_65 = arith.constant 0 : index
    %c0_66 = arith.constant 0 : index
    %c96 = arith.constant 96 : index
    %98 = vector.load %arg6[%c0_64, %c0_65, %c0_66, %c96] : memref<2x2x1x358xf32, #tpu.memory_space<vmem>>, vector<1x2x1x256xf32>
    %99 = vector.shape_cast %98 : vector<1x2x1x256xf32> to vector<2x1x256xf32>
    %100 = vector.broadcast %96 : f32 to vector<2x1x256xf32>
    %101 = arith.mulf %100, %99 : vector<2x1x256xf32>
    %102 = arith.addf %95, %101 : vector<2x1x256xf32>
    %c1_67 = arith.constant 1 : index
    %c0_68 = arith.constant 0 : index
    %c0_69 = arith.constant 0 : index
    %c96_70 = arith.constant 96 : index
    %103 = vector.load %arg6[%c1_67, %c0_68, %c0_69, %c96_70] : memref<2x2x1x358xf32, #tpu.memory_space<vmem>>, vector<1x2x1x256xf32>
    %104 = vector.shape_cast %103 : vector<1x2x1x256xf32> to vector<2x1x256xf32>
    %105 = vector.broadcast %97 : f32 to vector<2x1x256xf32>
    %106 = arith.mulf %105, %104 : vector<2x1x256xf32>
    %107 = arith.addf %102, %106 : vector<2x1x256xf32>
    %c0_71 = arith.constant 0 : index
    %c0_72 = arith.constant 0 : index
    %c0_73 = arith.constant 0 : index
    %c0_74 = arith.constant 0 : index
    %108 = vector.load %arg3[%c0_71, %c0_72, %c0_73, %c0_74] : memref<7x1x1x256xf32, #tpu.memory_space<vmem>>, vector<1x1x1x256xf32>
    %109 = vector.shape_cast %108 : vector<1x1x1x256xf32> to vector<1x1x256xf32>
    %110 = vector.broadcast %109 : vector<1x1x256xf32> to vector<2x1x256xf32>
    %111 = arith.mulf %110, %107 : vector<2x1x256xf32>
    %112 = arith.addf %22, %111 : vector<2x1x256xf32>
    %cst_75 = arith.constant 0.000000e+00 : f32
    %113 = vector.broadcast %cst_75 : f32 to vector<2x1x256xf32>
    %c1_76 = arith.constant 1 : index
    %114 = memref.load %arg1[%c1_76] : memref<98xf32, #tpu.memory_space<smem>>
    %c50 = arith.constant 50 : index
    %115 = memref.load %arg1[%c50] : memref<98xf32, #tpu.memory_space<smem>>
    %c0_77 = arith.constant 0 : index
    %c0_78 = arith.constant 0 : index
    %c0_79 = arith.constant 0 : index
    %c1_80 = arith.constant 1 : index
    %116 = vector.load %arg6[%c0_77, %c0_78, %c0_79, %c1_80] : memref<2x2x1x358xf32, #tpu.memory_space<vmem>>, vector<1x2x1x256xf32>
    %117 = vector.shape_cast %116 : vector<1x2x1x256xf32> to vector<2x1x256xf32>
    %118 = vector.broadcast %114 : f32 to vector<2x1x256xf32>
    %119 = arith.mulf %118, %117 : vector<2x1x256xf32>
    %120 = arith.addf %113, %119 : vector<2x1x256xf32>
    %c1_81 = arith.constant 1 : index
    %c0_82 = arith.constant 0 : index
    %c0_83 = arith.constant 0 : index
    %c1_84 = arith.constant 1 : index
    %121 = vector.load %arg6[%c1_81, %c0_82, %c0_83, %c1_84] : memref<2x2x1x358xf32, #tpu.memory_space<vmem>>, vector<1x2x1x256xf32>
    %122 = vector.shape_cast %121 : vector<1x2x1x256xf32> to vector<2x1x256xf32>
    %123 = vector.broadcast %115 : f32 to vector<2x1x256xf32>
    %124 = arith.mulf %123, %122 : vector<2x1x256xf32>
    %125 = arith.addf %120, %124 : vector<2x1x256xf32>
    %c8 = arith.constant 8 : index
    %126 = memref.load %arg1[%c8] : memref<98xf32, #tpu.memory_space<smem>>
    %c57 = arith.constant 57 : index
    %127 = memref.load %arg1[%c57] : memref<98xf32, #tpu.memory_space<smem>>
    %c0_85 = arith.constant 0 : index
    %c0_86 = arith.constant 0 : index
    %c0_87 = arith.constant 0 : index
    %c17 = arith.constant 17 : index
    %128 = vector.load %arg6[%c0_85, %c0_86, %c0_87, %c17] : memref<2x2x1x358xf32, #tpu.memory_space<vmem>>, vector<1x2x1x256xf32>
    %129 = vector.shape_cast %128 : vector<1x2x1x256xf32> to vector<2x1x256xf32>
    %130 = vector.broadcast %126 : f32 to vector<2x1x256xf32>
    %131 = arith.mulf %130, %129 : vector<2x1x256xf32>
    %132 = arith.addf %125, %131 : vector<2x1x256xf32>
    %c1_88 = arith.constant 1 : index
    %c0_89 = arith.constant 0 : index
    %c0_90 = arith.constant 0 : index
    %c17_91 = arith.constant 17 : index
    %133 = vector.load %arg6[%c1_88, %c0_89, %c0_90, %c17_91] : memref<2x2x1x358xf32, #tpu.memory_space<vmem>>, vector<1x2x1x256xf32>
    %134 = vector.shape_cast %133 : vector<1x2x1x256xf32> to vector<2x1x256xf32>
    %135 = vector.broadcast %127 : f32 to vector<2x1x256xf32>
    %136 = arith.mulf %135, %134 : vector<2x1x256xf32>
    %137 = arith.addf %132, %136 : vector<2x1x256xf32>
    %c15 = arith.constant 15 : index
    %138 = memref.load %arg1[%c15] : memref<98xf32, #tpu.memory_space<smem>>
    %c64_92 = arith.constant 64 : index
    %139 = memref.load %arg1[%c64_92] : memref<98xf32, #tpu.memory_space<smem>>
    %c0_93 = arith.constant 0 : index
    %c0_94 = arith.constant 0 : index
    %c0_95 = arith.constant 0 : index
    %c33 = arith.constant 33 : index
    %140 = vector.load %arg6[%c0_93, %c0_94, %c0_95, %c33] : memref<2x2x1x358xf32, #tpu.memory_space<vmem>>, vector<1x2x1x256xf32>
    %141 = vector.shape_cast %140 : vector<1x2x1x256xf32> to vector<2x1x256xf32>
    %142 = vector.broadcast %138 : f32 to vector<2x1x256xf32>
    %143 = arith.mulf %142, %141 : vector<2x1x256xf32>
    %144 = arith.addf %137, %143 : vector<2x1x256xf32>
    %c1_96 = arith.constant 1 : index
    %c0_97 = arith.constant 0 : index
    %c0_98 = arith.constant 0 : index
    %c33_99 = arith.constant 33 : index
    %145 = vector.load %arg6[%c1_96, %c0_97, %c0_98, %c33_99] : memref<2x2x1x358xf32, #tpu.memory_space<vmem>>, vector<1x2x1x256xf32>
    %146 = vector.shape_cast %145 : vector<1x2x1x256xf32> to vector<2x1x256xf32>
    %147 = vector.broadcast %139 : f32 to vector<2x1x256xf32>
    %148 = arith.mulf %147, %146 : vector<2x1x256xf32>
    %149 = arith.addf %144, %148 : vector<2x1x256xf32>
    %c22 = arith.constant 22 : index
    %150 = memref.load %arg1[%c22] : memref<98xf32, #tpu.memory_space<smem>>
    %c71 = arith.constant 71 : index
    %151 = memref.load %arg1[%c71] : memref<98xf32, #tpu.memory_space<smem>>
    %c0_100 = arith.constant 0 : index
    %c0_101 = arith.constant 0 : index
    %c0_102 = arith.constant 0 : index
    %c49_103 = arith.constant 49 : index
    %152 = vector.load %arg6[%c0_100, %c0_101, %c0_102, %c49_103] : memref<2x2x1x358xf32, #tpu.memory_space<vmem>>, vector<1x2x1x256xf32>
    %153 = vector.shape_cast %152 : vector<1x2x1x256xf32> to vector<2x1x256xf32>
    %154 = vector.broadcast %150 : f32 to vector<2x1x256xf32>
    %155 = arith.mulf %154, %153 : vector<2x1x256xf32>
    %156 = arith.addf %149, %155 : vector<2x1x256xf32>
    %c1_104 = arith.constant 1 : index
    %c0_105 = arith.constant 0 : index
    %c0_106 = arith.constant 0 : index
    %c49_107 = arith.constant 49 : index
    %157 = vector.load %arg6[%c1_104, %c0_105, %c0_106, %c49_107] : memref<2x2x1x358xf32, #tpu.memory_space<vmem>>, vector<1x2x1x256xf32>
    %158 = vector.shape_cast %157 : vector<1x2x1x256xf32> to vector<2x1x256xf32>
    %159 = vector.broadcast %151 : f32 to vector<2x1x256xf32>
    %160 = arith.mulf %159, %158 : vector<2x1x256xf32>
    %161 = arith.addf %156, %160 : vector<2x1x256xf32>
    %c29 = arith.constant 29 : index
    %162 = memref.load %arg1[%c29] : memref<98xf32, #tpu.memory_space<smem>>
    %c78 = arith.constant 78 : index
    %163 = memref.load %arg1[%c78] : memref<98xf32, #tpu.memory_space<smem>>
    %c0_108 = arith.constant 0 : index
    %c0_109 = arith.constant 0 : index
    %c0_110 = arith.constant 0 : index
    %c65 = arith.constant 65 : index
    %164 = vector.load %arg6[%c0_108, %c0_109, %c0_110, %c65] : memref<2x2x1x358xf32, #tpu.memory_space<vmem>>, vector<1x2x1x256xf32>
    %165 = vector.shape_cast %164 : vector<1x2x1x256xf32> to vector<2x1x256xf32>
    %166 = vector.broadcast %162 : f32 to vector<2x1x256xf32>
    %167 = arith.mulf %166, %165 : vector<2x1x256xf32>
    %168 = arith.addf %161, %167 : vector<2x1x256xf32>
    %c1_111 = arith.constant 1 : index
    %c0_112 = arith.constant 0 : index
    %c0_113 = arith.constant 0 : index
    %c65_114 = arith.constant 65 : index
    %169 = vector.load %arg6[%c1_111, %c0_112, %c0_113, %c65_114] : memref<2x2x1x358xf32, #tpu.memory_space<vmem>>, vector<1x2x1x256xf32>
    %170 = vector.shape_cast %169 : vector<1x2x1x256xf32> to vector<2x1x256xf32>
    %171 = vector.broadcast %163 : f32 to vector<2x1x256xf32>
    %172 = arith.mulf %171, %170 : vector<2x1x256xf32>
    %173 = arith.addf %168, %172 : vector<2x1x256xf32>
    %c36 = arith.constant 36 : index
    %174 = memref.load %arg1[%c36] : memref<98xf32, #tpu.memory_space<smem>>
    %c85 = arith.constant 85 : index
    %175 = memref.load %arg1[%c85] : memref<98xf32, #tpu.memory_space<smem>>
    %c0_115 = arith.constant 0 : index
    %c0_116 = arith.constant 0 : index
    %c0_117 = arith.constant 0 : index
    %c81 = arith.constant 81 : index
    %176 = vector.load %arg6[%c0_115, %c0_116, %c0_117, %c81] : memref<2x2x1x358xf32, #tpu.memory_space<vmem>>, vector<1x2x1x256xf32>
    %177 = vector.shape_cast %176 : vector<1x2x1x256xf32> to vector<2x1x256xf32>
    %178 = vector.broadcast %174 : f32 to vector<2x1x256xf32>
    %179 = arith.mulf %178, %177 : vector<2x1x256xf32>
    %180 = arith.addf %173, %179 : vector<2x1x256xf32>
    %c1_118 = arith.constant 1 : index
    %c0_119 = arith.constant 0 : index
    %c0_120 = arith.constant 0 : index
    %c81_121 = arith.constant 81 : index
    %181 = vector.load %arg6[%c1_118, %c0_119, %c0_120, %c81_121] : memref<2x2x1x358xf32, #tpu.memory_space<vmem>>, vector<1x2x1x256xf32>
    %182 = vector.shape_cast %181 : vector<1x2x1x256xf32> to vector<2x1x256xf32>
    %183 = vector.broadcast %175 : f32 to vector<2x1x256xf32>
    %184 = arith.mulf %183, %182 : vector<2x1x256xf32>
    %185 = arith.addf %180, %184 : vector<2x1x256xf32>
    %c43 = arith.constant 43 : index
    %186 = memref.load %arg1[%c43] : memref<98xf32, #tpu.memory_space<smem>>
    %c92 = arith.constant 92 : index
    %187 = memref.load %arg1[%c92] : memref<98xf32, #tpu.memory_space<smem>>
    %c0_122 = arith.constant 0 : index
    %c0_123 = arith.constant 0 : index
    %c0_124 = arith.constant 0 : index
    %c97 = arith.constant 97 : index
    %188 = vector.load %arg6[%c0_122, %c0_123, %c0_124, %c97] : memref<2x2x1x358xf32, #tpu.memory_space<vmem>>, vector<1x2x1x256xf32>
    %189 = vector.shape_cast %188 : vector<1x2x1x256xf32> to vector<2x1x256xf32>
    %190 = vector.broadcast %186 : f32 to vector<2x1x256xf32>
    %191 = arith.mulf %190, %189 : vector<2x1x256xf32>
    %192 = arith.addf %185, %191 : vector<2x1x256xf32>
    %c1_125 = arith.constant 1 : index
    %c0_126 = arith.constant 0 : index
    %c0_127 = arith.constant 0 : index
    %c97_128 = arith.constant 97 : index
    %193 = vector.load %arg6[%c1_125, %c0_126, %c0_127, %c97_128] : memref<2x2x1x358xf32, #tpu.memory_space<vmem>>, vector<1x2x1x256xf32>
    %194 = vector.shape_cast %193 : vector<1x2x1x256xf32> to vector<2x1x256xf32>
    %195 = vector.broadcast %187 : f32 to vector<2x1x256xf32>
    %196 = arith.mulf %195, %194 : vector<2x1x256xf32>
    %197 = arith.addf %192, %196 : vector<2x1x256xf32>
    %c1_129 = arith.constant 1 : index
    %c0_130 = arith.constant 0 : index
    %c0_131 = arith.constant 0 : index
    %c0_132 = arith.constant 0 : index
    %198 = vector.load %arg3[%c1_129, %c0_130, %c0_131, %c0_132] : memref<7x1x1x256xf32, #tpu.memory_space<vmem>>, vector<1x1x1x256xf32>
    %199 = vector.shape_cast %198 : vector<1x1x1x256xf32> to vector<1x1x256xf32>
    %200 = vector.broadcast %199 : vector<1x1x256xf32> to vector<2x1x256xf32>
    %201 = arith.mulf %200, %197 : vector<2x1x256xf32>
    %202 = arith.addf %112, %201 : vector<2x1x256xf32>
    %cst_133 = arith.constant 0.000000e+00 : f32
    %203 = vector.broadcast %cst_133 : f32 to vector<2x1x256xf32>
    %c2 = arith.constant 2 : index
    %204 = memref.load %arg1[%c2] : memref<98xf32, #tpu.memory_space<smem>>
    %c51_134 = arith.constant 51 : index
    %205 = memref.load %arg1[%c51_134] : memref<98xf32, #tpu.memory_space<smem>>
    %c0_135 = arith.constant 0 : index
    %c0_136 = arith.constant 0 : index
    %c0_137 = arith.constant 0 : index
    %c2_138 = arith.constant 2 : index
    %206 = vector.load %arg6[%c0_135, %c0_136, %c0_137, %c2_138] : memref<2x2x1x358xf32, #tpu.memory_space<vmem>>, vector<1x2x1x256xf32>
    %207 = vector.shape_cast %206 : vector<1x2x1x256xf32> to vector<2x1x256xf32>
    %208 = vector.broadcast %204 : f32 to vector<2x1x256xf32>
    %209 = arith.mulf %208, %207 : vector<2x1x256xf32>
    %210 = arith.addf %203, %209 : vector<2x1x256xf32>
    %c1_139 = arith.constant 1 : index
    %c0_140 = arith.constant 0 : index
    %c0_141 = arith.constant 0 : index
    %c2_142 = arith.constant 2 : index
    %211 = vector.load %arg6[%c1_139, %c0_140, %c0_141, %c2_142] : memref<2x2x1x358xf32, #tpu.memory_space<vmem>>, vector<1x2x1x256xf32>
    %212 = vector.shape_cast %211 : vector<1x2x1x256xf32> to vector<2x1x256xf32>
    %213 = vector.broadcast %205 : f32 to vector<2x1x256xf32>
    %214 = arith.mulf %213, %212 : vector<2x1x256xf32>
    %215 = arith.addf %210, %214 : vector<2x1x256xf32>
    %c9 = arith.constant 9 : index
    %216 = memref.load %arg1[%c9] : memref<98xf32, #tpu.memory_space<smem>>
    %c58 = arith.constant 58 : index
    %217 = memref.load %arg1[%c58] : memref<98xf32, #tpu.memory_space<smem>>
    %c0_143 = arith.constant 0 : index
    %c0_144 = arith.constant 0 : index
    %c0_145 = arith.constant 0 : index
    %c18 = arith.constant 18 : index
    %218 = vector.load %arg6[%c0_143, %c0_144, %c0_145, %c18] : memref<2x2x1x358xf32, #tpu.memory_space<vmem>>, vector<1x2x1x256xf32>
    %219 = vector.shape_cast %218 : vector<1x2x1x256xf32> to vector<2x1x256xf32>
    %220 = vector.broadcast %216 : f32 to vector<2x1x256xf32>
    %221 = arith.mulf %220, %219 : vector<2x1x256xf32>
    %222 = arith.addf %215, %221 : vector<2x1x256xf32>
    %c1_146 = arith.constant 1 : index
    %c0_147 = arith.constant 0 : index
    %c0_148 = arith.constant 0 : index
    %c18_149 = arith.constant 18 : index
    %223 = vector.load %arg6[%c1_146, %c0_147, %c0_148, %c18_149] : memref<2x2x1x358xf32, #tpu.memory_space<vmem>>, vector<1x2x1x256xf32>
    %224 = vector.shape_cast %223 : vector<1x2x1x256xf32> to vector<2x1x256xf32>
    %225 = vector.broadcast %217 : f32 to vector<2x1x256xf32>
    %226 = arith.mulf %225, %224 : vector<2x1x256xf32>
    %227 = arith.addf %222, %226 : vector<2x1x256xf32>
    %c16_150 = arith.constant 16 : index
    %228 = memref.load %arg1[%c16_150] : memref<98xf32, #tpu.memory_space<smem>>
    %c65_151 = arith.constant 65 : index
    %229 = memref.load %arg1[%c65_151] : memref<98xf32, #tpu.memory_space<smem>>
    %c0_152 = arith.constant 0 : index
    %c0_153 = arith.constant 0 : index
    %c0_154 = arith.constant 0 : index
    %c34 = arith.constant 34 : index
    %230 = vector.load %arg6[%c0_152, %c0_153, %c0_154, %c34] : memref<2x2x1x358xf32, #tpu.memory_space<vmem>>, vector<1x2x1x256xf32>
    %231 = vector.shape_cast %230 : vector<1x2x1x256xf32> to vector<2x1x256xf32>
    %232 = vector.broadcast %228 : f32 to vector<2x1x256xf32>
    %233 = arith.mulf %232, %231 : vector<2x1x256xf32>
    %234 = arith.addf %227, %233 : vector<2x1x256xf32>
    %c1_155 = arith.constant 1 : index
    %c0_156 = arith.constant 0 : index
    %c0_157 = arith.constant 0 : index
    %c34_158 = arith.constant 34 : index
    %235 = vector.load %arg6[%c1_155, %c0_156, %c0_157, %c34_158] : memref<2x2x1x358xf32, #tpu.memory_space<vmem>>, vector<1x2x1x256xf32>
    %236 = vector.shape_cast %235 : vector<1x2x1x256xf32> to vector<2x1x256xf32>
    %237 = vector.broadcast %229 : f32 to vector<2x1x256xf32>
    %238 = arith.mulf %237, %236 : vector<2x1x256xf32>
    %239 = arith.addf %234, %238 : vector<2x1x256xf32>
    %c23 = arith.constant 23 : index
    %240 = memref.load %arg1[%c23] : memref<98xf32, #tpu.memory_space<smem>>
    %c72 = arith.constant 72 : index
    %241 = memref.load %arg1[%c72] : memref<98xf32, #tpu.memory_space<smem>>
    %c0_159 = arith.constant 0 : index
    %c0_160 = arith.constant 0 : index
    %c0_161 = arith.constant 0 : index
    %c50_162 = arith.constant 50 : index
    %242 = vector.load %arg6[%c0_159, %c0_160, %c0_161, %c50_162] : memref<2x2x1x358xf32, #tpu.memory_space<vmem>>, vector<1x2x1x256xf32>
    %243 = vector.shape_cast %242 : vector<1x2x1x256xf32> to vector<2x1x256xf32>
    %244 = vector.broadcast %240 : f32 to vector<2x1x256xf32>
    %245 = arith.mulf %244, %243 : vector<2x1x256xf32>
    %246 = arith.addf %239, %245 : vector<2x1x256xf32>
    %c1_163 = arith.constant 1 : index
    %c0_164 = arith.constant 0 : index
    %c0_165 = arith.constant 0 : index
    %c50_166 = arith.constant 50 : index
    %247 = vector.load %arg6[%c1_163, %c0_164, %c0_165, %c50_166] : memref<2x2x1x358xf32, #tpu.memory_space<vmem>>, vector<1x2x1x256xf32>
    %248 = vector.shape_cast %247 : vector<1x2x1x256xf32> to vector<2x1x256xf32>
    %249 = vector.broadcast %241 : f32 to vector<2x1x256xf32>
    %250 = arith.mulf %249, %248 : vector<2x1x256xf32>
    %251 = arith.addf %246, %250 : vector<2x1x256xf32>
    %c30 = arith.constant 30 : index
    %252 = memref.load %arg1[%c30] : memref<98xf32, #tpu.memory_space<smem>>
    %c79 = arith.constant 79 : index
    %253 = memref.load %arg1[%c79] : memref<98xf32, #tpu.memory_space<smem>>
    %c0_167 = arith.constant 0 : index
    %c0_168 = arith.constant 0 : index
    %c0_169 = arith.constant 0 : index
    %c66 = arith.constant 66 : index
    %254 = vector.load %arg6[%c0_167, %c0_168, %c0_169, %c66] : memref<2x2x1x358xf32, #tpu.memory_space<vmem>>, vector<1x2x1x256xf32>
    %255 = vector.shape_cast %254 : vector<1x2x1x256xf32> to vector<2x1x256xf32>
    %256 = vector.broadcast %252 : f32 to vector<2x1x256xf32>
    %257 = arith.mulf %256, %255 : vector<2x1x256xf32>
    %258 = arith.addf %251, %257 : vector<2x1x256xf32>
    %c1_170 = arith.constant 1 : index
    %c0_171 = arith.constant 0 : index
    %c0_172 = arith.constant 0 : index
    %c66_173 = arith.constant 66 : index
    %259 = vector.load %arg6[%c1_170, %c0_171, %c0_172, %c66_173] : memref<2x2x1x358xf32, #tpu.memory_space<vmem>>, vector<1x2x1x256xf32>
    %260 = vector.shape_cast %259 : vector<1x2x1x256xf32> to vector<2x1x256xf32>
    %261 = vector.broadcast %253 : f32 to vector<2x1x256xf32>
    %262 = arith.mulf %261, %260 : vector<2x1x256xf32>
    %263 = arith.addf %258, %262 : vector<2x1x256xf32>
    %c37 = arith.constant 37 : index
    %264 = memref.load %arg1[%c37] : memref<98xf32, #tpu.memory_space<smem>>
    %c86 = arith.constant 86 : index
    %265 = memref.load %arg1[%c86] : memref<98xf32, #tpu.memory_space<smem>>
    %c0_174 = arith.constant 0 : index
    %c0_175 = arith.constant 0 : index
    %c0_176 = arith.constant 0 : index
    %c82 = arith.constant 82 : index
    %266 = vector.load %arg6[%c0_174, %c0_175, %c0_176, %c82] : memref<2x2x1x358xf32, #tpu.memory_space<vmem>>, vector<1x2x1x256xf32>
    %267 = vector.shape_cast %266 : vector<1x2x1x256xf32> to vector<2x1x256xf32>
    %268 = vector.broadcast %264 : f32 to vector<2x1x256xf32>
    %269 = arith.mulf %268, %267 : vector<2x1x256xf32>
    %270 = arith.addf %263, %269 : vector<2x1x256xf32>
    %c1_177 = arith.constant 1 : index
    %c0_178 = arith.constant 0 : index
    %c0_179 = arith.constant 0 : index
    %c82_180 = arith.constant 82 : index
    %271 = vector.load %arg6[%c1_177, %c0_178, %c0_179, %c82_180] : memref<2x2x1x358xf32, #tpu.memory_space<vmem>>, vector<1x2x1x256xf32>
    %272 = vector.shape_cast %271 : vector<1x2x1x256xf32> to vector<2x1x256xf32>
    %273 = vector.broadcast %265 : f32 to vector<2x1x256xf32>
    %274 = arith.mulf %273, %272 : vector<2x1x256xf32>
    %275 = arith.addf %270, %274 : vector<2x1x256xf32>
    %c44 = arith.constant 44 : index
    %276 = memref.load %arg1[%c44] : memref<98xf32, #tpu.memory_space<smem>>
    %c93 = arith.constant 93 : index
    %277 = memref.load %arg1[%c93] : memref<98xf32, #tpu.memory_space<smem>>
    %c0_181 = arith.constant 0 : index
    %c0_182 = arith.constant 0 : index
    %c0_183 = arith.constant 0 : index
    %c98 = arith.constant 98 : index
    %278 = vector.load %arg6[%c0_181, %c0_182, %c0_183, %c98] : memref<2x2x1x358xf32, #tpu.memory_space<vmem>>, vector<1x2x1x256xf32>
    %279 = vector.shape_cast %278 : vector<1x2x1x256xf32> to vector<2x1x256xf32>
    %280 = vector.broadcast %276 : f32 to vector<2x1x256xf32>
    %281 = arith.mulf %280, %279 : vector<2x1x256xf32>
    %282 = arith.addf %275, %281 : vector<2x1x256xf32>
    %c1_184 = arith.constant 1 : index
    %c0_185 = arith.constant 0 : index
    %c0_186 = arith.constant 0 : index
    %c98_187 = arith.constant 98 : index
    %283 = vector.load %arg6[%c1_184, %c0_185, %c0_186, %c98_187] : memref<2x2x1x358xf32, #tpu.memory_space<vmem>>, vector<1x2x1x256xf32>
    %284 = vector.shape_cast %283 : vector<1x2x1x256xf32> to vector<2x1x256xf32>
    %285 = vector.broadcast %277 : f32 to vector<2x1x256xf32>
    %286 = arith.mulf %285, %284 : vector<2x1x256xf32>
    %287 = arith.addf %282, %286 : vector<2x1x256xf32>
    %c2_188 = arith.constant 2 : index
    %c0_189 = arith.constant 0 : index
    %c0_190 = arith.constant 0 : index
    %c0_191 = arith.constant 0 : index
    %288 = vector.load %arg3[%c2_188, %c0_189, %c0_190, %c0_191] : memref<7x1x1x256xf32, #tpu.memory_space<vmem>>, vector<1x1x1x256xf32>
    %289 = vector.shape_cast %288 : vector<1x1x1x256xf32> to vector<1x1x256xf32>
    %290 = vector.broadcast %289 : vector<1x1x256xf32> to vector<2x1x256xf32>
    %291 = arith.mulf %290, %287 : vector<2x1x256xf32>
    %292 = arith.addf %202, %291 : vector<2x1x256xf32>
    %cst_192 = arith.constant 0.000000e+00 : f32
    %293 = vector.broadcast %cst_192 : f32 to vector<2x1x256xf32>
    %c3 = arith.constant 3 : index
    %294 = memref.load %arg1[%c3] : memref<98xf32, #tpu.memory_space<smem>>
    %c52 = arith.constant 52 : index
    %295 = memref.load %arg1[%c52] : memref<98xf32, #tpu.memory_space<smem>>
    %c0_193 = arith.constant 0 : index
    %c0_194 = arith.constant 0 : index
    %c0_195 = arith.constant 0 : index
    %c3_196 = arith.constant 3 : index
    %296 = vector.load %arg6[%c0_193, %c0_194, %c0_195, %c3_196] : memref<2x2x1x358xf32, #tpu.memory_space<vmem>>, vector<1x2x1x256xf32>
    %297 = vector.shape_cast %296 : vector<1x2x1x256xf32> to vector<2x1x256xf32>
    %298 = vector.broadcast %294 : f32 to vector<2x1x256xf32>
    %299 = arith.mulf %298, %297 : vector<2x1x256xf32>
    %300 = arith.addf %293, %299 : vector<2x1x256xf32>
    %c1_197 = arith.constant 1 : index
    %c0_198 = arith.constant 0 : index
    %c0_199 = arith.constant 0 : index
    %c3_200 = arith.constant 3 : index
    %301 = vector.load %arg6[%c1_197, %c0_198, %c0_199, %c3_200] : memref<2x2x1x358xf32, #tpu.memory_space<vmem>>, vector<1x2x1x256xf32>
    %302 = vector.shape_cast %301 : vector<1x2x1x256xf32> to vector<2x1x256xf32>
    %303 = vector.broadcast %295 : f32 to vector<2x1x256xf32>
    %304 = arith.mulf %303, %302 : vector<2x1x256xf32>
    %305 = arith.addf %300, %304 : vector<2x1x256xf32>
    %c10 = arith.constant 10 : index
    %306 = memref.load %arg1[%c10] : memref<98xf32, #tpu.memory_space<smem>>
    %c59 = arith.constant 59 : index
    %307 = memref.load %arg1[%c59] : memref<98xf32, #tpu.memory_space<smem>>
    %c0_201 = arith.constant 0 : index
    %c0_202 = arith.constant 0 : index
    %c0_203 = arith.constant 0 : index
    %c19 = arith.constant 19 : index
    %308 = vector.load %arg6[%c0_201, %c0_202, %c0_203, %c19] : memref<2x2x1x358xf32, #tpu.memory_space<vmem>>, vector<1x2x1x256xf32>
    %309 = vector.shape_cast %308 : vector<1x2x1x256xf32> to vector<2x1x256xf32>
    %310 = vector.broadcast %306 : f32 to vector<2x1x256xf32>
    %311 = arith.mulf %310, %309 : vector<2x1x256xf32>
    %312 = arith.addf %305, %311 : vector<2x1x256xf32>
    %c1_204 = arith.constant 1 : index
    %c0_205 = arith.constant 0 : index
    %c0_206 = arith.constant 0 : index
    %c19_207 = arith.constant 19 : index
    %313 = vector.load %arg6[%c1_204, %c0_205, %c0_206, %c19_207] : memref<2x2x1x358xf32, #tpu.memory_space<vmem>>, vector<1x2x1x256xf32>
    %314 = vector.shape_cast %313 : vector<1x2x1x256xf32> to vector<2x1x256xf32>
    %315 = vector.broadcast %307 : f32 to vector<2x1x256xf32>
    %316 = arith.mulf %315, %314 : vector<2x1x256xf32>
    %317 = arith.addf %312, %316 : vector<2x1x256xf32>
    %c17_208 = arith.constant 17 : index
    %318 = memref.load %arg1[%c17_208] : memref<98xf32, #tpu.memory_space<smem>>
    %c66_209 = arith.constant 66 : index
    %319 = memref.load %arg1[%c66_209] : memref<98xf32, #tpu.memory_space<smem>>
    %c0_210 = arith.constant 0 : index
    %c0_211 = arith.constant 0 : index
    %c0_212 = arith.constant 0 : index
    %c35_213 = arith.constant 35 : index
    %320 = vector.load %arg6[%c0_210, %c0_211, %c0_212, %c35_213] : memref<2x2x1x358xf32, #tpu.memory_space<vmem>>, vector<1x2x1x256xf32>
    %321 = vector.shape_cast %320 : vector<1x2x1x256xf32> to vector<2x1x256xf32>
    %322 = vector.broadcast %318 : f32 to vector<2x1x256xf32>
    %323 = arith.mulf %322, %321 : vector<2x1x256xf32>
    %324 = arith.addf %317, %323 : vector<2x1x256xf32>
    %c1_214 = arith.constant 1 : index
    %c0_215 = arith.constant 0 : index
    %c0_216 = arith.constant 0 : index
    %c35_217 = arith.constant 35 : index
    %325 = vector.load %arg6[%c1_214, %c0_215, %c0_216, %c35_217] : memref<2x2x1x358xf32, #tpu.memory_space<vmem>>, vector<1x2x1x256xf32>
    %326 = vector.shape_cast %325 : vector<1x2x1x256xf32> to vector<2x1x256xf32>
    %327 = vector.broadcast %319 : f32 to vector<2x1x256xf32>
    %328 = arith.mulf %327, %326 : vector<2x1x256xf32>
    %329 = arith.addf %324, %328 : vector<2x1x256xf32>
    %c24 = arith.constant 24 : index
    %330 = memref.load %arg1[%c24] : memref<98xf32, #tpu.memory_space<smem>>
    %c73 = arith.constant 73 : index
    %331 = memref.load %arg1[%c73] : memref<98xf32, #tpu.memory_space<smem>>
    %c0_218 = arith.constant 0 : index
    %c0_219 = arith.constant 0 : index
    %c0_220 = arith.constant 0 : index
    %c51_221 = arith.constant 51 : index
    %332 = vector.load %arg6[%c0_218, %c0_219, %c0_220, %c51_221] : memref<2x2x1x358xf32, #tpu.memory_space<vmem>>, vector<1x2x1x256xf32>
    %333 = vector.shape_cast %332 : vector<1x2x1x256xf32> to vector<2x1x256xf32>
    %334 = vector.broadcast %330 : f32 to vector<2x1x256xf32>
    %335 = arith.mulf %334, %333 : vector<2x1x256xf32>
    %336 = arith.addf %329, %335 : vector<2x1x256xf32>
    %c1_222 = arith.constant 1 : index
    %c0_223 = arith.constant 0 : index
    %c0_224 = arith.constant 0 : index
    %c51_225 = arith.constant 51 : index
    %337 = vector.load %arg6[%c1_222, %c0_223, %c0_224, %c51_225] : memref<2x2x1x358xf32, #tpu.memory_space<vmem>>, vector<1x2x1x256xf32>
    %338 = vector.shape_cast %337 : vector<1x2x1x256xf32> to vector<2x1x256xf32>
    %339 = vector.broadcast %331 : f32 to vector<2x1x256xf32>
    %340 = arith.mulf %339, %338 : vector<2x1x256xf32>
    %341 = arith.addf %336, %340 : vector<2x1x256xf32>
    %c31 = arith.constant 31 : index
    %342 = memref.load %arg1[%c31] : memref<98xf32, #tpu.memory_space<smem>>
    %c80_226 = arith.constant 80 : index
    %343 = memref.load %arg1[%c80_226] : memref<98xf32, #tpu.memory_space<smem>>
    %c0_227 = arith.constant 0 : index
    %c0_228 = arith.constant 0 : index
    %c0_229 = arith.constant 0 : index
    %c67 = arith.constant 67 : index
    %344 = vector.load %arg6[%c0_227, %c0_228, %c0_229, %c67] : memref<2x2x1x358xf32, #tpu.memory_space<vmem>>, vector<1x2x1x256xf32>
    %345 = vector.shape_cast %344 : vector<1x2x1x256xf32> to vector<2x1x256xf32>
    %346 = vector.broadcast %342 : f32 to vector<2x1x256xf32>
    %347 = arith.mulf %346, %345 : vector<2x1x256xf32>
    %348 = arith.addf %341, %347 : vector<2x1x256xf32>
    %c1_230 = arith.constant 1 : index
    %c0_231 = arith.constant 0 : index
    %c0_232 = arith.constant 0 : index
    %c67_233 = arith.constant 67 : index
    %349 = vector.load %arg6[%c1_230, %c0_231, %c0_232, %c67_233] : memref<2x2x1x358xf32, #tpu.memory_space<vmem>>, vector<1x2x1x256xf32>
    %350 = vector.shape_cast %349 : vector<1x2x1x256xf32> to vector<2x1x256xf32>
    %351 = vector.broadcast %343 : f32 to vector<2x1x256xf32>
    %352 = arith.mulf %351, %350 : vector<2x1x256xf32>
    %353 = arith.addf %348, %352 : vector<2x1x256xf32>
    %c38 = arith.constant 38 : index
    %354 = memref.load %arg1[%c38] : memref<98xf32, #tpu.memory_space<smem>>
    %c87 = arith.constant 87 : index
    %355 = memref.load %arg1[%c87] : memref<98xf32, #tpu.memory_space<smem>>
    %c0_234 = arith.constant 0 : index
    %c0_235 = arith.constant 0 : index
    %c0_236 = arith.constant 0 : index
    %c83 = arith.constant 83 : index
    %356 = vector.load %arg6[%c0_234, %c0_235, %c0_236, %c83] : memref<2x2x1x358xf32, #tpu.memory_space<vmem>>, vector<1x2x1x256xf32>
    %357 = vector.shape_cast %356 : vector<1x2x1x256xf32> to vector<2x1x256xf32>
    %358 = vector.broadcast %354 : f32 to vector<2x1x256xf32>
    %359 = arith.mulf %358, %357 : vector<2x1x256xf32>
    %360 = arith.addf %353, %359 : vector<2x1x256xf32>
    %c1_237 = arith.constant 1 : index
    %c0_238 = arith.constant 0 : index
    %c0_239 = arith.constant 0 : index
    %c83_240 = arith.constant 83 : index
    %361 = vector.load %arg6[%c1_237, %c0_238, %c0_239, %c83_240] : memref<2x2x1x358xf32, #tpu.memory_space<vmem>>, vector<1x2x1x256xf32>
    %362 = vector.shape_cast %361 : vector<1x2x1x256xf32> to vector<2x1x256xf32>
    %363 = vector.broadcast %355 : f32 to vector<2x1x256xf32>
    %364 = arith.mulf %363, %362 : vector<2x1x256xf32>
    %365 = arith.addf %360, %364 : vector<2x1x256xf32>
    %c45 = arith.constant 45 : index
    %366 = memref.load %arg1[%c45] : memref<98xf32, #tpu.memory_space<smem>>
    %c94 = arith.constant 94 : index
    %367 = memref.load %arg1[%c94] : memref<98xf32, #tpu.memory_space<smem>>
    %c0_241 = arith.constant 0 : index
    %c0_242 = arith.constant 0 : index
    %c0_243 = arith.constant 0 : index
    %c99 = arith.constant 99 : index
    %368 = vector.load %arg6[%c0_241, %c0_242, %c0_243, %c99] : memref<2x2x1x358xf32, #tpu.memory_space<vmem>>, vector<1x2x1x256xf32>
    %369 = vector.shape_cast %368 : vector<1x2x1x256xf32> to vector<2x1x256xf32>
    %370 = vector.broadcast %366 : f32 to vector<2x1x256xf32>
    %371 = arith.mulf %370, %369 : vector<2x1x256xf32>
    %372 = arith.addf %365, %371 : vector<2x1x256xf32>
    %c1_244 = arith.constant 1 : index
    %c0_245 = arith.constant 0 : index
    %c0_246 = arith.constant 0 : index
    %c99_247 = arith.constant 99 : index
    %373 = vector.load %arg6[%c1_244, %c0_245, %c0_246, %c99_247] : memref<2x2x1x358xf32, #tpu.memory_space<vmem>>, vector<1x2x1x256xf32>
    %374 = vector.shape_cast %373 : vector<1x2x1x256xf32> to vector<2x1x256xf32>
    %375 = vector.broadcast %367 : f32 to vector<2x1x256xf32>
    %376 = arith.mulf %375, %374 : vector<2x1x256xf32>
    %377 = arith.addf %372, %376 : vector<2x1x256xf32>
    %c3_248 = arith.constant 3 : index
    %c0_249 = arith.constant 0 : index
    %c0_250 = arith.constant 0 : index
    %c0_251 = arith.constant 0 : index
    %378 = vector.load %arg3[%c3_248, %c0_249, %c0_250, %c0_251] : memref<7x1x1x256xf32, #tpu.memory_space<vmem>>, vector<1x1x1x256xf32>
    %379 = vector.shape_cast %378 : vector<1x1x1x256xf32> to vector<1x1x256xf32>
    %380 = vector.broadcast %379 : vector<1x1x256xf32> to vector<2x1x256xf32>
    %381 = arith.mulf %380, %377 : vector<2x1x256xf32>
    %382 = arith.addf %292, %381 : vector<2x1x256xf32>
    %cst_252 = arith.constant 0.000000e+00 : f32
    %383 = vector.broadcast %cst_252 : f32 to vector<2x1x256xf32>
    %c4 = arith.constant 4 : index
    %384 = memref.load %arg1[%c4] : memref<98xf32, #tpu.memory_space<smem>>
    %c53 = arith.constant 53 : index
    %385 = memref.load %arg1[%c53] : memref<98xf32, #tpu.memory_space<smem>>
    %c0_253 = arith.constant 0 : index
    %c0_254 = arith.constant 0 : index
    %c0_255 = arith.constant 0 : index
    %c4_256 = arith.constant 4 : index
    %386 = vector.load %arg6[%c0_253, %c0_254, %c0_255, %c4_256] : memref<2x2x1x358xf32, #tpu.memory_space<vmem>>, vector<1x2x1x256xf32>
    %387 = vector.shape_cast %386 : vector<1x2x1x256xf32> to vector<2x1x256xf32>
    %388 = vector.broadcast %384 : f32 to vector<2x1x256xf32>
    %389 = arith.mulf %388, %387 : vector<2x1x256xf32>
    %390 = arith.addf %383, %389 : vector<2x1x256xf32>
    %c1_257 = arith.constant 1 : index
    %c0_258 = arith.constant 0 : index
    %c0_259 = arith.constant 0 : index
    %c4_260 = arith.constant 4 : index
    %391 = vector.load %arg6[%c1_257, %c0_258, %c0_259, %c4_260] : memref<2x2x1x358xf32, #tpu.memory_space<vmem>>, vector<1x2x1x256xf32>
    %392 = vector.shape_cast %391 : vector<1x2x1x256xf32> to vector<2x1x256xf32>
    %393 = vector.broadcast %385 : f32 to vector<2x1x256xf32>
    %394 = arith.mulf %393, %392 : vector<2x1x256xf32>
    %395 = arith.addf %390, %394 : vector<2x1x256xf32>
    %c11 = arith.constant 11 : index
    %396 = memref.load %arg1[%c11] : memref<98xf32, #tpu.memory_space<smem>>
    %c60 = arith.constant 60 : index
    %397 = memref.load %arg1[%c60] : memref<98xf32, #tpu.memory_space<smem>>
    %c0_261 = arith.constant 0 : index
    %c0_262 = arith.constant 0 : index
    %c0_263 = arith.constant 0 : index
    %c20 = arith.constant 20 : index
    %398 = vector.load %arg6[%c0_261, %c0_262, %c0_263, %c20] : memref<2x2x1x358xf32, #tpu.memory_space<vmem>>, vector<1x2x1x256xf32>
    %399 = vector.shape_cast %398 : vector<1x2x1x256xf32> to vector<2x1x256xf32>
    %400 = vector.broadcast %396 : f32 to vector<2x1x256xf32>
    %401 = arith.mulf %400, %399 : vector<2x1x256xf32>
    %402 = arith.addf %395, %401 : vector<2x1x256xf32>
    %c1_264 = arith.constant 1 : index
    %c0_265 = arith.constant 0 : index
    %c0_266 = arith.constant 0 : index
    %c20_267 = arith.constant 20 : index
    %403 = vector.load %arg6[%c1_264, %c0_265, %c0_266, %c20_267] : memref<2x2x1x358xf32, #tpu.memory_space<vmem>>, vector<1x2x1x256xf32>
    %404 = vector.shape_cast %403 : vector<1x2x1x256xf32> to vector<2x1x256xf32>
    %405 = vector.broadcast %397 : f32 to vector<2x1x256xf32>
    %406 = arith.mulf %405, %404 : vector<2x1x256xf32>
    %407 = arith.addf %402, %406 : vector<2x1x256xf32>
    %c18_268 = arith.constant 18 : index
    %408 = memref.load %arg1[%c18_268] : memref<98xf32, #tpu.memory_space<smem>>
    %c67_269 = arith.constant 67 : index
    %409 = memref.load %arg1[%c67_269] : memref<98xf32, #tpu.memory_space<smem>>
    %c0_270 = arith.constant 0 : index
    %c0_271 = arith.constant 0 : index
    %c0_272 = arith.constant 0 : index
    %c36_273 = arith.constant 36 : index
    %410 = vector.load %arg6[%c0_270, %c0_271, %c0_272, %c36_273] : memref<2x2x1x358xf32, #tpu.memory_space<vmem>>, vector<1x2x1x256xf32>
    %411 = vector.shape_cast %410 : vector<1x2x1x256xf32> to vector<2x1x256xf32>
    %412 = vector.broadcast %408 : f32 to vector<2x1x256xf32>
    %413 = arith.mulf %412, %411 : vector<2x1x256xf32>
    %414 = arith.addf %407, %413 : vector<2x1x256xf32>
    %c1_274 = arith.constant 1 : index
    %c0_275 = arith.constant 0 : index
    %c0_276 = arith.constant 0 : index
    %c36_277 = arith.constant 36 : index
    %415 = vector.load %arg6[%c1_274, %c0_275, %c0_276, %c36_277] : memref<2x2x1x358xf32, #tpu.memory_space<vmem>>, vector<1x2x1x256xf32>
    %416 = vector.shape_cast %415 : vector<1x2x1x256xf32> to vector<2x1x256xf32>
    %417 = vector.broadcast %409 : f32 to vector<2x1x256xf32>
    %418 = arith.mulf %417, %416 : vector<2x1x256xf32>
    %419 = arith.addf %414, %418 : vector<2x1x256xf32>
    %c25 = arith.constant 25 : index
    %420 = memref.load %arg1[%c25] : memref<98xf32, #tpu.memory_space<smem>>
    %c74 = arith.constant 74 : index
    %421 = memref.load %arg1[%c74] : memref<98xf32, #tpu.memory_space<smem>>
    %c0_278 = arith.constant 0 : index
    %c0_279 = arith.constant 0 : index
    %c0_280 = arith.constant 0 : index
    %c52_281 = arith.constant 52 : index
    %422 = vector.load %arg6[%c0_278, %c0_279, %c0_280, %c52_281] : memref<2x2x1x358xf32, #tpu.memory_space<vmem>>, vector<1x2x1x256xf32>
    %423 = vector.shape_cast %422 : vector<1x2x1x256xf32> to vector<2x1x256xf32>
    %424 = vector.broadcast %420 : f32 to vector<2x1x256xf32>
    %425 = arith.mulf %424, %423 : vector<2x1x256xf32>
    %426 = arith.addf %419, %425 : vector<2x1x256xf32>
    %c1_282 = arith.constant 1 : index
    %c0_283 = arith.constant 0 : index
    %c0_284 = arith.constant 0 : index
    %c52_285 = arith.constant 52 : index
    %427 = vector.load %arg6[%c1_282, %c0_283, %c0_284, %c52_285] : memref<2x2x1x358xf32, #tpu.memory_space<vmem>>, vector<1x2x1x256xf32>
    %428 = vector.shape_cast %427 : vector<1x2x1x256xf32> to vector<2x1x256xf32>
    %429 = vector.broadcast %421 : f32 to vector<2x1x256xf32>
    %430 = arith.mulf %429, %428 : vector<2x1x256xf32>
    %431 = arith.addf %426, %430 : vector<2x1x256xf32>
    %c32_286 = arith.constant 32 : index
    %432 = memref.load %arg1[%c32_286] : memref<98xf32, #tpu.memory_space<smem>>
    %c81_287 = arith.constant 81 : index
    %433 = memref.load %arg1[%c81_287] : memref<98xf32, #tpu.memory_space<smem>>
    %c0_288 = arith.constant 0 : index
    %c0_289 = arith.constant 0 : index
    %c0_290 = arith.constant 0 : index
    %c68 = arith.constant 68 : index
    %434 = vector.load %arg6[%c0_288, %c0_289, %c0_290, %c68] : memref<2x2x1x358xf32, #tpu.memory_space<vmem>>, vector<1x2x1x256xf32>
    %435 = vector.shape_cast %434 : vector<1x2x1x256xf32> to vector<2x1x256xf32>
    %436 = vector.broadcast %432 : f32 to vector<2x1x256xf32>
    %437 = arith.mulf %436, %435 : vector<2x1x256xf32>
    %438 = arith.addf %431, %437 : vector<2x1x256xf32>
    %c1_291 = arith.constant 1 : index
    %c0_292 = arith.constant 0 : index
    %c0_293 = arith.constant 0 : index
    %c68_294 = arith.constant 68 : index
    %439 = vector.load %arg6[%c1_291, %c0_292, %c0_293, %c68_294] : memref<2x2x1x358xf32, #tpu.memory_space<vmem>>, vector<1x2x1x256xf32>
    %440 = vector.shape_cast %439 : vector<1x2x1x256xf32> to vector<2x1x256xf32>
    %441 = vector.broadcast %433 : f32 to vector<2x1x256xf32>
    %442 = arith.mulf %441, %440 : vector<2x1x256xf32>
    %443 = arith.addf %438, %442 : vector<2x1x256xf32>
    %c39 = arith.constant 39 : index
    %444 = memref.load %arg1[%c39] : memref<98xf32, #tpu.memory_space<smem>>
    %c88 = arith.constant 88 : index
    %445 = memref.load %arg1[%c88] : memref<98xf32, #tpu.memory_space<smem>>
    %c0_295 = arith.constant 0 : index
    %c0_296 = arith.constant 0 : index
    %c0_297 = arith.constant 0 : index
    %c84_298 = arith.constant 84 : index
    %446 = vector.load %arg6[%c0_295, %c0_296, %c0_297, %c84_298] : memref<2x2x1x358xf32, #tpu.memory_space<vmem>>, vector<1x2x1x256xf32>
    %447 = vector.shape_cast %446 : vector<1x2x1x256xf32> to vector<2x1x256xf32>
    %448 = vector.broadcast %444 : f32 to vector<2x1x256xf32>
    %449 = arith.mulf %448, %447 : vector<2x1x256xf32>
    %450 = arith.addf %443, %449 : vector<2x1x256xf32>
    %c1_299 = arith.constant 1 : index
    %c0_300 = arith.constant 0 : index
    %c0_301 = arith.constant 0 : index
    %c84_302 = arith.constant 84 : index
    %451 = vector.load %arg6[%c1_299, %c0_300, %c0_301, %c84_302] : memref<2x2x1x358xf32, #tpu.memory_space<vmem>>, vector<1x2x1x256xf32>
    %452 = vector.shape_cast %451 : vector<1x2x1x256xf32> to vector<2x1x256xf32>
    %453 = vector.broadcast %445 : f32 to vector<2x1x256xf32>
    %454 = arith.mulf %453, %452 : vector<2x1x256xf32>
    %455 = arith.addf %450, %454 : vector<2x1x256xf32>
    %c46 = arith.constant 46 : index
    %456 = memref.load %arg1[%c46] : memref<98xf32, #tpu.memory_space<smem>>
    %c95 = arith.constant 95 : index
    %457 = memref.load %arg1[%c95] : memref<98xf32, #tpu.memory_space<smem>>
    %c0_303 = arith.constant 0 : index
    %c0_304 = arith.constant 0 : index
    %c0_305 = arith.constant 0 : index
    %c100 = arith.constant 100 : index
    %458 = vector.load %arg6[%c0_303, %c0_304, %c0_305, %c100] : memref<2x2x1x358xf32, #tpu.memory_space<vmem>>, vector<1x2x1x256xf32>
    %459 = vector.shape_cast %458 : vector<1x2x1x256xf32> to vector<2x1x256xf32>
    %460 = vector.broadcast %456 : f32 to vector<2x1x256xf32>
    %461 = arith.mulf %460, %459 : vector<2x1x256xf32>
    %462 = arith.addf %455, %461 : vector<2x1x256xf32>
    %c1_306 = arith.constant 1 : index
    %c0_307 = arith.constant 0 : index
    %c0_308 = arith.constant 0 : index
    %c100_309 = arith.constant 100 : index
    %463 = vector.load %arg6[%c1_306, %c0_307, %c0_308, %c100_309] : memref<2x2x1x358xf32, #tpu.memory_space<vmem>>, vector<1x2x1x256xf32>
    %464 = vector.shape_cast %463 : vector<1x2x1x256xf32> to vector<2x1x256xf32>
    %465 = vector.broadcast %457 : f32 to vector<2x1x256xf32>
    %466 = arith.mulf %465, %464 : vector<2x1x256xf32>
    %467 = arith.addf %462, %466 : vector<2x1x256xf32>
    %c4_310 = arith.constant 4 : index
    %c0_311 = arith.constant 0 : index
    %c0_312 = arith.constant 0 : index
    %c0_313 = arith.constant 0 : index
    %468 = vector.load %arg3[%c4_310, %c0_311, %c0_312, %c0_313] : memref<7x1x1x256xf32, #tpu.memory_space<vmem>>, vector<1x1x1x256xf32>
    %469 = vector.shape_cast %468 : vector<1x1x1x256xf32> to vector<1x1x256xf32>
    %470 = vector.broadcast %469 : vector<1x1x256xf32> to vector<2x1x256xf32>
    %471 = arith.mulf %470, %467 : vector<2x1x256xf32>
    %472 = arith.addf %382, %471 : vector<2x1x256xf32>
    %cst_314 = arith.constant 0.000000e+00 : f32
    %473 = vector.broadcast %cst_314 : f32 to vector<2x1x256xf32>
    %c5 = arith.constant 5 : index
    %474 = memref.load %arg1[%c5] : memref<98xf32, #tpu.memory_space<smem>>
    %c54 = arith.constant 54 : index
    %475 = memref.load %arg1[%c54] : memref<98xf32, #tpu.memory_space<smem>>
    %c0_315 = arith.constant 0 : index
    %c0_316 = arith.constant 0 : index
    %c0_317 = arith.constant 0 : index
    %c5_318 = arith.constant 5 : index
    %476 = vector.load %arg6[%c0_315, %c0_316, %c0_317, %c5_318] : memref<2x2x1x358xf32, #tpu.memory_space<vmem>>, vector<1x2x1x256xf32>
    %477 = vector.shape_cast %476 : vector<1x2x1x256xf32> to vector<2x1x256xf32>
    %478 = vector.broadcast %474 : f32 to vector<2x1x256xf32>
    %479 = arith.mulf %478, %477 : vector<2x1x256xf32>
    %480 = arith.addf %473, %479 : vector<2x1x256xf32>
    %c1_319 = arith.constant 1 : index
    %c0_320 = arith.constant 0 : index
    %c0_321 = arith.constant 0 : index
    %c5_322 = arith.constant 5 : index
    %481 = vector.load %arg6[%c1_319, %c0_320, %c0_321, %c5_322] : memref<2x2x1x358xf32, #tpu.memory_space<vmem>>, vector<1x2x1x256xf32>
    %482 = vector.shape_cast %481 : vector<1x2x1x256xf32> to vector<2x1x256xf32>
    %483 = vector.broadcast %475 : f32 to vector<2x1x256xf32>
    %484 = arith.mulf %483, %482 : vector<2x1x256xf32>
    %485 = arith.addf %480, %484 : vector<2x1x256xf32>
    %c12 = arith.constant 12 : index
    %486 = memref.load %arg1[%c12] : memref<98xf32, #tpu.memory_space<smem>>
    %c61 = arith.constant 61 : index
    %487 = memref.load %arg1[%c61] : memref<98xf32, #tpu.memory_space<smem>>
    %c0_323 = arith.constant 0 : index
    %c0_324 = arith.constant 0 : index
    %c0_325 = arith.constant 0 : index
    %c21_326 = arith.constant 21 : index
    %488 = vector.load %arg6[%c0_323, %c0_324, %c0_325, %c21_326] : memref<2x2x1x358xf32, #tpu.memory_space<vmem>>, vector<1x2x1x256xf32>
    %489 = vector.shape_cast %488 : vector<1x2x1x256xf32> to vector<2x1x256xf32>
    %490 = vector.broadcast %486 : f32 to vector<2x1x256xf32>
    %491 = arith.mulf %490, %489 : vector<2x1x256xf32>
    %492 = arith.addf %485, %491 : vector<2x1x256xf32>
    %c1_327 = arith.constant 1 : index
    %c0_328 = arith.constant 0 : index
    %c0_329 = arith.constant 0 : index
    %c21_330 = arith.constant 21 : index
    %493 = vector.load %arg6[%c1_327, %c0_328, %c0_329, %c21_330] : memref<2x2x1x358xf32, #tpu.memory_space<vmem>>, vector<1x2x1x256xf32>
    %494 = vector.shape_cast %493 : vector<1x2x1x256xf32> to vector<2x1x256xf32>
    %495 = vector.broadcast %487 : f32 to vector<2x1x256xf32>
    %496 = arith.mulf %495, %494 : vector<2x1x256xf32>
    %497 = arith.addf %492, %496 : vector<2x1x256xf32>
    %c19_331 = arith.constant 19 : index
    %498 = memref.load %arg1[%c19_331] : memref<98xf32, #tpu.memory_space<smem>>
    %c68_332 = arith.constant 68 : index
    %499 = memref.load %arg1[%c68_332] : memref<98xf32, #tpu.memory_space<smem>>
    %c0_333 = arith.constant 0 : index
    %c0_334 = arith.constant 0 : index
    %c0_335 = arith.constant 0 : index
    %c37_336 = arith.constant 37 : index
    %500 = vector.load %arg6[%c0_333, %c0_334, %c0_335, %c37_336] : memref<2x2x1x358xf32, #tpu.memory_space<vmem>>, vector<1x2x1x256xf32>
    %501 = vector.shape_cast %500 : vector<1x2x1x256xf32> to vector<2x1x256xf32>
    %502 = vector.broadcast %498 : f32 to vector<2x1x256xf32>
    %503 = arith.mulf %502, %501 : vector<2x1x256xf32>
    %504 = arith.addf %497, %503 : vector<2x1x256xf32>
    %c1_337 = arith.constant 1 : index
    %c0_338 = arith.constant 0 : index
    %c0_339 = arith.constant 0 : index
    %c37_340 = arith.constant 37 : index
    %505 = vector.load %arg6[%c1_337, %c0_338, %c0_339, %c37_340] : memref<2x2x1x358xf32, #tpu.memory_space<vmem>>, vector<1x2x1x256xf32>
    %506 = vector.shape_cast %505 : vector<1x2x1x256xf32> to vector<2x1x256xf32>
    %507 = vector.broadcast %499 : f32 to vector<2x1x256xf32>
    %508 = arith.mulf %507, %506 : vector<2x1x256xf32>
    %509 = arith.addf %504, %508 : vector<2x1x256xf32>
    %c26 = arith.constant 26 : index
    %510 = memref.load %arg1[%c26] : memref<98xf32, #tpu.memory_space<smem>>
    %c75 = arith.constant 75 : index
    %511 = memref.load %arg1[%c75] : memref<98xf32, #tpu.memory_space<smem>>
    %c0_341 = arith.constant 0 : index
    %c0_342 = arith.constant 0 : index
    %c0_343 = arith.constant 0 : index
    %c53_344 = arith.constant 53 : index
    %512 = vector.load %arg6[%c0_341, %c0_342, %c0_343, %c53_344] : memref<2x2x1x358xf32, #tpu.memory_space<vmem>>, vector<1x2x1x256xf32>
    %513 = vector.shape_cast %512 : vector<1x2x1x256xf32> to vector<2x1x256xf32>
    %514 = vector.broadcast %510 : f32 to vector<2x1x256xf32>
    %515 = arith.mulf %514, %513 : vector<2x1x256xf32>
    %516 = arith.addf %509, %515 : vector<2x1x256xf32>
    %c1_345 = arith.constant 1 : index
    %c0_346 = arith.constant 0 : index
    %c0_347 = arith.constant 0 : index
    %c53_348 = arith.constant 53 : index
    %517 = vector.load %arg6[%c1_345, %c0_346, %c0_347, %c53_348] : memref<2x2x1x358xf32, #tpu.memory_space<vmem>>, vector<1x2x1x256xf32>
    %518 = vector.shape_cast %517 : vector<1x2x1x256xf32> to vector<2x1x256xf32>
    %519 = vector.broadcast %511 : f32 to vector<2x1x256xf32>
    %520 = arith.mulf %519, %518 : vector<2x1x256xf32>
    %521 = arith.addf %516, %520 : vector<2x1x256xf32>
    %c33_349 = arith.constant 33 : index
    %522 = memref.load %arg1[%c33_349] : memref<98xf32, #tpu.memory_space<smem>>
    %c82_350 = arith.constant 82 : index
    %523 = memref.load %arg1[%c82_350] : memref<98xf32, #tpu.memory_space<smem>>
    %c0_351 = arith.constant 0 : index
    %c0_352 = arith.constant 0 : index
    %c0_353 = arith.constant 0 : index
    %c69 = arith.constant 69 : index
    %524 = vector.load %arg6[%c0_351, %c0_352, %c0_353, %c69] : memref<2x2x1x358xf32, #tpu.memory_space<vmem>>, vector<1x2x1x256xf32>
    %525 = vector.shape_cast %524 : vector<1x2x1x256xf32> to vector<2x1x256xf32>
    %526 = vector.broadcast %522 : f32 to vector<2x1x256xf32>
    %527 = arith.mulf %526, %525 : vector<2x1x256xf32>
    %528 = arith.addf %521, %527 : vector<2x1x256xf32>
    %c1_354 = arith.constant 1 : index
    %c0_355 = arith.constant 0 : index
    %c0_356 = arith.constant 0 : index
    %c69_357 = arith.constant 69 : index
    %529 = vector.load %arg6[%c1_354, %c0_355, %c0_356, %c69_357] : memref<2x2x1x358xf32, #tpu.memory_space<vmem>>, vector<1x2x1x256xf32>
    %530 = vector.shape_cast %529 : vector<1x2x1x256xf32> to vector<2x1x256xf32>
    %531 = vector.broadcast %523 : f32 to vector<2x1x256xf32>
    %532 = arith.mulf %531, %530 : vector<2x1x256xf32>
    %533 = arith.addf %528, %532 : vector<2x1x256xf32>
    %c40 = arith.constant 40 : index
    %534 = memref.load %arg1[%c40] : memref<98xf32, #tpu.memory_space<smem>>
    %c89 = arith.constant 89 : index
    %535 = memref.load %arg1[%c89] : memref<98xf32, #tpu.memory_space<smem>>
    %c0_358 = arith.constant 0 : index
    %c0_359 = arith.constant 0 : index
    %c0_360 = arith.constant 0 : index
    %c85_361 = arith.constant 85 : index
    %536 = vector.load %arg6[%c0_358, %c0_359, %c0_360, %c85_361] : memref<2x2x1x358xf32, #tpu.memory_space<vmem>>, vector<1x2x1x256xf32>
    %537 = vector.shape_cast %536 : vector<1x2x1x256xf32> to vector<2x1x256xf32>
    %538 = vector.broadcast %534 : f32 to vector<2x1x256xf32>
    %539 = arith.mulf %538, %537 : vector<2x1x256xf32>
    %540 = arith.addf %533, %539 : vector<2x1x256xf32>
    %c1_362 = arith.constant 1 : index
    %c0_363 = arith.constant 0 : index
    %c0_364 = arith.constant 0 : index
    %c85_365 = arith.constant 85 : index
    %541 = vector.load %arg6[%c1_362, %c0_363, %c0_364, %c85_365] : memref<2x2x1x358xf32, #tpu.memory_space<vmem>>, vector<1x2x1x256xf32>
    %542 = vector.shape_cast %541 : vector<1x2x1x256xf32> to vector<2x1x256xf32>
    %543 = vector.broadcast %535 : f32 to vector<2x1x256xf32>
    %544 = arith.mulf %543, %542 : vector<2x1x256xf32>
    %545 = arith.addf %540, %544 : vector<2x1x256xf32>
    %c47 = arith.constant 47 : index
    %546 = memref.load %arg1[%c47] : memref<98xf32, #tpu.memory_space<smem>>
    %c96_366 = arith.constant 96 : index
    %547 = memref.load %arg1[%c96_366] : memref<98xf32, #tpu.memory_space<smem>>
    %c0_367 = arith.constant 0 : index
    %c0_368 = arith.constant 0 : index
    %c0_369 = arith.constant 0 : index
    %c101 = arith.constant 101 : index
    %548 = vector.load %arg6[%c0_367, %c0_368, %c0_369, %c101] : memref<2x2x1x358xf32, #tpu.memory_space<vmem>>, vector<1x2x1x256xf32>
    %549 = vector.shape_cast %548 : vector<1x2x1x256xf32> to vector<2x1x256xf32>
    %550 = vector.broadcast %546 : f32 to vector<2x1x256xf32>
    %551 = arith.mulf %550, %549 : vector<2x1x256xf32>
    %552 = arith.addf %545, %551 : vector<2x1x256xf32>
    %c1_370 = arith.constant 1 : index
    %c0_371 = arith.constant 0 : index
    %c0_372 = arith.constant 0 : index
    %c101_373 = arith.constant 101 : index
    %553 = vector.load %arg6[%c1_370, %c0_371, %c0_372, %c101_373] : memref<2x2x1x358xf32, #tpu.memory_space<vmem>>, vector<1x2x1x256xf32>
    %554 = vector.shape_cast %553 : vector<1x2x1x256xf32> to vector<2x1x256xf32>
    %555 = vector.broadcast %547 : f32 to vector<2x1x256xf32>
    %556 = arith.mulf %555, %554 : vector<2x1x256xf32>
    %557 = arith.addf %552, %556 : vector<2x1x256xf32>
    %c5_374 = arith.constant 5 : index
    %c0_375 = arith.constant 0 : index
    %c0_376 = arith.constant 0 : index
    %c0_377 = arith.constant 0 : index
    %558 = vector.load %arg3[%c5_374, %c0_375, %c0_376, %c0_377] : memref<7x1x1x256xf32, #tpu.memory_space<vmem>>, vector<1x1x1x256xf32>
    %559 = vector.shape_cast %558 : vector<1x1x1x256xf32> to vector<1x1x256xf32>
    %560 = vector.broadcast %559 : vector<1x1x256xf32> to vector<2x1x256xf32>
    %561 = arith.mulf %560, %557 : vector<2x1x256xf32>
    %562 = arith.addf %472, %561 : vector<2x1x256xf32>
    %cst_378 = arith.constant 0.000000e+00 : f32
    %563 = vector.broadcast %cst_378 : f32 to vector<2x1x256xf32>
    %c6 = arith.constant 6 : index
    %564 = memref.load %arg1[%c6] : memref<98xf32, #tpu.memory_space<smem>>
    %c55 = arith.constant 55 : index
    %565 = memref.load %arg1[%c55] : memref<98xf32, #tpu.memory_space<smem>>
    %c0_379 = arith.constant 0 : index
    %c0_380 = arith.constant 0 : index
    %c0_381 = arith.constant 0 : index
    %c6_382 = arith.constant 6 : index
    %566 = vector.load %arg6[%c0_379, %c0_380, %c0_381, %c6_382] : memref<2x2x1x358xf32, #tpu.memory_space<vmem>>, vector<1x2x1x256xf32>
    %567 = vector.shape_cast %566 : vector<1x2x1x256xf32> to vector<2x1x256xf32>
    %568 = vector.broadcast %564 : f32 to vector<2x1x256xf32>
    %569 = arith.mulf %568, %567 : vector<2x1x256xf32>
    %570 = arith.addf %563, %569 : vector<2x1x256xf32>
    %c1_383 = arith.constant 1 : index
    %c0_384 = arith.constant 0 : index
    %c0_385 = arith.constant 0 : index
    %c6_386 = arith.constant 6 : index
    %571 = vector.load %arg6[%c1_383, %c0_384, %c0_385, %c6_386] : memref<2x2x1x358xf32, #tpu.memory_space<vmem>>, vector<1x2x1x256xf32>
    %572 = vector.shape_cast %571 : vector<1x2x1x256xf32> to vector<2x1x256xf32>
    %573 = vector.broadcast %565 : f32 to vector<2x1x256xf32>
    %574 = arith.mulf %573, %572 : vector<2x1x256xf32>
    %575 = arith.addf %570, %574 : vector<2x1x256xf32>
    %c13 = arith.constant 13 : index
    %576 = memref.load %arg1[%c13] : memref<98xf32, #tpu.memory_space<smem>>
    %c62 = arith.constant 62 : index
    %577 = memref.load %arg1[%c62] : memref<98xf32, #tpu.memory_space<smem>>
    %c0_387 = arith.constant 0 : index
    %c0_388 = arith.constant 0 : index
    %c0_389 = arith.constant 0 : index
    %c22_390 = arith.constant 22 : index
    %578 = vector.load %arg6[%c0_387, %c0_388, %c0_389, %c22_390] : memref<2x2x1x358xf32, #tpu.memory_space<vmem>>, vector<1x2x1x256xf32>
    %579 = vector.shape_cast %578 : vector<1x2x1x256xf32> to vector<2x1x256xf32>
    %580 = vector.broadcast %576 : f32 to vector<2x1x256xf32>
    %581 = arith.mulf %580, %579 : vector<2x1x256xf32>
    %582 = arith.addf %575, %581 : vector<2x1x256xf32>
    %c1_391 = arith.constant 1 : index
    %c0_392 = arith.constant 0 : index
    %c0_393 = arith.constant 0 : index
    %c22_394 = arith.constant 22 : index
    %583 = vector.load %arg6[%c1_391, %c0_392, %c0_393, %c22_394] : memref<2x2x1x358xf32, #tpu.memory_space<vmem>>, vector<1x2x1x256xf32>
    %584 = vector.shape_cast %583 : vector<1x2x1x256xf32> to vector<2x1x256xf32>
    %585 = vector.broadcast %577 : f32 to vector<2x1x256xf32>
    %586 = arith.mulf %585, %584 : vector<2x1x256xf32>
    %587 = arith.addf %582, %586 : vector<2x1x256xf32>
    %c20_395 = arith.constant 20 : index
    %588 = memref.load %arg1[%c20_395] : memref<98xf32, #tpu.memory_space<smem>>
    %c69_396 = arith.constant 69 : index
    %589 = memref.load %arg1[%c69_396] : memref<98xf32, #tpu.memory_space<smem>>
    %c0_397 = arith.constant 0 : index
    %c0_398 = arith.constant 0 : index
    %c0_399 = arith.constant 0 : index
    %c38_400 = arith.constant 38 : index
    %590 = vector.load %arg6[%c0_397, %c0_398, %c0_399, %c38_400] : memref<2x2x1x358xf32, #tpu.memory_space<vmem>>, vector<1x2x1x256xf32>
    %591 = vector.shape_cast %590 : vector<1x2x1x256xf32> to vector<2x1x256xf32>
    %592 = vector.broadcast %588 : f32 to vector<2x1x256xf32>
    %593 = arith.mulf %592, %591 : vector<2x1x256xf32>
    %594 = arith.addf %587, %593 : vector<2x1x256xf32>
    %c1_401 = arith.constant 1 : index
    %c0_402 = arith.constant 0 : index
    %c0_403 = arith.constant 0 : index
    %c38_404 = arith.constant 38 : index
    %595 = vector.load %arg6[%c1_401, %c0_402, %c0_403, %c38_404] : memref<2x2x1x358xf32, #tpu.memory_space<vmem>>, vector<1x2x1x256xf32>
    %596 = vector.shape_cast %595 : vector<1x2x1x256xf32> to vector<2x1x256xf32>
    %597 = vector.broadcast %589 : f32 to vector<2x1x256xf32>
    %598 = arith.mulf %597, %596 : vector<2x1x256xf32>
    %599 = arith.addf %594, %598 : vector<2x1x256xf32>
    %c27 = arith.constant 27 : index
    %600 = memref.load %arg1[%c27] : memref<98xf32, #tpu.memory_space<smem>>
    %c76 = arith.constant 76 : index
    %601 = memref.load %arg1[%c76] : memref<98xf32, #tpu.memory_space<smem>>
    %c0_405 = arith.constant 0 : index
    %c0_406 = arith.constant 0 : index
    %c0_407 = arith.constant 0 : index
    %c54_408 = arith.constant 54 : index
    %602 = vector.load %arg6[%c0_405, %c0_406, %c0_407, %c54_408] : memref<2x2x1x358xf32, #tpu.memory_space<vmem>>, vector<1x2x1x256xf32>
    %603 = vector.shape_cast %602 : vector<1x2x1x256xf32> to vector<2x1x256xf32>
    %604 = vector.broadcast %600 : f32 to vector<2x1x256xf32>
    %605 = arith.mulf %604, %603 : vector<2x1x256xf32>
    %606 = arith.addf %599, %605 : vector<2x1x256xf32>
    %c1_409 = arith.constant 1 : index
    %c0_410 = arith.constant 0 : index
    %c0_411 = arith.constant 0 : index
    %c54_412 = arith.constant 54 : index
    %607 = vector.load %arg6[%c1_409, %c0_410, %c0_411, %c54_412] : memref<2x2x1x358xf32, #tpu.memory_space<vmem>>, vector<1x2x1x256xf32>
    %608 = vector.shape_cast %607 : vector<1x2x1x256xf32> to vector<2x1x256xf32>
    %609 = vector.broadcast %601 : f32 to vector<2x1x256xf32>
    %610 = arith.mulf %609, %608 : vector<2x1x256xf32>
    %611 = arith.addf %606, %610 : vector<2x1x256xf32>
    %c34_413 = arith.constant 34 : index
    %612 = memref.load %arg1[%c34_413] : memref<98xf32, #tpu.memory_space<smem>>
    %c83_414 = arith.constant 83 : index
    %613 = memref.load %arg1[%c83_414] : memref<98xf32, #tpu.memory_space<smem>>
    %c0_415 = arith.constant 0 : index
    %c0_416 = arith.constant 0 : index
    %c0_417 = arith.constant 0 : index
    %c70_418 = arith.constant 70 : index
    %614 = vector.load %arg6[%c0_415, %c0_416, %c0_417, %c70_418] : memref<2x2x1x358xf32, #tpu.memory_space<vmem>>, vector<1x2x1x256xf32>
    %615 = vector.shape_cast %614 : vector<1x2x1x256xf32> to vector<2x1x256xf32>
    %616 = vector.broadcast %612 : f32 to vector<2x1x256xf32>
    %617 = arith.mulf %616, %615 : vector<2x1x256xf32>
    %618 = arith.addf %611, %617 : vector<2x1x256xf32>
    %c1_419 = arith.constant 1 : index
    %c0_420 = arith.constant 0 : index
    %c0_421 = arith.constant 0 : index
    %c70_422 = arith.constant 70 : index
    %619 = vector.load %arg6[%c1_419, %c0_420, %c0_421, %c70_422] : memref<2x2x1x358xf32, #tpu.memory_space<vmem>>, vector<1x2x1x256xf32>
    %620 = vector.shape_cast %619 : vector<1x2x1x256xf32> to vector<2x1x256xf32>
    %621 = vector.broadcast %613 : f32 to vector<2x1x256xf32>
    %622 = arith.mulf %621, %620 : vector<2x1x256xf32>
    %623 = arith.addf %618, %622 : vector<2x1x256xf32>
    %c41 = arith.constant 41 : index
    %624 = memref.load %arg1[%c41] : memref<98xf32, #tpu.memory_space<smem>>
    %c90 = arith.constant 90 : index
    %625 = memref.load %arg1[%c90] : memref<98xf32, #tpu.memory_space<smem>>
    %c0_423 = arith.constant 0 : index
    %c0_424 = arith.constant 0 : index
    %c0_425 = arith.constant 0 : index
    %c86_426 = arith.constant 86 : index
    %626 = vector.load %arg6[%c0_423, %c0_424, %c0_425, %c86_426] : memref<2x2x1x358xf32, #tpu.memory_space<vmem>>, vector<1x2x1x256xf32>
    %627 = vector.shape_cast %626 : vector<1x2x1x256xf32> to vector<2x1x256xf32>
    %628 = vector.broadcast %624 : f32 to vector<2x1x256xf32>
    %629 = arith.mulf %628, %627 : vector<2x1x256xf32>
    %630 = arith.addf %623, %629 : vector<2x1x256xf32>
    %c1_427 = arith.constant 1 : index
    %c0_428 = arith.constant 0 : index
    %c0_429 = arith.constant 0 : index
    %c86_430 = arith.constant 86 : index
    %631 = vector.load %arg6[%c1_427, %c0_428, %c0_429, %c86_430] : memref<2x2x1x358xf32, #tpu.memory_space<vmem>>, vector<1x2x1x256xf32>
    %632 = vector.shape_cast %631 : vector<1x2x1x256xf32> to vector<2x1x256xf32>
    %633 = vector.broadcast %625 : f32 to vector<2x1x256xf32>
    %634 = arith.mulf %633, %632 : vector<2x1x256xf32>
    %635 = arith.addf %630, %634 : vector<2x1x256xf32>
    %c48_431 = arith.constant 48 : index
    %636 = memref.load %arg1[%c48_431] : memref<98xf32, #tpu.memory_space<smem>>
    %c97_432 = arith.constant 97 : index
    %637 = memref.load %arg1[%c97_432] : memref<98xf32, #tpu.memory_space<smem>>
    %c0_433 = arith.constant 0 : index
    %c0_434 = arith.constant 0 : index
    %c0_435 = arith.constant 0 : index
    %c102 = arith.constant 102 : index
    %638 = vector.load %arg6[%c0_433, %c0_434, %c0_435, %c102] : memref<2x2x1x358xf32, #tpu.memory_space<vmem>>, vector<1x2x1x256xf32>
    %639 = vector.shape_cast %638 : vector<1x2x1x256xf32> to vector<2x1x256xf32>
    %640 = vector.broadcast %636 : f32 to vector<2x1x256xf32>
    %641 = arith.mulf %640, %639 : vector<2x1x256xf32>
    %642 = arith.addf %635, %641 : vector<2x1x256xf32>
    %c1_436 = arith.constant 1 : index
    %c0_437 = arith.constant 0 : index
    %c0_438 = arith.constant 0 : index
    %c102_439 = arith.constant 102 : index
    %643 = vector.load %arg6[%c1_436, %c0_437, %c0_438, %c102_439] : memref<2x2x1x358xf32, #tpu.memory_space<vmem>>, vector<1x2x1x256xf32>
    %644 = vector.shape_cast %643 : vector<1x2x1x256xf32> to vector<2x1x256xf32>
    %645 = vector.broadcast %637 : f32 to vector<2x1x256xf32>
    %646 = arith.mulf %645, %644 : vector<2x1x256xf32>
    %647 = arith.addf %642, %646 : vector<2x1x256xf32>
    %c6_440 = arith.constant 6 : index
    %c0_441 = arith.constant 0 : index
    %c0_442 = arith.constant 0 : index
    %c0_443 = arith.constant 0 : index
    %648 = vector.load %arg3[%c6_440, %c0_441, %c0_442, %c0_443] : memref<7x1x1x256xf32, #tpu.memory_space<vmem>>, vector<1x1x1x256xf32>
    %649 = vector.shape_cast %648 : vector<1x1x1x256xf32> to vector<1x1x256xf32>
    %650 = vector.broadcast %649 : vector<1x1x256xf32> to vector<2x1x256xf32>
    %651 = arith.mulf %650, %647 : vector<2x1x256xf32>
    %652 = arith.addf %562, %651 : vector<2x1x256xf32>
    %653 = arith.negf %652 : vector<2x1x256xf32>
    %654 = math.exp %653 : vector<2x1x256xf32>
    %cst_444 = arith.constant 1.000000e+00 : f32
    %655 = vector.broadcast %cst_444 : f32 to vector<2x1x256xf32>
    %656 = arith.addf %655, %654 : vector<2x1x256xf32>
    %657 = arith.divf %655, %656 : vector<2x1x256xf32>
    %c0_445 = arith.constant 0 : index
    %c0_446 = arith.constant 0 : index
    %c0_447 = arith.constant 0 : index
    %658 = vector.load %arg4[%c0_445, %c0_446, %c0_447] : memref<2x4x256xf32, #tpu.memory_space<vmem>>, vector<2x4x256xf32>
    %659 = vector.broadcast %657 : vector<2x1x256xf32> to vector<2x4x256xf32>
    %660 = arith.mulf %658, %659 : vector<2x4x256xf32>
    %c0_448 = arith.constant 0 : index
    %c0_449 = arith.constant 0 : index
    %c0_450 = arith.constant 0 : index
    %661 = vector.load %arg5[%c0_448, %c0_449, %c0_450] : memref<2x4x256xf32, #tpu.memory_space<vmem>>, vector<2x4x256xf32>
    tpu.vector_store %arg5[%c0_448, %c0_449, %c0_450], %660 {strides = array<i32>} : memref<2x4x256xf32, #tpu.memory_space<vmem>>, vector<2x4x256xf32>,
    return
  }
  func.func @transform_0(%arg0: i32, %arg1: memref<98xf32, #tpu.memory_space<smem>>, %arg2: memref<1xf32, #tpu.memory_space<smem>>) -> (i32, i32, i32, i32) {
    %c0_i32 = arith.constant 0 : i32
    %c0_i32_0 = arith.constant 0 : i32
    %c0_i32_1 = arith.constant 0 : i32
    %c0_i32_2 = arith.constant 0 : i32
    %c0_i32_3 = arith.constant 0 : i32
    return %c0_i32, %c0_i32_0, %c0_i32_1, %c0_i32_2 : i32, i32, i32, i32
  }
  func.func @transform_1(%arg0: i32, %arg1: memref<98xf32, #tpu.memory_space<smem>>, %arg2: memref<1xf32, #tpu.memory_space<smem>>) -> (i32, i32, i32) {
    %c0_i32 = arith.constant 0 : i32
    %c0_i32_0 = arith.constant 0 : i32
    %c0_i32_1 = arith.constant 0 : i32
    return %arg0, %c0_i32, %c0_i32_0 : i32, i32, i32
  }
  func.func @transform_2(%arg0: i32, %arg1: memref<98xf32, #tpu.memory_space<smem>>, %arg2: memref<1xf32, #tpu.memory_space<smem>>) -> (i32, i32, i32) {
    %c0_i32 = arith.constant 0 : i32
    %c0_i32_0 = arith.constant 0 : i32
    %c0_i32_1 = arith.constant 0 : i32
    return %arg0, %c0_i32, %c0_i32_0 : i32, i32, i32
  }
}

</mosaic_0001>

<bundles_post_ra>
// kernel: tpu_custom_call.1
= control target key start
LH: loop header
LB: loop body
LE: loop exit
PB: predicated region body
PF: predicated region fallthrough
CT: control target
= control target key end

     0   :  { %s2234_s18 = smov [#allocation4]   ;;  %s3558_s0 = inlined_call_operand.vmem [shape: f32[98], index: 0, kind: input, shape index: {}]   ;;  %s3559_s1 = inlined_call_operand.<no memory space> [shape: f32[1], index: 1, kind: input, shape index: {}]   ;;  %s3560_s2 = inlined_call_operand.hbm [shape: f32[7,1,1,256], index: 2, kind: input, shape index: {}]   ;;  %s3561_s3 = inlined_call_operand.hbm [shape: f32[2,4,256], index: 3, kind: input, shape index: {}]   ;;  %s3562_s4 = inlined_call_operand.hbm [shape: f32[2,4,256], index: 4, kind: output, shape index: {}]  }
   0x1   :  { %s10_s17 = sshll.u32 %s3558_s0, 4  ;;  %s11_s17 = int_to_ptr.vmem [resolvable:$true] %s10_s17 }
   0x2   :  { %13 = dma.vmem_to_smem %s11_s17, 16, %s2234_s18, [#allocation3] }
   0x3   :  { %2226 = dma.done.wait [#allocation3], 16 }
   0x4   :  { %2227 = vsyncadd [#allocation3], 4294967280 }
   0x5   :  { %17 = sfence }
   0x6   :  { %18 = vsyncpa [#allocation7], 0 }
   0x7   :  { %19 = vsyncpa [#allocation10], 0 }
   0x8   :  { %20 = vsyncpa [#allocation8], 0  ;;  %s25_s21 = sshll.u32 %s3560_s2, 4  ;;  %s2235_s22 = smov [#allocation6]   ;;  %s26_s21 = int_to_ptr.hbm [resolvable:$true] %s25_s21 }
   0x9   :  { %s27_s23 = sshll.u32 %s2235_s22, 4  ;;  %s38_s0 = sshll.u32 %s3561_s3, 4  ;;  %s28_s23 = int_to_ptr.vmem [resolvable:$true] %s27_s23  ;;  %s39_s0 = int_to_ptr.hbm [resolvable:$true] %s38_s0 }
   0xa   :  { %s2236_s26 = smov 32   ;;  %s2237_s27 = smov 2  }
   0xb   :  { %33 = dma.hbm_to_vmem [thread:$0]  %s26_s21, 224, %s28_s23, [#allocation7], %s2236_s26, %s2236_s26, %s2237_s27  }
   0xc   :  { %s2238_s28 = smov [#allocation9]   ;;  %s2239_s30 = smov 128  }
   0xd   :  { %s40_s29 = sshll.u32 %s2238_s28, 4  ;;  %s2240_s5 = smov 8   ;;  %s41_s29 = int_to_ptr.vmem [resolvable:$true] %s40_s29 }
   0xe   :  { %46 = dma.hbm_to_vmem [thread:$0]  %s39_s0, 256, %s41_s29, [#allocation10], %s2239_s30, %s2239_s30, %s2240_s5  }
   0xf   :  { %2228 = dma.done.wait [#allocation7], 224  }
  0x10   :  { %2229 = vsyncadd [#allocation7], 4294967072 }
  0x11   :  { %2230 = dma.done.wait [#allocation10], 256  }
  0x12   :  { %2231 = vsyncadd [#allocation10], 4294967040  ;;  %v55_v0 = vld [vmem:[#allocation9] sm:$0xff]  ;;  %v56_v1 = vld [vmem:[#allocation9 + $0x8] sm:$0xff]  ;;  %vm70_vm0 = vcmask 1043456   ;;  %v146_v6 = vlaneseq  ;;  %v2241_v18 = vmov 0.0  }
  0x13   :  { %59 = vst [vmem:[#allocation1] ss:$2 sm:$0xff] %v55_v0  ;;  %vm160_vm2 = vcmask 1040384   ;;  %s2242_s2 = smov 51   ;;  %vm169_vm5 = vcmask 416768   ;;  %s2009_s3 = sld [smem:[#allocation4 + $0x7]] }
  0x14   :  { %63 = vst [vmem:[#allocation1 + $0x10] ss:$2 sm:$0xff] %v56_v1  ;;  %vm2298_vm1 = vcmp.lt.s32.totalorder %v146_v6, 358  ;;  %vm174_vm3 = vcmp.ge.s32.totalorder %v146_v6, 51  ;;  %vm175_vm4 = vcmp.lt.s32.totalorder %v146_v6, 307  ;;  %s2331_s6 = sld [smem:[#allocation4 + $0x15]] }
  0x15   :  { %150 = vst.msk [vmem:[#allocation2] sm:$0x7] %vm2298_vm1, %v2241_v18  ;;  %vm2321_vm6 = vmand %vm174_vm3, %vm175_vm4  ;;  %s2336_s7 = sld [smem:[#allocation4 + $0xe]]  ;;  %s2243_s8 = smov 112   ;;  %vm234_vm7 = vcmask 916480   ;;  %vm273_vm8 = vcmask 785408  }
  0x16   :  { %151 = vst.msk [vmem:[#allocation2 + $0x3] sm:$0x7] %vm2298_vm1, %v2241_v18  ;;  %s2343_s9 = sld [smem:[#allocation4 + $0x1c]]  ;;  %s2244_s10 = smov 80   ;;  %vm310_vm9 = vcmask 654336   ;;  %vm347_vm10 = vcmask 523264  }
  0x17   :  { %152 = vst.msk [vmem:[#allocation2 + $0x6] sm:$0x7] %vm2298_vm1, %v2241_v18  ;;  %s2245_s11 = smov 96   ;;  %s2356_s12 = sld [smem:[#allocation4 + $0x2a]]  ;;  %vm384_vm11 = vcmask 392192   ;;  %vm421_vm12 = vcmask 261120  }
  0x18   :  { %153 = vst.msk [vmem:[#allocation2 + $0x9] sm:$0x7] %vm2298_vm1, %v2241_v18  ;;  %s2359_s13 = sld [smem:[#allocation4 + $0x23]]  ;;  %s2246_s20 = smov 64   ;;  %vm688_vm13 = vcmask 1039360   ;;  %vm935_vm14 = vcmask 1031168  }
  0x19   :  { %v223_v6 = vstv %s2009_s3  ;;  %s2361_s14 = sld [smem:[#allocation4 + $0xc]]  ;;  %s2247_s25 = smov 48   ;;  %vm1182_vm15 = vcmask 1022976   ;;  %vm1429_vm1 = vcmask 1014784   ;;  %vm1923_vm3 = vcmask 998400  }
  0x1a   :  { %v60_v2 = vld.sshfl [vmem:[#allocation1] sm:$0xff pattern:$0x75316420]  ;;  %v61_v3 = vld.sshfl [vmem:[#allocation1 + $0x8] sm:$0xff pattern:$0x75316420] }
  0x1b   :  { %v71_v4 = vsel %vm70_vm0, %v60_v2, 0.0  ;;  %v78_v5 = vsel %vm70_vm0, %v61_v3, 0.0  ;;  %103 = vst [vmem:[#allocation1] ss:$2 sm:$0xff] %v55_v0  ;;  %s2364_s15 = sld [smem:[#allocation4 + $0x13]] }
  0x1c   :  { %v72_v7 = vrot.slane %v71_v4, 4  ;;  %v79_v8 = vrot.slane %v78_v5, 4  ;;  %v64_v9 = vld.sshfl [vmem:[#allocation1 + $0x10] sm:$0xff pattern:$0x75316420]  ;;  %s2366_s16 = sld [smem:[#allocation4 + $0x14]] }
  0x1d   :  { %v65_v10 = vld.sshfl [vmem:[#allocation1 + $0x18] sm:$0xff pattern:$0x75316420]  ;;  %v85_v11 = vsel %vm70_vm0, %v64_v9, 0.0  ;;  %s2368_s17 = sld [smem:[#allocation4 + $0x1a]] }
  0x1e   :  { %v73_v13 = vadd.f32 %v72_v7, %v71_v4  ;;  %v80_v14 = vadd.f32 %v79_v8, %v78_v5  ;;  %v86_v15 = vrot.slane %v85_v11, 4  ;;  %v92_v16 = vsel %vm70_vm0, %v65_v10, 0.0  ;;  %107 = vst [vmem:[#allocation1 + $0x10] ss:$2 sm:$0xff] %v56_v1  ;;  %s2372_s18 = sld [smem:[#allocation4 + $0x1b]] }
  0x1f   :  { %v93_v17 = vrot.slane %v92_v16, 4  ;;  %s2375_s19 = sld [smem:[#allocation4 + $0x28]] }
  0x20   :  { %v74_v19 = vrot.slane %v73_v13, 2  ;;  %v81_v20 = vrot.slane %v80_v14, 2  ;;  %v87_v21 = vadd.f32 %v86_v15, %v85_v11  ;;  %s2379_s21 = sld [smem:[#allocation4 + $0x29]] }
  0x21   :  { %v94_v22 = vadd.f32 %v93_v17, %v92_v16  ;;  %s2382_s22 = sld [smem:[#allocation4 + $0x2f]] }
  0x22   :  { %v75_v23 = vadd.f32 %v74_v19, %v73_v13  ;;  %v82_v24 = vadd.f32 %v81_v20, %v80_v14  ;;  %v104_v25 = vld.sshfl [vmem:[#allocation1] sm:$0xff pattern:$0x75316420]  ;;  %v105_v26 = vld.sshfl [vmem:[#allocation1 + $0x8] sm:$0xff pattern:$0x75316420] }
  0x23   :  { %v114_v27 = vsel %vm70_vm0, %v104_v25, -inf  ;;  %v121_v28 = vsel %vm70_vm0, %v105_v26, -inf  ;;  %v88_v29 = vrot.slane %v87_v21, 2  ;;  %v95_v30 = vrot.slane %v94_v22, 2  ;;  %s2384_s23 = sld [smem:[#allocation4 + $0x30]] }
  0x24   :  { %v76_v31 = vrot.slane %v75_v23, 1  ;;  %v83_v32 = vrot.slane %v82_v24, 1  ;;  %v115_v33 = vrot.slane %v114_v27, 4  ;;  %v122_v34 = vrot.slane %v121_v28, 4  ;;  %s2386_s24 = sld [smem:[#allocation4 + $0x8]] }
  0x25   :  { %v89_v35 = vadd.f32 %v88_v29, %v87_v21  ;;  %v96_v36 = vadd.f32 %v95_v30, %v94_v22  ;;  %v108_v37 = vld.sshfl [vmem:[#allocation1 + $0x10] sm:$0xff pattern:$0x75316420]  ;;  %v109_v38 = vld.sshfl [vmem:[#allocation1 + $0x18] sm:$0xff pattern:$0x75316420] }
  0x26   :  { %v77_v39 = vadd.f32 %v76_v31, %v75_v23  ;;  %v84_v40 = vadd.f32 %v83_v32, %v82_v24  ;;  %v116_v41 = vmax.f32 %v114_v27, %v115_v33  ;;  %v123_v42 = vmax.f32 %v121_v28, %v122_v34  ;;  %s2027_s0 = sld [smem:[#allocation4 + $0x16]] }
  0x27   :  { %v90_v43 = vrot.slane %v89_v35, 1  ;;  %v97_v44 = vrot.slane %v96_v36, 1  ;;  %v128_v45 = vsel %vm70_vm0, %v108_v37, -inf  ;;  %v135_v46 = vsel %vm70_vm0, %v109_v38, -inf  ;;  %s2025_s27 = sld [smem:[#allocation4 + $0xf]] }
  0x28   :  { %v142_v47 = vmul.f32 0.25, %v77_v39  ;;  %v143_v48 = vmul.f32 0.25, %v84_v40  ;;  %v117_v49 = vrot.slane %v116_v41, 2  ;;  %v124_v50 = vrot.slane %v123_v42, 2  ;;  %s2029_s28 = sld [smem:[#allocation4 + $0x1d]] }
  0x29   :  { %v98_v51 = vadd.f32 %v97_v44, %v96_v36  ;;  %v129_v52 = vrot.slane %v128_v45, 4  ;;  %v136_v53 = vrot.slane %v135_v46, 4  ;;  %v91_v57 = vadd.f32 %v90_v43, %v89_v35  ;;  %s2033_s29 = sld [smem:[#allocation4 + $0x2b]] }
  0x2a   :  { %v158_v54 = vrot.slane %v143_v48, 7  ;;  %v118_v55 = vmax.f32 %v116_v41, %v117_v49  ;;  %v125_v56 = vmax.f32 %v123_v42, %v124_v50  ;;  %v299_v34 = vstv %s2331_s6  ;;  %s2037_s3 = sld [smem:[#allocation4 + $0x9]] }
  0x2b   :  { %v145_v58 = vmul.f32 0.25, %v98_v51  ;;  %v130_v59 = vmax.f32 %v128_v45, %v129_v52  ;;  %v137_v60 = vmax.f32 %v135_v46, %v136_v53  ;;  %v144_v4 = vmul.f32 0.25, %v91_v57  ;;  %s2039_s6 = sld [smem:[#allocation4 + $0x10]] }
  0x2c   :  { %v161_v61 = vsel %vm160_vm2, %v142_v47, %v158_v54  ;;  %v119_v62 = vrot.slane %v118_v55, 1  ;;  %v126_v63 = vrot.slane %v125_v56, 1  ;;  %v262_v35 = vstv %s2336_s7  ;;  %s2010_s7 = sld [smem:[#allocation4 + $0x38]] }
  0x2d   :  { %163 = vrot.lane.b32.xlu0 %v161_v61, %s2242_s2  ;;  %v131_v0 = vrot.slane %v130_v59, 2  ;;  %v138_v1 = vrot.slane %v137_v60, 2  ;;  %v159_v5 = vrot.slane %v145_v58, 7  ;;  %v336_v39 = vstv %s2343_s9  ;;  %s2041_s9 = sld [smem:[#allocation4 + $0x17]] }
  0x2e   :  { %v120_v2 = vmax.f32 %v118_v55, %v119_v62  ;;  %v127_v3 = vmax.f32 %v125_v56, %v126_v63  ;;  %v410_v43 = vstv %s2356_s12  ;;  %v373_v44 = vstv %s2359_s13  ;;  %s2012_s12 = sld [smem:[#allocation4 + $0x3f]] }
  0x2f   :  { %v132_v7 = vmax.f32 %v130_v59, %v131_v0  ;;  %v139_v8 = vmax.f32 %v137_v60, %v138_v1  ;;  %v162_v13 = vsel %vm160_vm2, %v144_v4, %v159_v5  ;;  %v3571_v48 = vstv %s2361_s14  ;;  %s2014_s13 = sld [smem:[#allocation4 + $0x46]] }
  0x30   :  { %v183_v9 = vrot.slane %v127_v3, 7  ;;  %v3568_v49 = vstv %s2368_s17  ;;  %v3567_v50 = vstv %s2372_s18  ;;  %v3570_v51 = vstv %s2364_s15 }
  0x31   :  { %v133_v10 = vrot.slane %v132_v7, 1  ;;  %v140_v11 = vrot.slane %v139_v8, 1  ;;  %v3569_v52 = vstv %s2366_s16  ;;  %v3566_v54 = vstv %s2375_s19 }
  0x32   :  { %v185_v12 = vsel %vm160_vm2, %v120_v2, %v183_v9  ;;  %v3564_v55 = vstv %s2382_s22  ;;  %v3565_v58 = vstv %s2379_s21  ;;  %v3563_v59 = vstv %s2384_s23 }
  0x33   :  { %187 = vrot.lane.b32.xlu1 %v185_v12, %s2242_s2  ;;  %v141_v14 = vmax.f32 %v139_v8, %v140_v11  ;;  %v134_v15 = vmax.f32 %v132_v7, %v133_v10  ;;  %v464_v62 = vstv %s2386_s24  ;;  %v536_v7 = vstv %s2027_s0  ;;  %s2016_s24 = sld [smem:[#allocation4 + $0x4d]] }
  0x34   :  { %v500_v8 = vstv %s2025_s27  ;;  %v572_v12 = vstv %s2029_s28  ;;  %s2018_s0 = sld [smem:[#allocation4 + $0x54]] }
  0x35   :  { %165 = vrot.lane.b32.xlu0 %v162_v13, %s2242_s2  ;;  %v184_v16 = vrot.slane %v141_v14, 7  ;;  %s2020_s27 = sld [smem:[#allocation4 + $0x5b]] }
  0x36   :  { %s2024_s28 = sld [smem:[#allocation4 + $0x39]] }
  0x37   :  { %v186_v17 = vsel %vm160_vm2, %v134_v15, %v184_v16  ;;  %v644_v16 = vstv %s2033_s29  ;;  %s2026_s29 = sld [smem:[#allocation4 + $0x40]]  ;;  %vm1676_vm2 = vcmask 1006592  }
  0x3b   :  { %189 = vrot.lane.b32.xlu1 %v186_v17, %s2242_s2  ;;  %s2031_s2 = sld [smem:[#allocation4 + $0x24]] }
  0x41   :  { %v608_v17 = vstv %s2031_s2  ;;  %s2028_s2 = sld [smem:[#allocation4 + $0x47]] }
  0x9f   :  { %v164_v18 = vpop.permute.xlu0 %163 }
  0xa0   :  { %v167_v20 = vrot.slane %v164_v18, 7 }
  0xa2   :  { %v170_v21 = vsel %vm169_vm5, %v167_v20, %v164_v18 }
  0xa3   :  { %177 = vst.msk [vmem:[#allocation2] sm:$0x7] %vm2321_vm6, %v170_v21  ;;  %v711_v21 = vstv %s2037_s3  ;;  %s2030_s3 = sld [smem:[#allocation4 + $0x4e]] }
  0xa5   :  { %v188_v22 = vpop.permute.xlu1 %187 }
  0xa6   :  { %v191_v23 = vrot.slane %v188_v22, 7 }
  0xa7   :  { %v166_v24 = vpop.permute.xlu0 %165 }
  0xa8   :  { %v193_v25 = vsel %vm169_vm5, %v191_v23, %v188_v22  ;;  %v168_v26 = vrot.slane %v166_v24, 7 }
  0xa9   :  { %198 = vst.msk [vmem:[#allocation2 + $0x6] sm:$0x7] %vm2321_vm6, %v193_v25  ;;  %v747_v25 = vstv %s2039_s6  ;;  %s2032_s6 = sld [smem:[#allocation4 + $0x55]] }
  0xaa   :  { %v2333_v27 = vld [vmem:[#allocation2] sm:$0x7]  ;;  %v171_v28 = vsel %vm169_vm5, %v168_v26, %v166_v24 }
  0xab   :  { %178 = vst.msk [vmem:[#allocation2 + $0x3] sm:$0x7] %vm2321_vm6, %v171_v28  ;;  %v224_v29 = vmul.f32 %v223_v6, %v2333_v27  ;;  %v337_v40 = vmul.f32 %v336_v39, %v2333_v27  ;;  %v300_v41 = vmul.f32 %v299_v34, %v2333_v27  ;;  %v263_v42 = vmul.f32 %v262_v35, %v2333_v27 }
  0xac   :  { %v2423_v60 = vmul.f32 %v3568_v49, %v2333_v27  ;;  %v2428_v61 = vmul.f32 %v3567_v50, %v2333_v27  ;;  %v2444_v1 = vmul.f32 %v3564_v55, %v2333_v27  ;;  %v2449_v2 = vmul.f32 %v3563_v59, %v2333_v27  ;;  %v205_v49 = vld [vmem:[#allocation2] sm:$0x3] }
  0xad   :  { %v190_v30 = vpop.permute.xlu1 %189  ;;  %228 = vrot.lane.b32.xlu2 %v224_v29, %s2243_s8  ;;  %v465_v3 = vmul.f32 %v464_v62, %v2333_v27  ;;  %v411_v4 = vmul.f32 %v410_v43, %v2333_v27  ;;  %v374_v5 = vmul.f32 %v373_v44, %v2333_v27  ;;  %v573_v13 = vmul.f32 %v572_v12, %v2333_v27 }
  0xae   :  { %v192_v31 = vrot.slane %v190_v30, 7  ;;  %3577 = vst [vmem:[#allocation17_spill] sm:$0xff] %v2444_v1  ;;  %v537_v14 = vmul.f32 %v536_v7, %v2333_v27  ;;  %v501_v15 = vmul.f32 %v500_v8, %v2333_v27  ;;  %v645_v23 = vmul.f32 %v644_v16, %v2333_v27 }
  0xaf   :  { %3578 = vst [vmem:[#allocation18_spill] sm:$0xff] %v2449_v2  ;;  %v609_v24 = vmul.f32 %v608_v17, %v2333_v27  ;;  %v748_v26 = vmul.f32 %v747_v25, %v2333_v27 }
  0xb0   :  { %v194_v32 = vsel %vm169_vm5, %v192_v31, %v190_v30  ;;  %v243_v30 = vstv %s2010_s7  ;;  %s2034_s7 = sld [smem:[#allocation4 + $0x5c]] }
  0xb1   :  { %199 = vst.msk [vmem:[#allocation2 + $0x9] sm:$0x7] %vm2321_vm6, %v194_v32  ;;  %v783_v32 = vstv %s2041_s9  ;;  %s2553_s9 = sld [smem:[#allocation4 + $0x1e]] }
  0xb2   :  { %v2347_v33 = vld [vmem:[#allocation2 + $0x3] sm:$0x7] }
  0xb3   :  { %v225_v36 = vmul.f32 %v223_v6, %v2347_v33  ;;  %v301_v37 = vmul.f32 %v299_v34, %v2347_v33  ;;  %v264_v38 = vmul.f32 %v262_v35, %v2347_v33  ;;  %v412_v45 = vmul.f32 %v410_v43, %v2347_v33 }
  0xb4   :  { %v375_v46 = vmul.f32 %v373_v44, %v2347_v33  ;;  %v338_v47 = vmul.f32 %v336_v39, %v2347_v33  ;;  %v2403_v53 = vmul.f32 %v3571_v48, %v2347_v33  ;;  %v2411_v56 = vmul.f32 %v3570_v51, %v2347_v33 }
  0xb5   :  { %306 = vrot.lane.b32.xlu1 %v301_v37, %s2244_s10  ;;  %269 = vrot.lane.b32.xlu0 %v264_v38, %s2245_s11  ;;  %v2416_v57 = vmul.f32 %v3569_v52, %v2347_v33  ;;  %v2434_v63 = vmul.f32 %v3566_v54, %v2347_v33  ;;  %v2439_v0 = vmul.f32 %v3565_v58, %v2347_v33  ;;  %v2495_v37 = vld [vmem:[#allocation2 + $0x6] sm:$0x7]  ;;  %v354_v43 = vstv %s2016_s24  ;;  %s2042_s24 = sld [smem:[#allocation4 + $0x48]] }
  0xb6   :  { %230 = vrot.lane.b32.xlu2 %v225_v36, %s2243_s8  ;;  %v538_v9 = vmul.f32 %v536_v7, %v2347_v33  ;;  %v502_v10 = vmul.f32 %v500_v8, %v2347_v33  ;;  %v466_v11 = vmul.f32 %v464_v62, %v2347_v33  ;;  %v646_v18 = vmul.f32 %v644_v16, %v2347_v33  ;;  %v212_v54 = vld [vmem:[#allocation2 + $0x6] sm:$0x3] }
  0xb7   :  { %3576 = vst [vmem:[#allocation16_spill] sm:$0xff] %v2439_v0  ;;  %v610_v19 = vmul.f32 %v608_v17, %v2347_v33  ;;  %v574_v20 = vmul.f32 %v572_v12, %v2347_v33  ;;  %v713_v22 = vmul.f32 %v711_v21, %v2347_v33  ;;  %v712_v6 = vmul.f32 %v711_v21, %v2333_v27 }
  0xb8   :  { %v749_v28 = vmul.f32 %v747_v25, %v2347_v33  ;;  %v2487_v29 = vld [vmem:[#allocation2 + $0x9] sm:$0x7]  ;;  %v785_v34 = vmul.f32 %v783_v32, %v2347_v33  ;;  %v784_v35 = vmul.f32 %v783_v32, %v2333_v27  ;;  %v280_v36 = vstv %s2012_s12  ;;  %s2038_s12 = sld [smem:[#allocation4 + $0x3a]] }
  0xb9   :  { %v245_v31 = vmul.f32 %v243_v30, %v2487_v29  ;;  %v281_v38 = vmul.f32 %v280_v36, %v2495_v37  ;;  %v244_v39 = vmul.f32 %v243_v30, %v2495_v37  ;;  %v356_v44 = vmul.f32 %v354_v43, %v2487_v29 }
  0xba   :  { %v391_v62 = vstv %s2018_s0  ;;  %v428_v8 = vstv %s2020_s27  ;;  %v553_v21 = vstv %s2028_s2  ;;  %v625_v30 = vstv %s2032_s6  ;;  %s2045_s0 = sld [smem:[#allocation4 + $0x25]] }
  0xbb   :  { %v429_v12 = vmul.f32 %v428_v8, %v2495_v37  ;;  %v554_v25 = vmul.f32 %v553_v21, %v2495_v37  ;;  %s2044_s27 = sld [smem:[#allocation4 + $0x4f]] }
  0xbc   :  { %s2047_s2 = sld [smem:[#allocation4 + $0x2c]] }
  0xbd   :  { %341 = vrot.lane.b32.xlu1 %v337_v40, %s2246_s20  ;;  %304 = vrot.lane.b32.xlu0 %v300_v41, %s2244_s10  ;;  %v282_v40 = vmul.f32 %v280_v36, %v2487_v29  ;;  %s2635_s6 = sld [smem:[#allocation4 + $0x31]] }
  0xbe   :  { %267 = vrot.lane.b32.xlu2 %v263_v42, %s2245_s11  ;;  %v317_v42 = vstv %s2014_s13  ;;  %s2040_s13 = sld [smem:[#allocation4 + $0x41]] }
  0xc5   :  { %417 = vrot.lane.b32.xlu1 %v412_v45, %s2236_s26  ;;  %380 = vrot.lane.b32.xlu0 %v375_v46, %s2247_s25  ;;  %v319_v45 = vmul.f32 %v317_v42, %v2487_v29  ;;  %v318_v46 = vmul.f32 %v317_v42, %v2495_v37 }
  0xc6   :  { %343 = vrot.lane.b32.xlu2 %v338_v47, %s2246_s20 }
  0xcd   :  { %469 = vrot.lane.b32.xlu1 %v465_v3, %s2243_s8  ;;  %415 = vrot.lane.b32.xlu0 %v411_v4, %s2236_s26  ;;  %v392_v3 = vmul.f32 %v391_v62, %v2495_v37  ;;  %v355_v4 = vmul.f32 %v354_v43, %v2495_v37 }
  0xce   :  { %378 = vrot.lane.b32.xlu2 %v374_v5, %s2247_s25  ;;  %v393_v5 = vmul.f32 %v391_v62, %v2487_v29 }
  0xd5   :  { %543 = vrot.lane.b32.xlu1 %v538_v9, %s2244_s10  ;;  %507 = vrot.lane.b32.xlu0 %v502_v10, %s2245_s11  ;;  %v481_v9 = vstv %s2024_s28  ;;  %s2046_s28 = sld [smem:[#allocation4 + $0x56]] }
  0xd6   :  { %471 = vrot.lane.b32.xlu2 %v466_v11, %s2243_s8  ;;  %v483_v10 = vmul.f32 %v481_v9, %v2487_v29  ;;  %v430_v11 = vmul.f32 %v428_v8, %v2487_v29  ;;  %v482_v16 = vmul.f32 %v481_v9, %v2495_v37 }
  0xdd   :  { %577 = vrot.lane.b32.xlu1 %v573_v13, %s2246_s20  ;;  %541 = vrot.lane.b32.xlu0 %v537_v14, %s2244_s10  ;;  %v517_v14 = vstv %s2026_s29  ;;  %s2616_s29 = sld [smem:[#allocation4 + $0x5d]] }
  0xde   :  { %505 = vrot.lane.b32.xlu2 %v501_v15, %s2245_s11  ;;  %v518_v15 = vmul.f32 %v517_v14, %v2495_v37  ;;  %v519_v17 = vmul.f32 %v517_v14, %v2487_v29  ;;  %v800_v14 = vstv %s2042_s24  ;;  %s2691_s24 = sld [smem:[#allocation4 + $0x42]] }
  0xe5   :  { %651 = vrot.lane.b32.xlu1 %v646_v18, %s2236_s26  ;;  %615 = vrot.lane.b32.xlu0 %v610_v19, %s2247_s25 }
  0xe6   :  { %579 = vrot.lane.b32.xlu2 %v574_v20, %s2246_s20 }
  0xed   :  { %718 = vrot.lane.b32.xlu1 %v713_v22, %s2243_s8  ;;  %649 = vrot.lane.b32.xlu0 %v645_v23, %s2236_s26  ;;  %v589_v22 = vstv %s2030_s3  ;;  %s2631_s3 = sld [smem:[#allocation4 + $0x3b]] }
  0xee   :  { %613 = vrot.lane.b32.xlu2 %v609_v24, %s2247_s25  ;;  %v591_v23 = vmul.f32 %v589_v22, %v2487_v29  ;;  %v555_v24 = vmul.f32 %v553_v21, %v2487_v29  ;;  %v590_v32 = vmul.f32 %v589_v22, %v2495_v37 }
  0xf5   :  { %752 = vrot.lane.b32.xlu1 %v748_v26, %s2245_s11  ;;  %716 = vrot.lane.b32.xlu0 %v712_v6, %s2243_s8 }
  0xf6   :  { %754 = vrot.lane.b32.xlu2 %v749_v28, %s2245_s11 }
  0xfd   :  { %250 = vrot.lane.b32.xlu1 %v245_v31, %s2243_s8  ;;  %790 = vrot.lane.b32.xlu0 %v785_v34, %s2244_s10  ;;  %v626_v31 = vmul.f32 %v625_v30, %v2495_v37  ;;  %v627_v34 = vmul.f32 %v625_v30, %v2487_v29 }
  0xfe   :  { %788 = vrot.lane.b32.xlu2 %v784_v35, %s2244_s10 }
 0x105   :  { %285 = vrot.lane.b32.xlu1 %v281_v38, %s2245_s11  ;;  %248 = vrot.lane.b32.xlu0 %v244_v39, %s2243_s8  ;;  %v661_v39 = vstv %s2034_s7  ;;  %s2640_s7 = sld [smem:[#allocation4]] }
 0x106   :  { %287 = vrot.lane.b32.xlu2 %v282_v40, %s2245_s11  ;;  %v819_v40 = vstv %s2553_s9  ;;  %v663_v43 = vmul.f32 %v661_v39, %v2487_v29  ;;  %s2650_s9 = sld [smem:[#allocation4 + $0xa]] }
 0x107   :  { %v2503_v41 = vpop.permute.xlu2 %228  ;;  %v821_v42 = vmul.f32 %v819_v40, %v2347_v33 }
 0x108   :  { %v232_v52 = vrot.slane %v2503_v41, 1 }
 0x10b   :  { %v207_v59 = vstv %s2640_s7  ;;  %s2060_s7 = sld [smem:[#allocation4 + $0x57]] }
 0x10c   :  { %v208_v0 = vmul.f32 %v207_v59, %v205_v49 }
 0x10d   :  { %361 = vrot.lane.b32.xlu1 %v356_v44, %s2246_s20  ;;  %324 = vrot.lane.b32.xlu0 %v319_v45, %s2244_s10  ;;  %v662_v44 = vmul.f32 %v661_v39, %v2495_v37 }
 0x10e   :  { %322 = vrot.lane.b32.xlu2 %v318_v46, %s2244_s10 }
 0x110   :  { %v2511_v47 = vpop.permute.xlu2 %230 }
 0x115   :  { %396 = vrot.lane.b32.xlu1 %v392_v3, %s2247_s25  ;;  %359 = vrot.lane.b32.xlu0 %v355_v4, %s2246_s20  ;;  %v728_v3 = vstv %s2038_s12  ;;  %v764_v4 = vstv %s2040_s13  ;;  %s2652_s12 = sld [smem:[#allocation4 + $0x11]] }
 0x116   :  { %398 = vrot.lane.b32.xlu2 %v393_v5, %s2247_s25  ;;  %v766_v5 = vmul.f32 %v764_v4, %v2487_v29  ;;  %v730_v8 = vmul.f32 %v728_v3, %v2487_v29  ;;  %v729_v9 = vmul.f32 %v728_v3, %v2495_v37  ;;  %s2665_s13 = sld [smem:[#allocation4 + $0x18]] }
 0x118   :  { %v2519_v7 = vpop.permute.xlu2 %267 }
 0x11d   :  { %488 = vrot.lane.b32.xlu1 %v483_v10, %s2243_s8  ;;  %435 = vrot.lane.b32.xlu0 %v430_v11, %s2236_s26 }
 0x11e   :  { %433 = vrot.lane.b32.xlu2 %v429_v12, %s2236_s26 }
 0x120   :  { %v2527_v13 = vpop.permute.xlu2 %343 }
 0x125   :  { %522 = vrot.lane.b32.xlu1 %v518_v15, %s2245_s11  ;;  %486 = vrot.lane.b32.xlu0 %v482_v16, %s2243_s8  ;;  %v801_v15 = vmul.f32 %v800_v14, %v2495_v37  ;;  %v765_v16 = vmul.f32 %v764_v4, %v2495_v37 }
 0x126   :  { %524 = vrot.lane.b32.xlu2 %v519_v17, %s2245_s11  ;;  %v802_v17 = vmul.f32 %v800_v14, %v2487_v29  ;;  %v891_v14 = vstv %s2047_s2  ;;  %s2777_s2 = sld [smem:[#allocation4 + $0x2d]] }
 0x127   :  { %v2535_v18 = vpop.permute.xlu1 %306  ;;  %v2537_v19 = vpop.permute.xlu0 %269 }
 0x128   :  { %v2539_v20 = vpop.permute.xlu2 %378 }
 0x12d   :  { %596 = vrot.lane.b32.xlu1 %v591_v23, %s2246_s20  ;;  %560 = vrot.lane.b32.xlu0 %v555_v24, %s2244_s10  ;;  %v855_v24 = vstv %s2045_s0  ;;  %s2694_s0 = sld [smem:[#allocation4 + $0x49]] }
 0x12e   :  { %558 = vrot.lane.b32.xlu2 %v554_v25, %s2244_s10  ;;  %v836_v25 = vstv %s2044_s27  ;;  %v856_v30 = vmul.f32 %v855_v24, %v2333_v27  ;;  %v857_v3 = vmul.f32 %v855_v24, %v2347_v33  ;;  %s2712_s27 = sld [smem:[#allocation4 + $0x50]] }
 0x12f   :  { %v2547_v26 = vpop.permute.xlu1 %341  ;;  %v2549_v6 = vpop.permute.xlu0 %304 }
 0x130   :  { %v2551_v28 = vpop.permute.xlu2 %471 }
 0x135   :  { %630 = vrot.lane.b32.xlu1 %v626_v31, %s2247_s25  ;;  %594 = vrot.lane.b32.xlu0 %v590_v32, %s2246_s20  ;;  %v820_v31 = vmul.f32 %v819_v40, %v2333_v27  ;;  %v837_v32 = vmul.f32 %v836_v25, %v2495_v37 }
 0x136   :  { %632 = vrot.lane.b32.xlu2 %v627_v34, %s2247_s25 }
 0x137   :  { %v2561_v35 = vpop.permute.xlu1 %417  ;;  %v2563_v36 = vpop.permute.xlu0 %380 }
 0x138   :  { %v2565_v38 = vpop.permute.xlu2 %505 }
 0x13d   :  { %826 = vrot.lane.b32.xlu1 %v821_v42, %s2246_s20  ;;  %668 = vrot.lane.b32.xlu0 %v663_v43, %s2236_s26  ;;  %v872_v43 = vstv %s2046_s28  ;;  %s2746_s28 = sld [smem:[#allocation4 + $0x1f]] }
 0x13e   :  { %666 = vrot.lane.b32.xlu2 %v662_v44, %s2236_s26  ;;  %v874_v40 = vmul.f32 %v872_v43, %v2487_v29  ;;  %v838_v44 = vmul.f32 %v836_v25, %v2487_v29 }
 0x13f   :  { %v2574_v45 = vpop.permute.xlu1 %469  ;;  %v2576_v46 = vpop.permute.xlu0 %415 }
 0x140   :  { %v2578_v62 = vpop.permute.xlu2 %579 }
 0x145   :  { %771 = vrot.lane.b32.xlu1 %v766_v5, %s2245_s11  ;;  %735 = vrot.lane.b32.xlu0 %v730_v8, %s2243_s8 }
 0x146   :  { %733 = vrot.lane.b32.xlu2 %v729_v9, %s2243_s8  ;;  %v908_v9 = vstv %s2616_s29  ;;  %s2751_s29 = sld [smem:[#allocation4 + $0x26]] }
 0x147   :  { %v2586_v10 = vpop.permute.xlu1 %543  ;;  %v2588_v11 = vpop.permute.xlu0 %507 }
 0x148   :  { %v2590_v12 = vpop.permute.xlu2 %613 }
 0x14d   :  { %805 = vrot.lane.b32.xlu1 %v801_v15, %s2244_s10  ;;  %769 = vrot.lane.b32.xlu0 %v765_v16, %s2245_s11  ;;  %v909_v15 = vmul.f32 %v908_v9, %v2495_v37  ;;  %v873_v16 = vmul.f32 %v872_v43, %v2495_v37 }
 0x14e   :  { %807 = vrot.lane.b32.xlu2 %v802_v17, %s2244_s10  ;;  %v892_v17 = vmul.f32 %v891_v14, %v2333_v27 }
 0x14f   :  { %v2598_v21 = vpop.permute.xlu1 %577  ;;  %v2600_v22 = vpop.permute.xlu0 %541 }
 0x150   :  { %v2602_v23 = vpop.permute.xlu2 %754 }
 0x155   :  { %860 = vrot.lane.b32.xlu1 %v856_v30, %s2247_s25  ;;  %824 = vrot.lane.b32.xlu0 %v820_v31, %s2246_s20  ;;  %v975_v31 = vstv %s2631_s3  ;;  %s2780_s3 = sld [smem:[#allocation4 + $0x32]] }
 0x156   :  { %841 = vrot.lane.b32.xlu2 %v837_v32, %s2246_s20  ;;  %v213_v32 = vld [vmem:[#allocation2 + $0x9] sm:$0x3]  ;;  %v976_v43 = vmul.f32 %v975_v31, %v2495_v37 }
 0x157   :  { %v2610_v34 = vpop.permute.xlu1 %651  ;;  %v2612_v39 = vpop.permute.xlu0 %615 }
 0x158   :  { %v2614_v42 = vpop.permute.xlu2 %788 }
 0x15d   :  { %879 = vrot.lane.b32.xlu1 %v874_v40, %s2247_s25  ;;  %843 = vrot.lane.b32.xlu0 %v838_v44, %s2246_s20  ;;  %v893_v40 = vmul.f32 %v891_v14, %v2347_v33  ;;  %v214_v44 = vstv %s2635_s6  ;;  %s2792_s6 = sld [smem:[#allocation4 + $0x1]] }
 0x15e   :  { %862 = vrot.lane.b32.xlu2 %v857_v3, %s2247_s25  ;;  %v206_v3 = vld [vmem:[#allocation2 + $0x3] sm:$0x3]  ;;  %v215_v51 = vmul.f32 %v214_v44, %v212_v54 }
 0x15f   :  { %v2624_v4 = vpop.permute.xlu1 %718  ;;  %v2626_v5 = vpop.permute.xlu0 %649  ;;  %v209_v55 = vmul.f32 %v207_v59, %v206_v3  ;;  %v994_v3 = vstv %s2652_s12  ;;  %s2824_s12 = sld [smem:[#allocation4 + $0xb]] }
 0x160   :  { %v2628_v8 = vpop.permute.xlu2 %287  ;;  %v996_v2 = vmul.f32 %v994_v3, %v2347_v33  ;;  %v217_v54 = vadd.f32 %v215_v51, %v208_v0 }
 0x161   :  { %v290_v49 = vrot.slane %v2628_v8, 1 }
 0x165   :  { %913 = vrot.lane.b32.xlu1 %v909_v15, %s2236_s26  ;;  %877 = vrot.lane.b32.xlu0 %v873_v16, %s2247_s25  ;;  %v233_v15 = vrot.slane %v2511_v47, 1  ;;  %v910_v16 = vmul.f32 %v908_v9, %v2487_v29 }
 0x166   :  { %896 = vrot.lane.b32.xlu2 %v892_v17, %s2236_s26  ;;  %v216_v17 = vmul.f32 %v214_v44, %v213_v32 }
 0x167   :  { %v2643_v24 = vpop.permute.xlu1 %752  ;;  %v2645_v25 = vpop.permute.xlu0 %716  ;;  %v236_v9 = vsel %vm234_vm7, %v2511_v47, %v233_v15  ;;  %v272_v47 = vrot.slane %v2537_v19, 1 }
 0x168   :  { %v2647_v30 = vpop.permute.xlu2 %322 }
 0x16d   :  { %980 = vrot.lane.b32.xlu1 %v976_v43, %s2243_s8  ;;  %898 = vrot.lane.b32.xlu0 %v893_v40, %s2236_s26  ;;  %v218_v43 = vadd.f32 %v216_v17, %v209_v55  ;;  %v958_v40 = vstv %s2650_s9  ;;  %s2802_s9 = sld [smem:[#allocation4 + $0x5e]] }
 0x16e   :  { %915 = vrot.lane.b32.xlu2 %v910_v16, %s2236_s26  ;;  %v960_v1 = vmul.f32 %v958_v40, %v2347_v33  ;;  %v959_v15 = vmul.f32 %v958_v40, %v2333_v27  ;;  %v977_v40 = vmul.f32 %v975_v31, %v2487_v29  ;;  %v326_v31 = vrot.slane %v2647_v30, 1 }
 0x16f   :  { %v251_v58 = vpop.permute.xlu1 %250  ;;  %v2663_v14 = vpop.permute.xlu0 %790  ;;  %v240_v48 = vadd.f32 %v236_v9, %v218_v43  ;;  %v1030_v9 = vstv %s2665_s13  ;;  %s2844_s13 = sld [smem:[#allocation4 + $0x3c]] }
 0x170   :  { %v253_v32 = vrot.slane %v251_v58, 1  ;;  %v2669_v50 = vpop.permute.xlu2 %398  ;;  %v1031_v43 = vmul.f32 %v1030_v9, %v2333_v27 }
 0x172   :  { %v255_v16 = vsel %vm234_vm7, %v251_v58, %v253_v32  ;;  %v235_v58 = vsel %vm234_vm7, %v2503_v41, %v232_v52  ;;  %v271_v32 = vrot.slane %v2519_v7, 1 }
 0x173   :  { %v259_v55 = vadd.f32 %v255_v16, %v240_v48  ;;  %v275_v48 = vsel %vm273_vm8, %v2537_v19, %v272_v47  ;;  %v995_v19 = vmul.f32 %v994_v3, %v2333_v27  ;;  %v309_v47 = vrot.slane %v2535_v18, 1 }
 0x174   :  { %v274_v16 = vsel %vm273_vm8, %v2519_v7, %v271_v32 }
 0x175   :  { %1001 = vrot.lane.b32.xlu1 %v996_v2, %s2245_s11  ;;  %965 = vrot.lane.b32.xlu0 %v960_v1, %s2243_s8  ;;  %v239_v2 = vadd.f32 %v235_v58, %v217_v54  ;;  %v279_v52 = vadd.f32 %v275_v48, %v259_v55  ;;  %v292_v55 = vsel %vm273_vm8, %v2628_v8, %v290_v49  ;;  %v346_v8 = vrot.slane %v2527_v13, 1 }
 0x176   :  { %963 = vrot.lane.b32.xlu2 %v959_v15, %s2243_s8  ;;  %v308_v15 = vrot.slane %v2549_v6, 1  ;;  %v312_v48 = vsel %vm310_vm9, %v2535_v18, %v309_v47 }
 0x177   :  { %v286_v44 = vpop.permute.xlu1 %285  ;;  %v249_v17 = vpop.permute.xlu0 %248  ;;  %v296_v3 = vadd.f32 %v292_v55, %v279_v52  ;;  %v1011_v52 = vstv %s2691_s24  ;;  %v349_v47 = vsel %vm347_vm10, %v2527_v13, %v346_v8  ;;  %v383_v55 = vrot.slane %v2563_v36, 1  ;;  %s2853_s24 = sld [smem:[#allocation4 + $0x2]] }
 0x178   :  { %v252_v59 = vrot.slane %v249_v17, 1  ;;  %v2689_v1 = vpop.permute.xlu2 %433  ;;  %v289_v51 = vrot.slane %v286_v44, 1  ;;  %v311_v49 = vsel %vm310_vm9, %v2549_v6, %v308_v15  ;;  %v345_v15 = vrot.slane %v2547_v26, 1 }
 0x179   :  { %v382_v8 = vrot.slane %v2539_v20, 1 }
 0x17a   :  { %v254_v0 = vsel %vm234_vm7, %v249_v17, %v252_v59  ;;  %v291_v54 = vsel %vm273_vm8, %v286_v44, %v289_v51  ;;  %v316_v44 = vadd.f32 %v312_v48, %v296_v3  ;;  %v401_v3 = vrot.slane %v2669_v50, 1 }
 0x17b   :  { %v258_v41 = vadd.f32 %v254_v0, %v239_v2  ;;  %v328_v0 = vsel %vm310_vm9, %v2647_v30, %v326_v31  ;;  %v1012_v30 = vmul.f32 %v1011_v52, %v2495_v37  ;;  %v348_v48 = vsel %vm347_vm10, %v2547_v26, %v345_v15 }
 0x17d   :  { %v278_v58 = vadd.f32 %v274_v16, %v258_v41  ;;  %1035 = vrot.lane.b32.xlu1 %v1031_v43, %s2244_s10  ;;  %999 = vrot.lane.b32.xlu0 %v995_v19, %s2245_s11  ;;  %v1047_v19 = vstv %s2694_s0  ;;  %v1013_v16 = vmul.f32 %v1011_v52, %v2487_v29  ;;  %s2857_s0 = sld [smem:[#allocation4 + $0x33]] }
 0x17e   :  { %982 = vrot.lane.b32.xlu2 %v977_v40, %s2243_s8  ;;  %v1049_v18 = vmul.f32 %v1047_v19, %v2487_v29 }
 0x17f   :  { %v295_v7 = vadd.f32 %v291_v54, %v278_v58  ;;  %v362_v17 = vpop.permute.xlu1 %361  ;;  %v325_v32 = vpop.permute.xlu0 %324 }
 0x180   :  { %v327_v59 = vrot.slane %v325_v32, 1  ;;  %v2719_v2 = vpop.permute.xlu2 %524  ;;  %v364_v41 = vrot.slane %v362_v17, 1 }
 0x181   :  { %v315_v51 = vadd.f32 %v311_v49, %v295_v7  ;;  %v386_v49 = vsel %vm384_vm11, %v2563_v36, %v383_v55 }
 0x182   :  { %v329_v43 = vsel %vm310_vm9, %v325_v32, %v327_v59  ;;  %v366_v31 = vsel %vm347_vm10, %v362_v17, %v364_v41  ;;  %v1083_v32 = vstv %s2712_s27  ;;  %s2864_s27 = sld [smem:[#allocation4 + $0x12]] }
 0x183   :  { %v333_v40 = vadd.f32 %v329_v43, %v316_v44  ;;  %v332_v6 = vadd.f32 %v328_v0, %v315_v51  ;;  %v403_v51 = vsel %vm384_vm11, %v2669_v50, %v401_v3  ;;  %v1084_v36 = vmul.f32 %v1083_v32, %v2495_v37 }
 0x184   :  { %v1048_v43 = vmul.f32 %v1047_v19, %v2495_v37  ;;  %v1032_v50 = vmul.f32 %v1030_v9, %v2347_v33  ;;  %v437_v19 = vrot.slane %v2689_v1, 1 }
 0x185   :  { %v353_v58 = vadd.f32 %v349_v47, %v333_v40  ;;  %1054 = vrot.lane.b32.xlu1 %v1049_v18, %s2244_s10  ;;  %1018 = vrot.lane.b32.xlu0 %v1013_v16, %s2245_s11  ;;  %v352_v17 = vadd.f32 %v348_v48, %v332_v6  ;;  %v385_v18 = vsel %vm384_vm11, %v2539_v20, %v382_v8  ;;  %v420_v16 = vrot.slane %v2561_v35, 1 }
 0x186   :  { %1016 = vrot.lane.b32.xlu2 %v1012_v30, %s2245_s11  ;;  %v419_v6 = vrot.slane %v2576_v46, 1  ;;  %v439_v8 = vsel %vm421_vm12, %v2689_v1, %v437_v19 }
 0x187   :  { %v370_v54 = vadd.f32 %v366_v31, %v353_v58  ;;  %v397_v13 = vpop.permute.xlu1 %396  ;;  %v360_v7 = vpop.permute.xlu0 %359  ;;  %v423_v9 = vsel %vm421_vm12, %v2561_v35, %v420_v16  ;;  %v1102_v35 = vstv %s2751_s29  ;;  %v1085_v16 = vmul.f32 %v1083_v32, %v2487_v29  ;;  %s2907_s29 = sld [smem:[#allocation4 + $0x19]] }
 0x188   :  { %v363_v59 = vrot.slane %v360_v7, 1  ;;  %v2744_v44 = vpop.permute.xlu2 %558  ;;  %v400_v0 = vrot.slane %v397_v13, 1  ;;  %v422_v58 = vsel %vm421_vm12, %v2576_v46, %v419_v6 }
 0x189   :  { %v390_v52 = vadd.f32 %v386_v49, %v370_v54 }
 0x18a   :  { %v365_v41 = vsel %vm347_vm10, %v360_v7, %v363_v59  ;;  %v402_v15 = vsel %vm384_vm11, %v397_v13, %v400_v0  ;;  %v1066_v7 = vstv %s2746_s28  ;;  %v1104_v59 = vmul.f32 %v1102_v35, %v2347_v33  ;;  %s2871_s28 = sld [smem:[#allocation4 + $0x43]] }
 0x18b   :  { %v369_v26 = vadd.f32 %v365_v41, %v352_v17  ;;  %v407_v40 = vadd.f32 %v403_v51, %v390_v52  ;;  %v1068_v17 = vmul.f32 %v1066_v7, %v2347_v33  ;;  %v1067_v52 = vmul.f32 %v1066_v7, %v2333_v27 }
 0x18c   :  { %v1138_v41 = vstv %s2777_s2  ;;  %s2949_s2 = sld [smem:[#allocation4 + $0x4a]] }
 0x18d   :  { %v389_v47 = vadd.f32 %v385_v18, %v369_v26  ;;  %1088 = vrot.lane.b32.xlu1 %v1084_v36, %s2246_s20  ;;  %1052 = vrot.lane.b32.xlu0 %v1048_v43, %s2244_s10  ;;  %v427_v13 = vadd.f32 %v423_v9, %v407_v40  ;;  %v457_v26 = vstv %s2780_s3  ;;  %v1139_v36 = vmul.f32 %v1138_v41, %v2333_v27  ;;  %s2248_s3 = smov 127  }
 0x18e   :  { %1037 = vrot.lane.b32.xlu2 %v1032_v50, %s2244_s10  ;;  %v1103_v43 = vmul.f32 %v1102_v35, %v2333_v27  ;;  %v452_v40 = vstv %s2792_s6  ;;  %v473_v18 = vrot.slane %v2574_v45, 1  ;;  %v458_v6 = vmul.f32 %v457_v26, %v2495_v37  ;;  %s2249_s6 = smov 126  }
 0x18f   :  { %v406_v20 = vadd.f32 %v402_v15, %v389_v47  ;;  %v2769_v55 = vpop.permute.xlu1 %488  ;;  %v436_v30 = vpop.permute.xlu0 %435  ;;  %v453_v47 = vmul.f32 %v452_v40, %v2333_v27  ;;  %v1119_v9 = vstv %s2060_s7  ;;  %v474_v35 = vrot.slane %v2551_v28, 1  ;;  %s3038_s7 = sld [smem:[#allocation4 + $0x20]] }
 0x190   :  { %v438_v3 = vrot.slane %v436_v30, 1  ;;  %v2775_v31 = vpop.permute.xlu2 %632  ;;  %v1121_v7 = vmul.f32 %v1119_v9, %v2487_v29 }
 0x191   :  { %v426_v54 = vadd.f32 %v422_v58, %v406_v20  ;;  %v475_v20 = vsel %vm234_vm7, %v2574_v45, %v473_v18  ;;  %v460_v32 = vadd.f32 %v458_v6, %v453_v47  ;;  %v1205_v18 = vstv %s2824_s12  ;;  %s2050_s12 = sld [smem:[#allocation4 + $0x34]] }
 0x192   :  { %v440_v48 = vsel %vm421_vm12, %v436_v30, %v438_v3  ;;  %v1155_v3 = vstv %s2802_s9  ;;  %v476_v47 = vsel %vm234_vm7, %v2551_v28, %v474_v35  ;;  %s3045_s9 = sld [smem:[#allocation4 + $0x51]] }
 0x193   :  { %v2786_v49 = vadd.f32 %v439_v8, %v426_v54  ;;  %v2788_v46 = vadd.f32 %v440_v48, %v427_v13  ;;  %v479_v54 = vadd.f32 %v475_v20, %v460_v32  ;;  %v1157_v13 = vmul.f32 %v1155_v3, %v2487_v29 }
 0x194   :  { %v509_v8 = vrot.slane %v2565_v38, 1  ;;  %v1120_v48 = vmul.f32 %v1119_v9, %v2495_v37  ;;  %v1206_v20 = vmul.f32 %v1205_v18, %v2333_v27 }
 0x195   :  { %1109 = vrot.lane.b32.xlu1 %v1104_v59, %s2247_s25  ;;  %1073 = vrot.lane.b32.xlu0 %v1068_v17, %s2246_s20 }
 0x196   :  { %1071 = vrot.lane.b32.xlu2 %v1067_v52, %s2246_s20  ;;  %v459_v52 = vmul.f32 %v457_v26, %v2487_v29  ;;  %v1156_v26 = vmul.f32 %v1155_v3, %v2495_v37 }
 0x197   :  { %v523_v1 = vpop.permute.xlu1 %522  ;;  %v487_v51 = vpop.permute.xlu0 %486 }
 0x198   :  { %v2798_v0 = vpop.permute.xlu2 %666  ;;  %v490_v50 = vrot.slane %v487_v51, 1 }
 0x19a   :  { %v492_v58 = vsel %vm234_vm7, %v487_v51, %v490_v50  ;;  %v511_v51 = vsel %vm273_vm8, %v2565_v38, %v509_v8  ;;  %v454_v50 = vmul.f32 %v452_v40, %v2347_v33  ;;  %v545_v38 = vrot.slane %v2600_v22, 1 }
 0x19b   :  { %v496_v45 = vadd.f32 %v492_v58, %v479_v54  ;;  %v1140_v58 = vmul.f32 %v1138_v41, %v2347_v33  ;;  %v562_v54 = vrot.slane %v2744_v44, 1  ;;  %v1222_v8 = vstv %s2844_s13  ;;  %s2049_s13 = sld [smem:[#allocation4 + $0x3]] }
 0x19c   :  { %v461_v32 = vadd.f32 %v459_v52, %v454_v50  ;;  %v527_v52 = vrot.slane %v2719_v2, 1 }
 0x19d   :  { %1143 = vrot.lane.b32.xlu1 %v1139_v36, %s2236_s26  ;;  %1107 = vrot.lane.b32.xlu0 %v1103_v43, %s2247_s25  ;;  %v526_v36 = vrot.slane %v523_v1, 1  ;;  %v515_v6 = vadd.f32 %v511_v51, %v496_v45  ;;  %v1207_v45 = vmul.f32 %v1205_v18, %v2347_v33  ;;  %v1224_v51 = vmul.f32 %v1222_v8, %v2487_v29 }
 0x19e   :  { %1090 = vrot.lane.b32.xlu2 %v1085_v16, %s2246_s20  ;;  %v491_v16 = vrot.slane %v2769_v55, 1  ;;  %v480_v27 = vadd.f32 %v476_v47, %v461_v32  ;;  %v699_v33 = vstv %s2853_s24  ;;  %v1241_v18 = vstv %s2864_s27  ;;  %s3053_s24 = sld [smem:[#allocation4 + $0x58]]  ;;  %s2250_s27 = smov 125  }
 0x19f   :  { %v2816_v19 = vpop.permute.xlu1 %596  ;;  %v2818_v15 = vpop.permute.xlu0 %560  ;;  %v528_v9 = vsel %vm273_vm8, %v523_v1, %v526_v36  ;;  %v510_v1 = vrot.slane %v2588_v11, 1  ;;  %v581_v36 = vrot.slane %v2598_v21, 1 }
 0x1a0   :  { %v2822_v30 = vpop.permute.xlu2 %733  ;;  %v493_v40 = vsel %vm234_vm7, %v2769_v55, %v491_v16  ;;  %v532_v28 = vadd.f32 %v528_v9, %v515_v6  ;;  %v547_v55 = vsel %vm310_vm9, %v2600_v22, %v545_v38  ;;  %v1223_v22 = vmul.f32 %v1222_v8, %v2495_v37 }
 0x1a1   :  { %v512_v35 = vsel %vm273_vm8, %v2588_v11, %v510_v1  ;;  %v564_v16 = vsel %vm310_vm9, %v2744_v44, %v562_v54  ;;  %v704_v11 = vstv %s2857_s0  ;;  %v563_v32 = vrot.slane %v2818_v15, 1  ;;  %s3073_s0 = sld [smem:[#allocation4 + $0x2e]] }
 0x1a2   :  { %v1258_v9 = vstv %s2871_s28  ;;  %s2073_s28 = sld [smem:[#allocation4 + $0x27]] }
 0x1a5   :  { %1162 = vrot.lane.b32.xlu1 %v1157_v13, %s2236_s26  ;;  %1126 = vrot.lane.b32.xlu0 %v1121_v7, %s2247_s25  ;;  %v497_v13 = vadd.f32 %v493_v40, %v480_v27  ;;  %v720_v40 = vrot.slane %v2645_v25, 1 }
 0x1a6   :  { %1124 = vrot.lane.b32.xlu2 %v1120_v48, %s2247_s25  ;;  %v551_v48 = vadd.f32 %v547_v55, %v532_v28  ;;  %v2910_v55 = vld [vmem:[#allocation2] sm:$0x7] }
 0x1a7   :  { %v2836_v59 = vpop.permute.xlu1 %630  ;;  %v595_v17 = vpop.permute.xlu0 %594  ;;  %v516_v6 = vadd.f32 %v512_v35, %v497_v13  ;;  %v700_v54 = vmul.f32 %v2910_v55, %v699_v33  ;;  %v705_v13 = vmul.f32 %v704_v11, %v2495_v37 }
 0x1a8   :  { %v2841_v43 = vpop.permute.xlu2 %807  ;;  %v598_v50 = vrot.slane %v595_v17, 1  ;;  %v568_v47 = vadd.f32 %v564_v16, %v551_v48  ;;  %v721_v48 = vrot.slane %v2624_v4, 1  ;;  %v722_v16 = vsel %vm234_vm7, %v2645_v25, %v720_v40 }
 0x1aa   :  { %v600_v27 = vsel %vm347_vm10, %v595_v17, %v598_v50  ;;  %v737_v17 = vrot.slane %v2822_v30, 1  ;;  %v723_v25 = vsel %vm234_vm7, %v2624_v4, %v721_v48 }
 0x1ad   :  { %1210 = vrot.lane.b32.xlu1 %v1206_v20, %s2243_s8  ;;  %1160 = vrot.lane.b32.xlu0 %v1156_v26, %s2236_s26  ;;  %v546_v20 = vrot.slane %v2586_v10, 1  ;;  %v529_v26 = vsel %vm273_vm8, %v2719_v2, %v527_v52  ;;  %v617_v2 = vrot.slane %v2590_v12, 1 }
 0x1ae   :  { %1145 = vrot.lane.b32.xlu2 %v1140_v58, %s2236_s26  ;;  %v583_v58 = vsel %vm347_vm10, %v2598_v21, %v581_v36  ;;  %v533_v28 = vadd.f32 %v529_v26, %v516_v6  ;;  %v706_v21 = vmul.f32 %v704_v11, %v2487_v29  ;;  %v1259_v36 = vmul.f32 %v1258_v9, %v2495_v37 }
 0x1af   :  { %v2867_v3 = vpop.permute.xlu1 %826  ;;  %v2869_v41 = vpop.permute.xlu0 %668  ;;  %v587_v8 = vadd.f32 %v583_v58, %v568_v47  ;;  %v548_v52 = vsel %vm310_vm9, %v2586_v10, %v546_v20  ;;  %v1242_v47 = vmul.f32 %v2910_v55, %v1241_v18  ;;  %v582_v11 = vrot.slane %v2578_v62, 1 }
 0x1b0   :  { %v2876_v7 = vpop.permute.xlu2 %841  ;;  %v552_v6 = vadd.f32 %v548_v52, %v533_v28  ;;  %v619_v26 = vsel %vm384_vm11, %v2590_v12, %v617_v2  ;;  %v707_v20 = vadd.f32 %v705_v13, %v700_v54  ;;  %v1277_v13 = vstv %s2907_s29  ;;  %s2076_s29 = sld [smem:[#allocation4 + $0x5f]] }
 0x1b2   :  { %v726_v58 = vadd.f32 %v722_v16, %v707_v20  ;;  %v1278_v16 = vmul.f32 %v2910_v55, %v1277_v13 }
 0x1b5   :  { %1229 = vrot.lane.b32.xlu1 %v1224_v51, %s2243_s8  ;;  %1227 = vrot.lane.b32.xlu0 %v1223_v22, %s2243_s8  ;;  %v565_v51 = vsel %vm310_vm9, %v2818_v15, %v563_v32  ;;  %v604_v22 = vadd.f32 %v600_v27, %v587_v8  ;;  %v634_v32 = vrot.slane %v2836_v59, 1  ;;  %v756_v27 = vrot.slane %v2643_v24, 1 }
 0x1b6   :  { %1212 = vrot.lane.b32.xlu2 %v1207_v45, %s2243_s8  ;;  %v2917_v45 = vld [vmem:[#allocation2 + $0x3] sm:$0x7]  ;;  %v569_v15 = vadd.f32 %v565_v51, %v552_v6 }
 0x1b7   :  { %v2898_v44 = vpop.permute.xlu1 %771  ;;  %v736_v38 = vpop.permute.xlu0 %735  ;;  %v1243_v35 = vmul.f32 %v2917_v45, %v1241_v18  ;;  %v701_v10 = vmul.f32 %v2917_v45, %v699_v33  ;;  %v739_v18 = vsel %vm234_vm7, %v2822_v30, %v737_v17  ;;  %v623_v33 = vadd.f32 %v619_v26, %v604_v22 }
 0x1b8   :  { %v2905_v1 = vpop.permute.xlu2 %862  ;;  %v738_v50 = vrot.slane %v736_v38, 1  ;;  %v584_v30 = vsel %vm347_vm10, %v2578_v62, %v582_v11  ;;  %v743_v48 = vadd.f32 %v739_v18, %v726_v58  ;;  %v757_v17 = vrot.slane %v2602_v23, 1 }
 0x1b9   :  { %v708_v12 = vadd.f32 %v706_v21, %v701_v10  ;;  %v599_v21 = vrot.slane %v2816_v19, 1  ;;  %v588_v52 = vadd.f32 %v584_v30, %v569_v15  ;;  %v618_v62 = vrot.slane %v2612_v39, 1 }
 0x1ba   :  { %v740_v2 = vsel %vm234_vm7, %v736_v38, %v738_v50  ;;  %v636_v38 = vsel %vm384_vm11, %v2836_v59, %v634_v32  ;;  %v758_v6 = vsel %vm273_vm8, %v2643_v24, %v756_v27  ;;  %v792_v11 = vrot.slane %v2614_v42, 1 }
 0x1bb   :  { %v727_v8 = vadd.f32 %v723_v25, %v708_v12  ;;  %v640_v51 = vadd.f32 %v636_v38, %v623_v33  ;;  %v670_v59 = vrot.slane %v2798_v0, 1  ;;  %v601_v26 = vsel %vm347_vm10, %v2816_v19, %v599_v21 }
 0x1bc   :  { %v762_v10 = vadd.f32 %v758_v6, %v743_v48  ;;  %v759_v24 = vsel %vm273_vm8, %v2602_v23, %v757_v17  ;;  %v620_v12 = vsel %vm384_vm11, %v2612_v39, %v618_v62  ;;  %v1294_v23 = vstv %s2949_s2 }
 0x1bd   :  { %1263 = vrot.lane.b32.xlu1 %v1259_v36, %s2245_s11  ;;  %1248 = vrot.lane.b32.xlu0 %v1243_v35, %s2245_s11  ;;  %v653_v35 = vrot.slane %v2626_v5, 1  ;;  %v744_v22 = vadd.f32 %v740_v2, %v727_v8  ;;  %v1279_v36 = vmul.f32 %v2917_v45, %v1277_v13  ;;  %v793_v33 = vrot.slane %v2663_v14, 1 }
 0x1be   :  { %1246 = vrot.lane.b32.xlu2 %v1242_v47, %s2245_s11  ;;  %v1260_v47 = vmul.f32 %v1258_v9, %v2487_v29  ;;  %v605_v29 = vadd.f32 %v601_v26, %v588_v52  ;;  %v774_v9 = vrot.slane %v2898_v44, 1  ;;  %v672_v27 = vsel %vm421_vm12, %v2798_v0, %v670_v59 }
 0x1bf   :  { %v2942_v40 = vpop.permute.xlu1 %805  ;;  %v770_v28 = vpop.permute.xlu0 %769  ;;  %v655_v20 = vsel %vm421_vm12, %v2626_v5, %v653_v35  ;;  %v763_v25 = vadd.f32 %v759_v24, %v744_v22  ;;  %v794_v5 = vsel %vm310_vm9, %v2614_v42, %v792_v11  ;;  %v1295_v42 = vmul.f32 %v1294_v23, %v2495_v37 }
 0x1c0   :  { %v773_v54 = vrot.slane %v770_v28, 1  ;;  %v2946_v4 = vpop.permute.xlu2 %896  ;;  %v659_v32 = vadd.f32 %v655_v20, %v640_v51  ;;  %v624_v2 = vadd.f32 %v620_v12, %v605_v29  ;;  %v809_v13 = vrot.slane %v2942_v40, 1 }
 0x1c1   :  { %v654_v48 = vrot.slane %v2610_v34, 1  ;;  %v795_v17 = vsel %vm310_vm9, %v2663_v14, %v793_v33  ;;  %v671_v35 = vrot.slane %v2869_v41, 1 }
 0x1c2   :  { %v775_v50 = vsel %vm273_vm8, %v770_v28, %v773_v54  ;;  %v635_v28 = vrot.slane %v2775_v31, 1  ;;  %v776_v54 = vsel %vm273_vm8, %v2898_v44, %v774_v9  ;;  %v676_v21 = vadd.f32 %v672_v27, %v659_v32 }
 0x1c3   :  { %v779_v15 = vadd.f32 %v775_v50, %v762_v10  ;;  %v780_v30 = vadd.f32 %v776_v54, %v763_v25  ;;  %v810_v44 = vrot.slane %v2841_v43, 1  ;;  %v811_v38 = vsel %vm310_vm9, %v2942_v40, %v809_v13 }
 0x1c4   :  { %v637_v0 = vsel %vm384_vm11, %v2775_v31, %v635_v28  ;;  %v845_v31 = vrot.slane %v2876_v7, 1  ;;  %v656_v62 = vsel %vm421_vm12, %v2610_v34, %v654_v48  ;;  %v673_v6 = vsel %vm421_vm12, %v2869_v41, %v671_v35 }
 0x1c5   :  { %1284 = vrot.lane.b32.xlu1 %v1279_v36, %s2244_s10  ;;  %1282 = vrot.lane.b32.xlu0 %v1278_v16, %s2244_s10  ;;  %v798_v8 = vadd.f32 %v794_v5, %v779_v15  ;;  %v641_v52 = vadd.f32 %v637_v0, %v624_v2  ;;  %v799_v36 = vadd.f32 %v795_v17, %v780_v30  ;;  %v865_v15 = vrot.slane %v2905_v1, 1 }
 0x1c6   :  { %1265 = vrot.lane.b32.xlu2 %v1260_v47, %s2245_s11  ;;  %v812_v40 = vsel %vm310_vm9, %v2841_v43, %v810_v44  ;;  %v829_v47 = vrot.slane %v2867_v3, 1  ;;  %v847_v24 = vsel %vm347_vm10, %v2876_v7, %v845_v31 }
 0x1c7   :  { %v861_v19 = vpop.permute.xlu1 %860  ;;  %v825_v18 = vpop.permute.xlu0 %824  ;;  %v815_v51 = vadd.f32 %v811_v38, %v798_v8  ;;  %v660_v11 = vadd.f32 %v656_v62, %v641_v52  ;;  %v816_v26 = vadd.f32 %v812_v40, %v799_v36  ;;  %v867_v2 = vsel %vm384_vm11, %v2905_v1, %v865_v15 }
 0x1c8   :  { %v2981_v58 = vpop.permute.xlu2 %915  ;;  %v828_v39 = vrot.slane %v825_v18, 1  ;;  %v864_v20 = vrot.slane %v861_v19, 1  ;;  %v831_v34 = vsel %vm347_vm10, %v2867_v3, %v829_v47  ;;  %v951_v40 = vstv %s2050_s12  ;;  %s2093_s12 = sld [smem:[#allocation4 + $0xd]] }
 0x1c9   :  { %v677_v10 = vadd.f32 %v673_v6, %v660_v11  ;;  %v835_v9 = vadd.f32 %v831_v34, %v816_v26  ;;  %v918_v48 = vrot.slane %v2981_v58, 1  ;;  %v3056_v6 = vld [vmem:[#allocation2 + $0x9] sm:$0x7] }
 0x1ca   :  { %v830_v37 = vsel %vm347_vm10, %v825_v18, %v828_v39  ;;  %v900_v18 = vrot.slane %v2946_v4, 1  ;;  %v866_v32 = vsel %vm384_vm11, %v861_v19, %v864_v20 }
 0x1cb   :  { %v834_v50 = vadd.f32 %v830_v37, %v815_v51  ;;  %v920_v52 = vsel %vm421_vm12, %v2981_v58, %v918_v48  ;;  %v1330_v58 = vstv %s3045_s9  ;;  %s3312_s9 = sld [smem:[#allocation4 + $0x5]] }
 0x1cc   :  { %v902_v54 = vsel %vm421_vm12, %v2946_v4, %v900_v18 }
 0x1cd   :  { %682 = vrot.lane.b32.xlu1 %v676_v21, %s2248_s3  ;;  %v851_v29 = vadd.f32 %v847_v24, %v834_v50  ;;  %v1332_v50 = vmul.f32 %v3056_v6, %v1330_v58  ;;  %v946_v24 = vstv %s2049_s13  ;;  %s2082_s13 = sld [smem:[#allocation4 + $0x44]] }
 0x1ce   :  { %1299 = vrot.lane.b32.xlu2 %v1295_v42, %s2244_s10  ;;  %v948_v20 = vmul.f32 %v2917_v45, %v946_v24 }
 0x1cf   :  { %v880_v22 = vpop.permute.xlu1 %879  ;;  %v844_v14 = vpop.permute.xlu0 %843  ;;  %v870_v33 = vadd.f32 %v866_v32, %v851_v29  ;;  %v947_v32 = vmul.f32 %v2910_v55, %v946_v24 }
 0x1d0   :  { %v3008_v16 = vpop.permute.xlu2 %963  ;;  %v846_v59 = vrot.slane %v844_v14, 1  ;;  %v882_v13 = vrot.slane %v880_v22, 1 }
 0x1d1   :  { %v967_v29 = vrot.slane %v3008_v16, 1 }
 0x1d2   :  { %v848_v41 = vsel %vm347_vm10, %v844_v14, %v846_v59  ;;  %v884_v17 = vsel %vm384_vm11, %v880_v22, %v882_v13  ;;  %v1313_v22 = vstv %s3038_s7  ;;  %v953_v59 = vmul.f32 %v3056_v6, %v951_v40  ;;  %s3224_s7 = sld [smem:[#allocation4 + $0x52]] }
 0x1d3   :  { %v852_v7 = vadd.f32 %v848_v41, %v835_v9  ;;  %v1314_v36 = vmul.f32 %v2910_v55, %v1313_v22  ;;  %v1366_v41 = vstv %s3053_s24  ;;  %v3069_v9 = vld [vmem:[#allocation2 + $0x6] sm:$0x7]  ;;  %s2099_s24 = sld [smem:[#allocation4 + $0x22]] }
 0x1d5   :  { %v871_v39 = vadd.f32 %v867_v2, %v852_v7  ;;  %v1367_v7 = vmul.f32 %v3069_v9, %v1366_v41 }
 0x1d6   :  { %684 = vrot.lane.b32.xlu2 %v677_v10, %s2248_s3 }
 0x1d7   :  { %v914_v25 = vpop.permute.xlu1 %913  ;;  %v878_v43 = vpop.permute.xlu0 %877  ;;  %v888_v35 = vadd.f32 %v884_v17, %v871_v39 }
 0x1d8   :  { %v881_v12 = vrot.slane %v878_v43, 1  ;;  %v3025_v5 = vpop.permute.xlu2 %982  ;;  %v917_v28 = vrot.slane %v914_v25, 1 }
 0x1d9   :  { %v985_v15 = vrot.slane %v3025_v5, 1 }
 0x1da   :  { %v883_v3 = vsel %vm384_vm11, %v878_v43, %v881_v12  ;;  %v919_v19 = vsel %vm421_vm12, %v914_v25, %v917_v28  ;;  %v952_v25 = vmul.f32 %v3069_v9, %v951_v40  ;;  %v955_v43 = vadd.f32 %v953_v59, %v948_v20 }
 0x1db   :  { %v887_v27 = vadd.f32 %v883_v3, %v870_v33  ;;  %v969_v33 = vsel %vm234_vm7, %v3008_v16, %v967_v29 }
 0x1dc   :  { %v954_v3 = vadd.f32 %v952_v25, %v947_v32 }
 0x1dd   :  { %v906_v30 = vadd.f32 %v902_v54, %v887_v27  ;;  %v987_v54 = vsel %vm234_vm7, %v3025_v5, %v985_v15 }
 0x1df   :  { %v981_v8 = vpop.permute.xlu1 %980  ;;  %v899_v21 = vpop.permute.xlu0 %898  ;;  %v923_v42 = vadd.f32 %v919_v19, %v906_v30  ;;  %v973_v19 = vadd.f32 %v969_v33, %v954_v3 }
 0x1e0   :  { %v901_v0 = vrot.slane %v899_v21, 1  ;;  %v3036_v44 = vpop.permute.xlu2 %1016  ;;  %v984_v18 = vrot.slane %v981_v8, 1 }
 0x1e1   :  { %929 = vrot.lane.b32.xlu0 %v923_v42, %s2249_s6  ;;  %v1020_v17 = vrot.slane %v3036_v44, 1 }
 0x1e2   :  { %v903_v1 = vsel %vm421_vm12, %v899_v21, %v901_v0  ;;  %v986_v13 = vsel %vm234_vm7, %v981_v8, %v984_v18 }
 0x1e3   :  { %v907_v4 = vadd.f32 %v903_v1, %v888_v35  ;;  %v990_v48 = vadd.f32 %v986_v13, %v973_v19  ;;  %v1385_v1 = vstv %s3073_s0  ;;  %s3405_s0 = sld [smem:[#allocation4 + $0x37]] }
 0x1e4   :  { %v1387_v5 = vmul.f32 %v2917_v45, %v1385_v1 }
 0x1e5   :  { %v924_v38 = vadd.f32 %v920_v52, %v907_v4 }
 0x1e7   :  { %v1002_v37 = vpop.permute.xlu1 %1001  ;;  %v966_v51 = vpop.permute.xlu0 %965  ;;  %931 = vrot.lane.b32.xlu1 %v924_v38, %s2249_s6  ;;  %s3203_s6 = sld [smem:[#allocation4 + $0x4b]] }
 0x1e8   :  { %v3043_v14 = vpop.permute.xlu2 %1037  ;;  %v968_v47 = vrot.slane %v966_v51, 1  ;;  %v1004_v39 = vrot.slane %v1002_v37, 1 }
 0x1e9   :  { %v1040_v8 = vrot.slane %v3043_v14, 1 }
 0x1ea   :  { %v970_v34 = vsel %vm234_vm7, %v966_v51, %v968_v47  ;;  %v1006_v0 = vsel %vm273_vm8, %v1002_v37, %v1004_v39 }
 0x1eb   :  { %v974_v12 = vadd.f32 %v970_v34, %v955_v43  ;;  %v1042_v47 = vsel %vm310_vm9, %v3043_v14, %v1040_v8 }
 0x1ed   :  { %v991_v21 = vadd.f32 %v987_v54, %v974_v12 }
 0x1ef   :  { %v3050_v31 = vpop.permute.xlu1 %1035  ;;  %v1000_v62 = vpop.permute.xlu0 %999  ;;  %1318 = vrot.lane.b32.xlu1 %v1314_v36, %s2246_s20  ;;  %v1010_v52 = vadd.f32 %v1006_v0, %v991_v21 }
 0x1f0   :  { %v3061_v11 = vpop.permute.xlu2 %1071  ;;  %v1003_v28 = vrot.slane %v1000_v62, 1  ;;  %v1039_v37 = vrot.slane %v3050_v31, 1 }
 0x1f1   :  { %v1075_v43 = vrot.slane %v3061_v11, 1 }
 0x1f2   :  { %v1005_v16 = vsel %vm273_vm8, %v1000_v62, %v1003_v28  ;;  %v1022_v62 = vsel %vm273_vm8, %v3036_v44, %v1020_v17  ;;  %v1041_v29 = vsel %vm310_vm9, %v3050_v31, %v1039_v37 }
 0x1f3   :  { %v1009_v4 = vadd.f32 %v1005_v16, %v990_v48  ;;  %v1077_v28 = vsel %vm347_vm10, %v3061_v11, %v1075_v43  ;;  %v1296_v43 = vmul.f32 %v3056_v6, %v1294_v23 }
 0x1f5   :  { %v1026_v40 = vadd.f32 %v1022_v62, %v1009_v4 }
 0x1f7   :  { %v1055_v26 = vpop.permute.xlu1 %1054  ;;  %v1019_v10 = vpop.permute.xlu0 %1018  ;;  %1337 = vrot.lane.b32.xlu1 %v1332_v50, %s2246_s20  ;;  %v1045_v25 = vadd.f32 %v1041_v29, %v1026_v40 }
 0x1f8   :  { %v1021_v30 = vrot.slane %v1019_v10, 1  ;;  %v1091_v42 = vpop.permute.xlu2 %1090  ;;  %v1057_v59 = vrot.slane %v1055_v26, 1 }
 0x1fa   :  { %v1023_v35 = vsel %vm273_vm8, %v1019_v10, %v1021_v30  ;;  %v1059_v44 = vsel %vm310_vm9, %v1055_v26, %v1057_v59 }
 0x1fb   :  { %v1027_v38 = vadd.f32 %v1023_v35, %v1010_v52 }
 0x1fd   :  { %v1046_v24 = vadd.f32 %v1042_v47, %v1027_v38 }
 0x1ff   :  { %v1089_v27 = vpop.permute.xlu1 %1088  ;;  %v1053_v2 = vpop.permute.xlu0 %1052  ;;  %1371 = vrot.lane.b32.xlu1 %v1367_v7, %s2247_s25  ;;  %v1063_v32 = vadd.f32 %v1059_v44, %v1046_v24  ;;  %v1093_v7 = vrot.slane %v1091_v42, 1  ;;  %v1315_v44 = vmul.f32 %v2917_v45, %v1313_v22 }
 0x200   :  { %v1056_v50 = vrot.slane %v1053_v2, 1  ;;  %v1125_v20 = vpop.permute.xlu2 %1124  ;;  %v1092_v3 = vrot.slane %v1089_v27, 1 }
 0x201   :  { %v1128_v17 = vrot.slane %v1125_v20, 1 }
 0x202   :  { %v1058_v34 = vsel %vm310_vm9, %v1053_v2, %v1056_v50  ;;  %v1095_v2 = vsel %vm347_vm10, %v1091_v42, %v1093_v7  ;;  %v1094_v26 = vsel %vm347_vm10, %v1089_v27, %v1092_v3 }
 0x203   :  { %v1062_v18 = vadd.f32 %v1058_v34, %v1045_v25  ;;  %v1130_v38 = vsel %vm384_vm11, %v1125_v20, %v1128_v17 }
 0x205   :  { %v1081_v54 = vadd.f32 %v1077_v28, %v1062_v18  ;;  %v1331_v18 = vmul.f32 %v3069_v9, %v1330_v58  ;;  %v445_v28 = vld [vmem:[#allocation6] sm:$0x3] }
 0x206   :  { %v446_v3 = vmul.f32 %v445_v28, %v2786_v49 }
 0x207   :  { %v1110_v51 = vpop.permute.xlu1 %1109  ;;  %v1074_v36 = vpop.permute.xlu0 %1073  ;;  %1392 = vrot.lane.b32.xlu1 %v1387_v5, %s2236_s26  ;;  %v1098_v21 = vadd.f32 %v1094_v26, %v1081_v54  ;;  %v1386_v54 = vmul.f32 %v2910_v55, %v1385_v1 }
 0x208   :  { %v1076_v10 = vrot.slane %v1074_v36, 1  ;;  %v1112_v13 = vrot.slane %v1110_v51, 1  ;;  %v1146_v30 = vpop.permute.xlu2 %1145 }
 0x209   :  { %v1148_v35 = vrot.slane %v1146_v30, 1 }
 0x20a   :  { %v1078_v15 = vsel %vm347_vm10, %v1074_v36, %v1076_v10  ;;  %v1114_v0 = vsel %vm384_vm11, %v1110_v51, %v1112_v13 }
 0x20b   :  { %v1082_v33 = vadd.f32 %v1078_v15, %v1063_v32  ;;  %v1150_v27 = vsel %vm421_vm12, %v1146_v30, %v1148_v35  ;;  %v1349_v32 = vstv %s2073_s28  ;;  %v3579_v35 = vstv %s2361_s14  ;;  %s3188_s14 = sld [smem:[#allocation4 + $0x3e]]  ;;  %s2254_s28 = smov [#allocation11]  }
 0x20c   :  { %v1350_v23 = vmul.f32 %v2910_v55, %v1349_v32  ;;  %v1351_v7 = vmul.f32 %v2917_v45, %v1349_v32 }
 0x20d   :  { %v1099_v39 = vadd.f32 %v1095_v2, %v1082_v33  ;;  %v1368_v33 = vmul.f32 %v3056_v6, %v1366_v41  ;;  %v201_v2 = vstv %s3559_s1  ;;  %v679_v41 = vld [vmem:[#allocation6 + $0x2] sm:$0x3]  ;;  %s3173_s1 = sld [smem:[#allocation4 + $0x3d]] }
 0x20e   :  { %v448_v49 = vadd.f32 %v446_v3, %v201_v2  ;;  %v1541_v3 = vstv %s3203_s6 }
 0x20f   :  { %v1144_v12 = vpop.permute.xlu1 %1143  ;;  %v1108_v14 = vpop.permute.xlu0 %1107  ;;  %v1118_v52 = vadd.f32 %v1114_v0, %v1099_v39  ;;  %v1402_v39 = vstv %s2076_s29  ;;  %s1992_s29 = sshll.u32 %s2254_s28, 4  ;;  %s1993_s29 = int_to_ptr.vmem [resolvable:$true] %s1992_s29 }
 0x210   :  { %v1111_v31 = vrot.slane %v1108_v14, 1  ;;  %v1147_v36 = vrot.slane %v1144_v12, 1  ;;  %v3120_v34 = vpop.permute.xlu2 %1212 }
 0x212   :  { %v1113_v19 = vsel %vm384_vm11, %v1108_v14, %v1111_v31  ;;  %v1149_v59 = vsel %vm421_vm12, %v1144_v12, %v1147_v36  ;;  %v447_v36 = vmul.f32 %v445_v28, %v2788_v46 }
 0x213   :  { %v1117_v4 = vadd.f32 %v1113_v19, %v1098_v21  ;;  %v1403_v21 = vmul.f32 %v3069_v9, %v1402_v39 }
 0x215   :  { %v1134_v62 = vadd.f32 %v1130_v38, %v1117_v4 }
 0x217   :  { %v1163_v16 = vpop.permute.xlu1 %1162  ;;  %v1127_v48 = vpop.permute.xlu0 %1126  ;;  %v1153_v24 = vadd.f32 %v1149_v59, %v1134_v62 }
 0x218   :  { %v1129_v11 = vrot.slane %v1127_v48, 1  ;;  %v1165_v5 = vrot.slane %v1163_v16, 1  ;;  %v3137_v12 = vpop.permute.xlu2 %1246 }
 0x21a   :  { %v1131_v42 = vsel %vm384_vm11, %v1127_v48, %v1129_v11  ;;  %v1167_v50 = vsel %vm421_vm12, %v1163_v16, %v1165_v5  ;;  %v1404_v48 = vmul.f32 %v3056_v6, %v1402_v39  ;;  %v1453_v11 = vmul.f32 %v2910_v55, %v3579_v35  ;;  %v926_v5 = vld [vmem:[#allocation6 + $0x4] sm:$0x3] }
 0x21b   :  { %v1135_v8 = vadd.f32 %v1131_v42, %v1118_v52 }
 0x21d   :  { %v1154_v37 = vadd.f32 %v1150_v27, %v1135_v8  ;;  %v1469_v27 = vstv %s3173_s1  ;;  %s1994_s1 = sshll.u32 %s3562_s4, 4  ;;  %s1995_s1 = int_to_ptr.hbm [resolvable:$true] %s1994_s1 }
 0x21f   :  { %v3116_v40 = vpop.permute.xlu1 %1210  ;;  %v1161_v51 = vpop.permute.xlu0 %1160  ;;  %v1171_v47 = vadd.f32 %v1167_v50, %v1154_v37  ;;  %v1471_v37 = vmul.f32 %v3056_v6, %v1469_v27 }
 0x220   :  { %v1164_v10 = vrot.slane %v1161_v51, 1  ;;  %v3148_v58 = vpop.permute.xlu2 %1265 }
 0x221   :  { %1178 = vrot.lane.b32.xlu0 %v1171_v47, %s2250_s27 }
 0x222   :  { %v1166_v20 = vsel %vm421_vm12, %v1161_v51, %v1164_v10  ;;  %v449_v10 = vadd.f32 %v447_v36, %v201_v2  ;;  %v1173_v2 = vld [vmem:[#allocation6 + $0x6] sm:$0x3] }
 0x223   :  { %v1170_v29 = vadd.f32 %v1166_v20, %v1153_v24 }
 0x225   :  { %1176 = vrot.lane.b32.xlu2 %v1170_v29, %s2250_s27  ;;  %s3430_s27 = sld [smem:[#allocation4 + $0x61]] }
 0x227   :  { %v3122_v25 = vpop.permute.xlu1 %1229  ;;  %v3142_v14 = vpop.permute.xlu0 %1227 }
 0x228   :  { %v3166_v1 = vpop.permute.xlu2 %1299 }
 0x229   :  { %1301 = vrot.lane.b32.xlu0 %v1296_v43, %s2244_s10  ;;  %v3580_v43 = vstv %s2364_s15  ;;  %s3215_s15 = sld [smem:[#allocation4 + $0x4c]] }
 0x22d   :  { %1320 = vrot.lane.b32.xlu2 %v1315_v44, %s2246_s20  ;;  %v1489_v44 = vmul.f32 %v2910_v55, %v3580_v43 }
 0x22f   :  { %v3132_v15 = vpop.permute.xlu1 %1263  ;;  %v3161_v30 = vpop.permute.xlu0 %1248 }
 0x230   :  { %v685_v0 = vpop.permute.xlu2 %684 }
 0x231   :  { %1335 = vrot.lane.b32.xlu0 %v1331_v18, %s2246_s20  ;;  %v687_v4 = vrot.slane %v685_v0, 1  ;;  %v1716_v18 = vstv %s3188_s14 }
 0x232   :  { %v1718_v32 = vmul.f32 %v3056_v6, %v1716_v18 }
 0x233   :  { %v690_v8 = vsel %vm688_vm13, %v685_v0, %v687_v4  ;;  %v1214_v4 = vrot.slane %v3116_v40, 1 }
 0x234   :  { %v694_v50 = vmul.f32 %v690_v8, %v679_v41 }
 0x235   :  { %1354 = vrot.lane.b32.xlu2 %v1350_v23, %s2247_s25  ;;  %v3581_v23 = vstv %s2366_s16  ;;  %s2064_s16 = sld [smem:[#allocation4 + $0x35]] }
 0x236   :  { %v696_v20 = vadd.f32 %v694_v50, %v449_v10 }
 0x237   :  { %v3144_v22 = vpop.permute.xlu1 %1284  ;;  %v3171_v17 = vpop.permute.xlu0 %1282 }
 0x239   :  { %1356 = vrot.lane.b32.xlu0 %v1351_v7, %s2247_s25  ;;  %v1736_v7 = vmul.f32 %v2910_v55, %v3581_v23  ;;  %v1250_v23 = vrot.slane %v3137_v12, 1 }
 0x23d   :  { %1373 = vrot.lane.b32.xlu2 %v1368_v33, %s2247_s25  ;;  %v3582_v33 = vstv %s2368_s17  ;;  %s2063_s17 = sld [smem:[#allocation4 + $0x4]] }
 0x23e   :  { %v1526_v28 = vmul.f32 %v2917_v45, %v3582_v33 }
 0x23f   :  { %v683_v31 = vpop.permute.xlu1 %682 }
 0x240   :  { %v686_v13 = vrot.slane %v683_v31, 1 }
 0x241   :  { %1390 = vrot.lane.b32.xlu0 %v1386_v54, %s2236_s26  ;;  %v1542_v54 = vmul.f32 %v3069_v9, %v1541_v3 }
 0x242   :  { %v689_v26 = vsel %vm688_vm13, %v683_v31, %v686_v13 }
 0x243   :  { %v693_v19 = vmul.f32 %v689_v26, %v679_v41 }
 0x245   :  { %v695_v16 = vadd.f32 %v693_v19, %v448_v49  ;;  %1407 = vrot.lane.b32.xlu2 %v1403_v21, %s2236_s26  ;;  %v3583_v49 = vstv %s2372_s18  ;;  %v1788_v21 = vstv %s3215_s15  ;;  %s3260_s18 = sld [smem:[#allocation4 + $0x53]] }
 0x246   :  { %v1773_v19 = vmul.f32 %v2917_v45, %v3583_v49 }
 0x249   :  { %1409 = vrot.lane.b32.xlu0 %v1404_v48, %s2236_s26  ;;  %v1198_v48 = vstv %s2064_s16 }
 0x251   :  { %1457 = vrot.lane.b32.xlu0 %v1453_v11, %s2243_s8  ;;  %v1193_v11 = vstv %s2063_s17 }
 0x252   :  { %v1194_v36 = vmul.f32 %v2910_v55, %v1193_v11  ;;  %v1195_v43 = vmul.f32 %v2917_v45, %v1193_v11 }
 0x253   :  { %v930_v52 = vpop.permute.xlu0 %929 }
 0x254   :  { %v933_v42 = vrot.slane %v930_v52, 1 }
 0x256   :  { %v936_v38 = vsel %vm935_vm14, %v930_v52, %v933_v42  ;;  %v1231_v42 = vrot.slane %v3142_v14, 1 }
 0x257   :  { %v940_v62 = vmul.f32 %v936_v38, %v926_v5  ;;  %v1577_v38 = vstv %s3224_s7 }
 0x258   :  { %v1579_v50 = vmul.f32 %v3056_v6, %v1577_v38 }
 0x259   :  { %v942_v51 = vadd.f32 %v940_v62, %v695_v16  ;;  %v932_v47 = vpop.permute.xlu1 %931  ;;  %1476 = vrot.lane.b32.xlu0 %v1471_v37, %s2243_s8  ;;  %v1789_v16 = vmul.f32 %v3069_v9, %v1788_v21 }
 0x25a   :  { %v934_v59 = vrot.slane %v932_v47, 1 }
 0x25c   :  { %v937_v24 = vsel %vm935_vm14, %v932_v47, %v934_v59  ;;  %v1216_v47 = vsel %vm234_vm7, %v3116_v40, %v1214_v4  ;;  %v1200_v59 = vmul.f32 %v3056_v6, %v1198_v48 }
 0x25d   :  { %v941_v29 = vmul.f32 %v937_v24, %v926_v5  ;;  %v1199_v5 = vmul.f32 %v3069_v9, %v1198_v48  ;;  %v1268_v48 = vrot.slane %v3148_v58, 1 }
 0x25e   :  { %v1202_v33 = vadd.f32 %v1200_v59, %v1195_v43 }
 0x25f   :  { %v943_v46 = vadd.f32 %v941_v29, %v696_v20  ;;  %v1201_v10 = vadd.f32 %v1199_v5, %v1194_v36  ;;  %v1232_v20 = vrot.slane %v3122_v25, 1  ;;  %v1233_v29 = vsel %vm234_vm7, %v3142_v14, %v1231_v42 }
 0x260   :  { %v1286_v14 = vrot.slane %v3171_v17, 1 }
 0x261   :  { %1493 = vrot.lane.b32.xlu0 %v1489_v44, %s2245_s11  ;;  %v1319_v62 = vpop.permute.xlu1 %1318  ;;  %v1220_v44 = vadd.f32 %v1216_v47, %v1201_v10 }
 0x269   :  { %1723 = vrot.lane.b32.xlu0 %v1718_v32, %s2243_s8 }
 0x271   :  { %1740 = vrot.lane.b32.xlu0 %v1736_v7, %s2245_s11  ;;  %v1251_v7 = vrot.slane %v3161_v30, 1 }
 0x273   :  { %v1253_v49 = vsel %vm273_vm8, %v3161_v30, %v1251_v7  ;;  %v1322_v30 = vrot.slane %v1319_v62, 1 }
 0x275   :  { %v1324_v10 = vsel %vm347_vm10, %v1319_v62, %v1322_v30 }
 0x279   :  { %1531 = vrot.lane.b32.xlu0 %v1526_v28, %s2244_s10  ;;  %v1237_v28 = vadd.f32 %v1233_v29, %v1220_v44 }
 0x27f   :  { %v1177_v31 = vpop.permute.xlu2 %1176 }
 0x280   :  { %v1180_v13 = vrot.slane %v1177_v31, 1 }
 0x281   :  { %1546 = vrot.lane.b32.xlu0 %v1542_v54, %s2244_s10  ;;  %v1234_v54 = vsel %vm234_vm7, %v3122_v25, %v1232_v20  ;;  %v1338_v25 = vpop.permute.xlu1 %1337 }
 0x282   :  { %v1183_v39 = vsel %vm1182_vm15, %v1177_v31, %v1180_v13  ;;  %v3584_v13 = vstv %s2375_s19  ;;  %s3302_s19 = sld [smem:[#allocation4 + $0x60]] }
 0x283   :  { %v1187_v41 = vmul.f32 %v1183_v39, %v1173_v2  ;;  %v1252_v39 = vsel %vm273_vm8, %v3137_v12, %v1250_v23  ;;  %v1288_v12 = vsel %vm310_vm9, %v3171_v17, %v1286_v14 }
 0x285   :  { %v3217_v26 = vadd.f32 %v1187_v41, %v942_v51  ;;  %v1215_v51 = vrot.slane %v3120_v34, 1 }
 0x287   :  { %v3230_v0 = vpop.permute.xlu2 %1320  ;;  %v1217_v40 = vsel %vm234_vm7, %v3120_v34, %v1215_v51  ;;  %v1597_v34 = vmul.f32 %v2910_v55, %v3584_v13 }
 0x289   :  { %1778 = vrot.lane.b32.xlu0 %v1773_v19, %s2244_s10 }
 0x28f   :  { %v1355_v31 = vpop.permute.xlu2 %1354 }
 0x290   :  { %v1358_v7 = vrot.slane %v1355_v31, 1 }
 0x291   :  { %1793 = vrot.lane.b32.xlu0 %v1789_v16, %s2244_s10  ;;  %v1256_v16 = vadd.f32 %v1252_v39, %v1237_v28 }
 0x292   :  { %v1360_v13 = vsel %vm384_vm11, %v1355_v31, %v1358_v7 }
 0x293   :  { %v1179_v35 = vpop.permute.xlu0 %1178 }
 0x294   :  { %v1181_v52 = vrot.slane %v1179_v35, 1 }
 0x296   :  { %v1184_v8 = vsel %vm1182_vm15, %v1179_v35, %v1181_v52  ;;  %v1287_v35 = vrot.slane %v3144_v22, 1  ;;  %v1303_v52 = vrot.slane %v3166_v1, 1 }
 0x297   :  { %v1188_v37 = vmul.f32 %v1184_v8, %v1173_v2  ;;  %v1221_v2 = vadd.f32 %v1217_v40, %v1202_v33  ;;  %v1270_v8 = vsel %vm273_vm8, %v3148_v58, %v1268_v48  ;;  %v1374_v47 = vpop.permute.xlu2 %1373  ;;  %v1372_v40 = vpop.permute.xlu1 %1371 }
 0x298   :  { %v1289_v36 = vsel %vm310_vm9, %v3144_v22, %v1287_v35  ;;  %v1305_v59 = vsel %vm310_vm9, %v3166_v1, %v1303_v52  ;;  %v1323_v22 = vrot.slane %v3230_v0, 1  ;;  %v1340_v1 = vrot.slane %v1338_v25, 1 }
 0x299   :  { %v3245_v24 = vadd.f32 %v1188_v37, %v943_v46  ;;  %1584 = vrot.lane.b32.xlu0 %v1579_v50, %s2246_s20  ;;  %v1267_v46 = vrot.slane %v3132_v15, 1  ;;  %v1238_v19 = vadd.f32 %v1234_v54, %v1221_v2  ;;  %v1824_v50 = vstv %s3260_s18 }
 0x29a   :  { %v1826_v17 = vmul.f32 %v3056_v6, %v1824_v50  ;;  %v1325_v62 = vsel %vm347_vm10, %v3230_v0, %v1323_v22  ;;  %v3585_v54 = vstv %s2379_s21  ;;  %v1375_v2 = vrot.slane %v1372_v40, 1  ;;  %s3305_s21 = sld [smem:[#allocation4 + $0x36]] }
 0x29b   :  { %v1302_v32 = vpop.permute.xlu0 %1301  ;;  %v1269_v41 = vsel %vm273_vm8, %v3132_v15, %v1267_v46  ;;  %v1257_v4 = vadd.f32 %v1253_v49, %v1238_v19  ;;  %v1844_v14 = vmul.f32 %v2910_v55, %v3585_v54  ;;  %v1376_v48 = vrot.slane %v1374_v47, 1 }
 0x29c   :  { %v1273_v11 = vadd.f32 %v1269_v41, %v1256_v16  ;;  %v1304_v5 = vrot.slane %v1302_v32, 1  ;;  %v1342_v41 = vsel %vm347_vm10, %v1338_v25, %v1340_v1  ;;  %v1377_v0 = vsel %vm384_vm11, %v1372_v40, %v1375_v2 }
 0x29d   :  { %v1274_v51 = vadd.f32 %v1270_v8, %v1257_v4  ;;  %v3586_v52 = vstv %s2382_s22  ;;  %s2251_s22 = smov 124   ;;  %v1699_v1 = vstv %s2093_s12  ;;  %v1470_v54 = vmul.f32 %v3069_v9, %v1469_v27 }
 0x29e   :  { %v1292_v42 = vadd.f32 %v1288_v12, %v1273_v11  ;;  %v1306_v20 = vsel %vm310_vm9, %v1302_v32, %v1304_v5  ;;  %v1634_v30 = vmul.f32 %v2917_v45, %v3586_v52  ;;  %v1505_v2 = vstv %s2082_s13 }
 0x29f   :  { %v1293_v29 = vadd.f32 %v1289_v36, %v1274_v51  ;;  %v1393_v11 = vpop.permute.xlu1 %1392  ;;  %v1717_v27 = vmul.f32 %v3069_v9, %v1716_v18 }
 0x2a0   :  { %v1309_v58 = vadd.f32 %v1305_v59, %v1292_v42  ;;  %v1395_v5 = vrot.slane %v1393_v11, 1  ;;  %v1378_v42 = vsel %vm384_vm11, %v1374_v47, %v1376_v48 }
 0x2a1   :  { %1601 = vrot.lane.b32.xlu0 %v1597_v34, %s2247_s25  ;;  %v1310_v23 = vadd.f32 %v1306_v20, %v1293_v29  ;;  %v1408_v34 = vpop.permute.xlu2 %1407  ;;  %v1445_v29 = vstv %s3305_s21 }
 0x2a2   :  { %v1328_v44 = vadd.f32 %v1324_v10, %v1309_v58  ;;  %v1411_v35 = vrot.slane %v1408_v34, 1  ;;  %v1649_v10 = vstv %s3302_s19 }
 0x2a3   :  { %v1336_v15 = vpop.permute.xlu0 %1335  ;;  %v1329_v28 = vadd.f32 %v1325_v62, %v1310_v23  ;;  %v1650_v22 = vmul.f32 %v3069_v9, %v1649_v10 }
 0x2a4   :  { %v1339_v37 = vrot.slane %v1336_v15, 1  ;;  %v1413_v8 = vsel %vm421_vm12, %v1408_v34, %v1411_v35  ;;  %v1543_v34 = vmul.f32 %v3056_v6, %v1541_v3  ;;  %v1790_v3 = vmul.f32 %v3056_v6, %v1788_v21 }
 0x2a5   :  { %v1346_v19 = vadd.f32 %v1342_v41, %v1329_v28  ;;  %v3375_v41 = vld [vmem:[#allocation2 + $0x3] sm:$0x7] }
 0x2a6   :  { %v1341_v43 = vsel %vm347_vm10, %v1336_v15, %v1339_v37 }
 0x2a7   :  { %v1345_v33 = vadd.f32 %v1341_v43, %v1328_v44  ;;  %v1440_v43 = vstv %s3312_s9  ;;  %v1446_v44 = vmul.f32 %v3069_v9, %v1445_v29 }
 0x2a8   :  { %v1441_v40 = vmul.f32 %v2910_v55, %v1440_v43 }
 0x2a9   :  { %1831 = vrot.lane.b32.xlu0 %v1826_v17, %s2246_s20  ;;  %v1364_v39 = vadd.f32 %v1360_v13, %v1345_v33  ;;  %v1397_v17 = vsel %vm421_vm12, %v1393_v11, %v1395_v5  ;;  %v1506_v13 = vmul.f32 %v3069_v9, %v1505_v2 }
 0x2aa   :  { %v1448_v7 = vadd.f32 %v1446_v44, %v1441_v40 }
 0x2ab   :  { %v1357_v46 = vpop.permute.xlu0 %1356  ;;  %v1381_v4 = vadd.f32 %v1377_v0, %v1364_v39 }
 0x2ac   :  { %v1359_v32 = vrot.slane %v1357_v46, 1 }
 0x2ae   :  { %v1361_v49 = vsel %vm384_vm11, %v1357_v46, %v1359_v32  ;;  %v3587_v32 = vstv %s2384_s23  ;;  %s2096_s23 = sld [smem:[#allocation4 + $0x45]] }
 0x2af   :  { %v1365_v31 = vadd.f32 %v1361_v49, %v1346_v19  ;;  %v1881_v28 = vmul.f32 %v2917_v45, %v3587_v32  ;;  %v1578_v19 = vmul.f32 %v3069_v9, %v1577_v38  ;;  %v1825_v38 = vmul.f32 %v3069_v9, %v1824_v50 }
 0x2b1   :  { %1848 = vrot.lane.b32.xlu0 %v1844_v14, %s2247_s25  ;;  %v1382_v36 = vadd.f32 %v1378_v42, %v1365_v31  ;;  %v1701_v14 = vmul.f32 %v2917_v45, %v1699_v1  ;;  %v1420_v31 = vld [vmem:[#allocation6 + $0x8] sm:$0x3] }
 0x2b3   :  { %v1391_v16 = vpop.permute.xlu0 %1390  ;;  %v1401_v47 = vadd.f32 %v1397_v17, %v1382_v36 }
 0x2b4   :  { %v1394_v12 = vrot.slane %v1391_v16, 1 }
 0x2b6   :  { %v1396_v15 = vsel %vm421_vm12, %v1391_v16, %v1394_v12 }
 0x2b7   :  { %v1400_v25 = vadd.f32 %v1396_v15, %v1381_v4 }
 0x2b9   :  { %1639 = vrot.lane.b32.xlu0 %v1634_v30, %s2236_s26  ;;  %v1417_v37 = vadd.f32 %v1413_v8, %v1400_v25  ;;  %v3588_v30 = vld [vmem:[#allocation16_spill] sm:$0xff] }
 0x2bb   :  { %v1410_v51 = vpop.permute.xlu0 %1409  ;;  %1423 = vrot.lane.b32.xlu1 %v1417_v37, %s2251_s22 }
 0x2bc   :  { %v1412_v59 = vrot.slane %v1410_v51, 1 }
 0x2be   :  { %v1414_v20 = vsel %vm421_vm12, %v1410_v51, %v1412_v59  ;;  %v1692_v59 = vstv %s3405_s0 }
 0x2bf   :  { %v1418_v58 = vadd.f32 %v1414_v20, %v1401_v47  ;;  %v3589_v47 = vld [vmem:[#allocation17_spill] sm:$0xff] }
 0x2c1   :  { %1654 = vrot.lane.b32.xlu0 %v1650_v22, %s2236_s26  ;;  %1425 = vrot.lane.b32.xlu2 %v1418_v58, %s2251_s22  ;;  %v1694_v58 = vmul.f32 %v3056_v6, %v1692_v59 }
 0x2c3   :  { %v1458_v23 = vpop.permute.xlu0 %1457  ;;  %1459 = vrot.lane.b32.xlu1 %v2403_v53, %s2243_s8  ;;  %v1700_v53 = vmul.f32 %v2910_v55, %v1699_v1  ;;  %v1507_v55 = vmul.f32 %v3056_v6, %v1505_v2 }
 0x2c4   :  { %v1461_v46 = vrot.slane %v1458_v23, 1 }
 0x2c6   :  { %v1463_v33 = vsel %vm234_vm7, %v1458_v23, %v1461_v46 }
 0x2c7   :  { %v3333_v62 = vadd.f32 %v1463_v33, %v1448_v7 }
 0x2c9   :  { %1886 = vrot.lane.b32.xlu0 %v1881_v28, %s2236_s26  ;;  %1474 = vrot.lane.b32.xlu2 %v1470_v54, %s2243_s8 }
 0x2cb   :  { %1704 = vrot.lane.b32.xlu1 %v1700_v53, %s2243_s8  ;;  %v3386_v16 = vpop.permute.xlu0 %1476 }
 0x2d1   :  { %1706 = vrot.lane.b32.xlu2 %v1701_v14, %s2243_s8 }
 0x2d3   :  { %1495 = vrot.lane.b32.xlu1 %v2411_v56, %s2245_s11  ;;  %v1752_v56 = vstv %s2096_s23  ;;  %v1494_v21 = vpop.permute.xlu0 %1493 }
 0x2d4   :  { %v1753_v45 = vmul.f32 %v3069_v9, %v1752_v56  ;;  %v1754_v18 = vmul.f32 %v3056_v6, %v1752_v56  ;;  %v1497_v42 = vrot.slane %v1494_v21, 1 }
 0x2d9   :  { %1721 = vrot.lane.b32.xlu2 %v1717_v27, %s2243_s8  ;;  %s2085_s8 = sld [smem:[#allocation4 + $0x21]] }
 0x2db   :  { %1510 = vrot.lane.b32.xlu1 %v1506_v13, %s2245_s11  ;;  %v1724_v15 = vpop.permute.xlu0 %1723  ;;  %v1651_v13 = vmul.f32 %v3056_v6, %v1649_v10 }
 0x2dc   :  { %v1726_v46 = vrot.slane %v1724_v15, 1 }
 0x2de   :  { %v1728_v53 = vsel %vm234_vm7, %v1724_v15, %v1726_v46 }
 0x2e1   :  { %1512 = vrot.lane.b32.xlu2 %v1507_v55, %s2245_s11 }
 0x2e3   :  { %1742 = vrot.lane.b32.xlu1 %v2416_v57, %s2245_s11  ;;  %v1560_v57 = vstv %s2085_s8  ;;  %v1741_v51 = vpop.permute.xlu0 %1740 }
 0x2e4   :  { %v1562_v49 = vmul.f32 %v3375_v41, %v1560_v57  ;;  %v1744_v15 = vrot.slane %v1741_v51, 1 }
 0x2e9   :  { %1529 = vrot.lane.b32.xlu2 %v2423_v60, %s2244_s10  ;;  %v3371_v60 = vld [vmem:[#allocation2] sm:$0x7] }
 0x2ea   :  { %v1561_v39 = vmul.f32 %v3371_v60, %v1560_v57 }
 0x2eb   :  { %1757 = vrot.lane.b32.xlu1 %v1753_v45, %s2245_s11  ;;  %v1532_v2 = vpop.permute.xlu0 %1531 }
 0x2f1   :  { %1759 = vrot.lane.b32.xlu2 %v1754_v18, %s2245_s11  ;;  %s2088_s11 = sld [smem:[#allocation4 + $0x59]]  ;;  %v1447_v18 = vmul.f32 %v3056_v6, %v1445_v29 }
 0x2f3   :  { %1548 = vrot.lane.b32.xlu1 %v1543_v34, %s2244_s10  ;;  %v1442_v34 = vmul.f32 %v3375_v41, %v1440_v43 }
 0x2f7   :  { %v1613_v35 = vstv %s2088_s11 }
 0x2f8   :  { %v1614_v12 = vmul.f32 %v3069_v9, %v1613_v35  ;;  %v1615_v52 = vmul.f32 %v3056_v6, %v1613_v35 }
 0x2f9   :  { %1776 = vrot.lane.b32.xlu2 %v2428_v61, %s2244_s10  ;;  %v1807_v61 = vstv %s2099_s24 }
 0x2fa   :  { %v1808_v0 = vmul.f32 %v3371_v60, %v1807_v61  ;;  %v1809_v48 = vmul.f32 %v3375_v41, %v1807_v61  ;;  %v1449_v61 = vadd.f32 %v1447_v18, %v1442_v34 }
 0x2fb   :  { %1565 = vrot.lane.b32.xlu1 %v1561_v39, %s2246_s20  ;;  %v1479_v39 = vrot.slane %v3386_v16, 1 }
 0x2fd   :  { %v1481_v29 = vsel %vm234_vm7, %v3386_v16, %v1479_v39 }
 0x301   :  { %1567 = vrot.lane.b32.xlu2 %v1562_v49, %s2246_s20 }
 0x303   :  { %1795 = vrot.lane.b32.xlu1 %v1790_v3, %s2244_s10  ;;  %s3402_s10 = sld [smem:[#allocation4 + $0x5a]]  ;;  %v1896_v3 = vstv %s3430_s27 }
 0x309   :  { %1582 = vrot.lane.b32.xlu2 %v1578_v19, %s2246_s20  ;;  %v1860_v37 = vstv %s3402_s10 }
 0x30a   :  { %v1861_v20 = vmul.f32 %v3069_v9, %v1860_v37  ;;  %v1862_v54 = vmul.f32 %v3056_v6, %v1860_v37  ;;  %v1534_v37 = vrot.slane %v1532_v2, 1 }
 0x30b   :  { %1812 = vrot.lane.b32.xlu1 %v1808_v0, %s2246_s20  ;;  %v1897_v0 = vmul.f32 %v3069_v9, %v1896_v3 }
 0x311   :  { %1814 = vrot.lane.b32.xlu2 %v1809_v48, %s2246_s20  ;;  %v3457_v48 = vpop.permute.xlu0 %1546 }
 0x313   :  { %1603 = vrot.lane.b32.xlu1 %v2434_v63, %s2247_s25 }
 0x319   :  { %1829 = vrot.lane.b32.xlu2 %v1825_v38, %s2246_s20  ;;  %s3411_s20 = sld [smem:[#allocation4 + $0x6]] }
 0x31b   :  { %1618 = vrot.lane.b32.xlu1 %v1614_v12, %s2247_s25  ;;  %v1426_v11 = vpop.permute.xlu2 %1425 }
 0x31c   :  { %v1428_v4 = vrot.slane %v1426_v11, 1 }
 0x31e   :  { %v1431_v25 = vsel %vm1429_vm1, %v1426_v11, %v1428_v4  ;;  %v1898_v4 = vmul.f32 %v3056_v6, %v1896_v3 }
 0x31f   :  { %v1435_v63 = vmul.f32 %v1431_v25, %v1420_v31  ;;  %v1687_v44 = vstv %s3411_s20 }
 0x320   :  { %v1689_v40 = vmul.f32 %v3375_v41, %v1687_v44  ;;  %v1693_v41 = vmul.f32 %v3069_v9, %v1692_v59  ;;  %v1688_v35 = vmul.f32 %v3371_v60, %v1687_v44  ;;  %v1746_v9 = vsel %vm273_vm8, %v1741_v51, %v1744_v15 }
 0x321   :  { %v3408_v50 = vadd.f32 %v1435_v63, %v3245_v24  ;;  %1620 = vrot.lane.b32.xlu2 %v1615_v52, %s2247_s25  ;;  %v1499_v24 = vsel %vm273_vm8, %v1494_v21, %v1497_v42 }
 0x322   :  { %v1696_v33 = vadd.f32 %v1694_v58, %v1689_v40 }
 0x323   :  { %1850 = vrot.lane.b32.xlu1 %v3588_v30, %s2247_s25  ;;  %v1475_v5 = vpop.permute.xlu2 %1474 }
 0x324   :  { %v1478_v8 = vrot.slane %v1475_v5, 1 }
 0x326   :  { %v1480_v36 = vsel %vm234_vm7, %v1475_v5, %v1478_v8  ;;  %v3467_v5 = vpop.permute.xlu0 %1778 }
 0x327   :  { %v1484_v17 = vadd.f32 %v1480_v36, %v3333_v62 }
 0x329   :  { %1637 = vrot.lane.b32.xlu2 %v3589_v47, %s2236_s26  ;;  %v3424_v22 = vadd.f32 %v1499_v24, %v1484_v17 }
 0x32b   :  { %1865 = vrot.lane.b32.xlu1 %v1861_v20, %s2247_s25  ;;  %v1707_v23 = vpop.permute.xlu2 %1706  ;;  %v1536_v20 = vsel %vm310_vm9, %v1532_v2, %v1534_v37 }
 0x32c   :  { %v1709_v7 = vrot.slane %v1707_v23, 1 }
 0x32d   :  { %v1424_v1 = vpop.permute.xlu1 %1423 }
 0x32e   :  { %v1711_v62 = vsel %vm234_vm7, %v1707_v23, %v1709_v7  ;;  %v1427_v32 = vrot.slane %v1424_v1, 1  ;;  %v1794_v23 = vpop.permute.xlu0 %1793 }
 0x32f   :  { %v1715_v28 = vadd.f32 %v1711_v62, %v1696_v33 }
 0x330   :  { %v1430_v14 = vsel %vm1429_vm1, %v1424_v1, %v1427_v32 }
 0x331   :  { %v1434_v27 = vmul.f32 %v1430_v14, %v1420_v31  ;;  %1867 = vrot.lane.b32.xlu2 %v1862_v54, %s2247_s25  ;;  %v1732_v55 = vadd.f32 %v1728_v53, %v1715_v28  ;;  %v1695_v31 = vadd.f32 %v1693_v41, %v1688_v35  ;;  %s2253_s25 = smov 122  }
 0x333   :  { %v3440_v56 = vadd.f32 %v1434_v27, %v3217_v26  ;;  %1656 = vrot.lane.b32.xlu1 %v1651_v13, %s2236_s26  ;;  %v1722_v45 = vpop.permute.xlu2 %1721  ;;  %v3590_v26 = vld [vmem:[#allocation18_spill] sm:$0xff] }
 0x334   :  { %v1725_v12 = vrot.slane %v1722_v45, 1 }
 0x335   :  { %v1460_v57 = vpop.permute.xlu1 %1459 }
 0x336   :  { %v1462_v49 = vrot.slane %v1460_v57, 1  ;;  %v1727_v63 = vsel %vm234_vm7, %v1722_v45, %v1725_v12  ;;  %v3476_v14 = vpop.permute.xlu0 %1584 }
 0x338   :  { %v1464_v10 = vsel %vm234_vm7, %v1460_v57, %v1462_v49 }
 0x339   :  { %v1468_v19 = vadd.f32 %v1464_v10, %v1449_v61  ;;  %1884 = vrot.lane.b32.xlu2 %v3590_v26, %s2236_s26 }
 0x33b   :  { %1901 = vrot.lane.b32.xlu1 %v1897_v0, %s2236_s26  ;;  %v1513_v43 = vpop.permute.xlu2 %1512  ;;  %v1485_v21 = vadd.f32 %v1481_v29, %v1468_v19 }
 0x33c   :  { %v1515_v8 = vrot.slane %v1513_v43, 1 }
 0x33d   :  { %v1705_v38 = vpop.permute.xlu1 %1704 }
 0x33e   :  { %v1708_v11 = vrot.slane %v1705_v38, 1  ;;  %v1517_v24 = vsel %vm273_vm8, %v1513_v43, %v1515_v8  ;;  %v1602_v61 = vpop.permute.xlu0 %1601 }
 0x340   :  { %v1710_v25 = vsel %vm234_vm7, %v1705_v38, %v1708_v11 }
 0x341   :  { %v1714_v16 = vadd.f32 %v1710_v25, %v1695_v31  ;;  %1903 = vrot.lane.b32.xlu2 %v1898_v4, %s2236_s26  ;;  %s2252_s26 = smov 123  }
 0x343   :  { %v1731_v52 = vadd.f32 %v1727_v63, %v1714_v16  ;;  %v1530_v30 = vpop.permute.xlu2 %1529 }
 0x344   :  { %v1533_v40 = vrot.slane %v1530_v30, 1 }
 0x345   :  { %v1496_v60 = vpop.permute.xlu1 %1495  ;;  %v1750_v42 = vadd.f32 %v1746_v9, %v1731_v52  ;;  %v1550_v52 = vrot.slane %v3457_v48, 1 }
 0x346   :  { %v1498_v36 = vrot.slane %v1496_v60, 1  ;;  %v1535_v33 = vsel %vm310_vm9, %v1530_v30, %v1533_v40  ;;  %v1832_v11 = vpop.permute.xlu0 %1831 }
 0x348   :  { %v1500_v6 = vsel %vm273_vm8, %v1496_v60, %v1498_v36 }
 0x349   :  { %v1504_v17 = vadd.f32 %v1500_v6, %v1485_v21 }
 0x34b   :  { %v1521_v59 = vadd.f32 %v1517_v24, %v1504_v17  ;;  %v1760_v47 = vpop.permute.xlu2 %1759  ;;  %v1781_v24 = vrot.slane %v3467_v5, 1 }
 0x34c   :  { %v1762_v28 = vrot.slane %v1760_v47, 1 }
 0x34d   :  { %v1511_v58 = vpop.permute.xlu1 %1510  ;;  %v1540_v44 = vadd.f32 %v1536_v20, %v1521_v59 }
 0x34e   :  { %v1514_v51 = vrot.slane %v1511_v58, 1  ;;  %v1764_v27 = vsel %vm273_vm8, %v1760_v47, %v1762_v28  ;;  %v3490_v25 = vpop.permute.xlu0 %1848  ;;  %v1605_v47 = vrot.slane %v1602_v61, 1 }
 0x350   :  { %v1516_v46 = vsel %vm273_vm8, %v1511_v58, %v1514_v51  ;;  %v1783_v51 = vsel %vm310_vm9, %v3467_v5, %v1781_v24 }
 0x351   :  { %v1520_v7 = vadd.f32 %v1516_v46, %v3424_v22  ;;  %v1797_v22 = vrot.slane %v1794_v23, 1 }
 0x353   :  { %v1539_v1 = vadd.f32 %v1535_v33, %v1520_v7  ;;  %v1777_v62 = vpop.permute.xlu2 %1776  ;;  %v1799_v26 = vsel %vm310_vm9, %v1794_v23, %v1797_v22  ;;  %v1607_v7 = vsel %vm384_vm11, %v1602_v61, %v1605_v47 }
 0x354   :  { %v1780_v34 = vrot.slane %v1777_v62, 1 }
 0x355   :  { %v1743_v32 = vpop.permute.xlu1 %1742 }
 0x356   :  { %v1745_v54 = vrot.slane %v1743_v32, 1  ;;  %v1782_v3 = vsel %vm310_vm9, %v1777_v62, %v1780_v34  ;;  %v3497_v9 = vpop.permute.xlu0 %1639 }
 0x358   :  { %v1747_v53 = vsel %vm273_vm8, %v1743_v32, %v1745_v54 }
 0x359   :  { %v1751_v2 = vadd.f32 %v1747_v53, %v1732_v55 }
 0x35b   :  { %v1768_v13 = vadd.f32 %v1764_v27, %v1751_v2  ;;  %v1568_v45 = vpop.permute.xlu2 %1567  ;;  %v1834_v27 = vrot.slane %v1832_v11, 1 }
 0x35c   :  { %v1570_v29 = vrot.slane %v1568_v45, 1 }
 0x35d   :  { %v1758_v18 = vpop.permute.xlu1 %1757  ;;  %v1787_v23 = vadd.f32 %v1783_v51, %v1768_v13 }
 0x35e   :  { %v1761_v57 = vrot.slane %v1758_v18, 1  ;;  %v1572_v35 = vsel %vm347_vm10, %v1568_v45, %v1570_v29  ;;  %v1655_v58 = vpop.permute.xlu0 %1654 }
 0x35f   :  { %v1658_v54 = vrot.slane %v1655_v58, 1 }
 0x360   :  { %v1763_v39 = vsel %vm273_vm8, %v1758_v18, %v1761_v57 }
 0x361   :  { %v1767_v49 = vadd.f32 %v1763_v39, %v1750_v42  ;;  %v1552_v42 = vsel %vm310_vm9, %v3457_v48, %v1550_v52  ;;  %v1660_v57 = vsel %vm421_vm12, %v1655_v58, %v1658_v54  ;;  %v1852_v58 = vrot.slane %v3490_v25, 1 }
 0x362   :  { %v1556_v36 = vadd.f32 %v1552_v42, %v1539_v1 }
 0x363   :  { %v1786_v10 = vadd.f32 %v1782_v3, %v1767_v49  ;;  %v1583_v19 = vpop.permute.xlu2 %1582  ;;  %v1836_v3 = vsel %vm347_vm10, %v1832_v11, %v1834_v27  ;;  %v1667_v27 = vld [vmem:[#allocation6 + $0xa] sm:$0x3] }
 0x364   :  { %v1586_v6 = vrot.slane %v1583_v19, 1 }
 0x365   :  { %v1549_v0 = vpop.permute.xlu1 %1548  ;;  %v3482_v55 = vadd.f32 %v1799_v26, %v1786_v10  ;;  %v1587_v26 = vrot.slane %v3476_v14, 1 }
 0x366   :  { %v1551_v43 = vrot.slane %v1549_v0, 1  ;;  %v1588_v20 = vsel %vm347_vm10, %v1583_v19, %v1586_v6  ;;  %v1887_v22 = vpop.permute.xlu0 %1886 }
 0x367   :  { %v1589_v11 = vsel %vm347_vm10, %v3476_v14, %v1587_v26 }
 0x368   :  { %v1553_v41 = vsel %vm310_vm9, %v1549_v0, %v1551_v43  ;;  %v1889_v0 = vrot.slane %v1887_v22, 1 }
 0x369   :  { %v1557_v21 = vadd.f32 %v1553_v41, %v1540_v44 }
 0x36b   :  { %v3486_v38 = vadd.f32 %v1572_v35, %v1557_v21  ;;  %v1815_v12 = vpop.permute.xlu2 %1814 }
 0x36c   :  { %v1817_v33 = vrot.slane %v1815_v12, 1 }
 0x36d   :  { %v1566_v31 = vpop.permute.xlu1 %1565 }
 0x36e   :  { %v1569_v30 = vrot.slane %v1566_v31, 1  ;;  %v1819_v45 = vsel %vm347_vm10, %v1815_v12, %v1817_v33 }
 0x370   :  { %v1571_v8 = vsel %vm347_vm10, %v1566_v31, %v1569_v30 }
 0x371   :  { %v1575_v17 = vadd.f32 %v1571_v8, %v1556_v36 }
 0x373   :  { %v3488_v4 = vpop.permute.xlu2 %1829  ;;  %v1592_v44 = vadd.f32 %v1588_v20, %v1575_v17 }
 0x374   :  { %v1833_v14 = vrot.slane %v3488_v4, 1 }
 0x375   :  { %v1796_v15 = vpop.permute.xlu1 %1795  ;;  %v1611_v28 = vadd.f32 %v1607_v7, %v1592_v44 }
 0x376   :  { %v1798_v59 = vrot.slane %v1796_v15, 1 }
 0x378   :  { %v1800_v48 = vsel %vm310_vm9, %v1796_v15, %v1798_v59  ;;  %v1891_v15 = vsel %vm421_vm12, %v1887_v22, %v1889_v0 }
 0x379   :  { %v1804_v32 = vadd.f32 %v1800_v48, %v1787_v23 }
 0x37b   :  { %v3492_v16 = vpop.permute.xlu2 %1620  ;;  %v1823_v18 = vadd.f32 %v1819_v45, %v1804_v32 }
 0x37c   :  { %v1623_v36 = vrot.slane %v3492_v16, 1 }
 0x37d   :  { %v3494_v63 = vpop.permute.xlu1 %1812  ;;  %v1840_v19 = vadd.f32 %v1836_v3, %v1823_v18 }
 0x37e   :  { %v1816_v21 = vrot.slane %v3494_v63, 1 }
 0x380   :  { %v1818_v6 = vsel %vm347_vm10, %v3494_v63, %v1816_v21  ;;  %v1835_v63 = vsel %vm347_vm10, %v3488_v4, %v1833_v14 }
 0x381   :  { %v1822_v47 = vadd.f32 %v1818_v6, %v3482_v55 }
 0x383   :  { %v1638_v60 = vpop.permute.xlu2 %1637 }
 0x384   :  { %v1641_v1 = vrot.slane %v1638_v60, 1 }
 0x385   :  { %v1604_v37 = vpop.permute.xlu1 %1603 }
 0x386   :  { %v1643_v5 = vsel %vm421_vm12, %v1638_v60, %v1641_v1  ;;  %v1606_v29 = vrot.slane %v1604_v37, 1  ;;  %v1593_v60 = vadd.f32 %v1589_v11, %v3486_v38  ;;  %v1625_v38 = vsel %vm384_vm11, %v3492_v16, %v1623_v36 }
 0x388   :  { %v1608_v52 = vsel %vm384_vm11, %v1604_v37, %v1606_v29  ;;  %v1642_v37 = vrot.slane %v3497_v9, 1 }
 0x389   :  { %v1612_v24 = vadd.f32 %v1608_v52, %v1593_v60 }
 0x38a   :  { %v1644_v48 = vsel %vm421_vm12, %v3497_v9, %v1642_v37 }
 0x38b   :  { %v1868_v40 = vpop.permute.xlu2 %1867  ;;  %v1629_v20 = vadd.f32 %v1625_v38, %v1612_v24 }
 0x38c   :  { %v1870_v61 = vrot.slane %v1868_v40, 1 }
 0x38d   :  { %v1619_v46 = vpop.permute.xlu1 %1618  ;;  %v1648_v23 = vadd.f32 %v1644_v48, %v1629_v20 }
 0x38e   :  { %v1622_v62 = vrot.slane %v1619_v46, 1  ;;  %v1872_v35 = vsel %vm384_vm11, %v1868_v40, %v1870_v61  ;;  %v1839_v40 = vadd.f32 %v1835_v63, %v1822_v47  ;;  %v1970_v47 = vld [vmem:[#allocation9] sm:$0xff] }
 0x390   :  { %v1624_v53 = vsel %vm384_vm11, %v1619_v46, %v1622_v62  ;;  %v1854_v46 = vsel %vm384_vm11, %v3490_v25, %v1852_v58 }
 0x391   :  { %v1628_v2 = vadd.f32 %v1624_v53, %v1611_v28  ;;  %v1858_v33 = vadd.f32 %v1854_v46, %v1839_v40 }
 0x393   :  { %v1647_v34 = vadd.f32 %v1643_v5, %v1628_v2  ;;  %v1885_v13 = vpop.permute.xlu2 %1884 }
 0x394   :  { %v1888_v62 = vrot.slane %v1885_v13, 1 }
 0x395   :  { %v1664_v39 = vadd.f32 %v1660_v57, %v1647_v34  ;;  %v1851_v49 = vpop.permute.xlu1 %1850  ;;  %v1914_v57 = vld [vmem:[#allocation6 + $0xc] sm:$0x3] }
 0x396   :  { %v1853_v10 = vrot.slane %v1851_v49, 1  ;;  %v1890_v28 = vsel %vm421_vm12, %v1885_v13, %v1888_v62 }
 0x397   :  { %1670 = vrot.lane.b32.xlu0 %v1664_v39, %s2252_s26 }
 0x398   :  { %v1855_v43 = vsel %vm384_vm11, %v1851_v49, %v1853_v10 }
 0x399   :  { %v1859_v41 = vadd.f32 %v1855_v43, %v1840_v19 }
 0x39b   :  { %v1876_v12 = vadd.f32 %v1872_v35, %v1859_v41  ;;  %v1904_v31 = vpop.permute.xlu2 %1903 }
 0x39c   :  { %v1906_v30 = vrot.slane %v1904_v31, 1 }
 0x39d   :  { %v1895_v42 = vadd.f32 %v1891_v15, %v1876_v12  ;;  %v1866_v8 = vpop.permute.xlu1 %1865 }
 0x39e   :  { %v1908_v17 = vsel %vm421_vm12, %v1904_v31, %v1906_v30  ;;  %v1869_v44 = vrot.slane %v1866_v8, 1 }
 0x39f   :  { %v1912_v59 = vadd.f32 %v1908_v17, %v1895_v42 }
 0x3a0   :  { %v1871_v7 = vsel %vm384_vm11, %v1866_v8, %v1869_v44 }
 0x3a1   :  { %1919 = vrot.lane.b32.xlu0 %v1912_v59, %s2253_s25  ;;  %v1875_v32 = vadd.f32 %v1871_v7, %v1858_v33 }
 0x3a3   :  { %v1894_v9 = vadd.f32 %v1890_v28, %v1875_v32 }
 0x3a5   :  { %v1657_v51 = vpop.permute.xlu1 %1656 }
 0x3a6   :  { %v1659_v55 = vrot.slane %v1657_v51, 1 }
 0x3a8   :  { %v1661_v16 = vsel %vm421_vm12, %v1657_v51, %v1659_v55 }
 0x3a9   :  { %v1665_v1 = vadd.f32 %v1661_v16, %v1648_v23 }
 0x3ab   :  { %1672 = vrot.lane.b32.xlu1 %v1665_v1, %s2252_s26  ;;  %v1971_v1 = vld [vmem:[#allocation9 + $0x8] sm:$0xff] }
 0x3ad   :  { %v1902_v4 = vpop.permute.xlu1 %1901 }
 0x3ae   :  { %v1905_v54 = vrot.slane %v1902_v4, 1 }
 0x3b0   :  { %v1907_v53 = vsel %vm421_vm12, %v1902_v4, %v1905_v54 }
 0x3b1   :  { %v1911_v2 = vadd.f32 %v1907_v53, %v1894_v9 }
 0x3b3   :  { %1917 = vrot.lane.b32.xlu2 %v1911_v2, %s2253_s25 }
 0x409   :  { %v1671_v25 = vpop.permute.xlu0 %1670 }
 0x40a   :  { %v1674_v45 = vrot.slane %v1671_v25, 1 }
 0x40c   :  { %v1677_v5 = vsel %vm1676_vm2, %v1671_v25, %v1674_v45 }
 0x40d   :  { %v1681_v18 = vmul.f32 %v1677_v5, %v1667_v27  ;;  %v1918_v34 = vpop.permute.xlu2 %1917 }
 0x40e   :  { %v1921_v22 = vrot.slane %v1918_v34, 1 }
 0x40f   :  { %v1683_v13 = vadd.f32 %v1681_v18, %v3440_v56 }
 0x410   :  { %v1924_v39 = vsel %vm1923_vm3, %v1918_v34, %v1921_v22 }
 0x411   :  { %v1928_v49 = vmul.f32 %v1924_v39, %v1914_v57 }
 0x413   :  { %v1930_v3 = vadd.f32 %v1928_v49, %v1683_v13  ;;  %v1920_v10 = vpop.permute.xlu0 %1919 }
 0x414   :  { %v1922_v19 = vrot.slane %v1920_v10, 1 }
 0x415   :  { %v2105_v61 = vmul.f32 -1.442695, %v1930_v3 }
 0x416   :  { %v1925_v41 = vsel %vm1923_vm3, %v1920_v10, %v1922_v19 }
 0x417   :  { %2128 = vpow2.f32 %v2105_v61  ;;  %v1929_v12 = vmul.f32 %v1925_v41, %v1914_v57 }
 0x41d   :  { %v2129_v26 = vpop.eup %2128  ;;  %v1673_v0 = vpop.permute.xlu1 %1672 }
 0x41e   :  { %v1938_v29 = vadd.f32 1.0, %v2129_v26  ;;  %v1675_v43 = vrot.slane %v1673_v0, 1 }
 0x420   :  { %2130 = vrcp.f32 %v1938_v29  ;;  %v1678_v21 = vsel %vm1676_vm2, %v1673_v0, %v1675_v43  ;;  %v1951_v60 = vand.u32 2147483648, %v1938_v29  ;;  %v1949_v8 = vand.u32 2147483647, %v1938_v29 }
 0x421   :  { %v1682_v35 = vmul.f32 %v1678_v21, %v1667_v27  ;;  %vm1945_vm5 = vweird.f32 %v1938_v29 }
 0x422   :  { %v1952_v6 = vor.u32 1.1754944e-38, %v1951_v60  ;;  %vm1950_vm7 = vcmp.eq.f32.partialorder %v1949_v8, 8.507059e+37 }
 0x423   :  { %v1684_v31 = vadd.f32 %v1682_v35, %v3408_v50 }
 0x425   :  { %v1931_v56 = vadd.f32 %v1929_v12, %v1684_v31 }
 0x426   :  { %v2131_v11 = vpop.eup %2130 }
 0x427   :  { %v1941_v15 = vmul.f32 %v2131_v11, %v1938_v29  ;;  %v2106_v52 = vmul.f32 -1.442695, %v1931_v56  ;;  %vm1946_vm4 = vweird.f32 %v2131_v11 }
 0x428   :  { %vm1947_vm6 = vmor %vm1945_vm5, %vm1946_vm4 }
 0x429   :  { %v1942_v30 = vsub.f32 1.0, %v1941_v15  ;;  %2132 = vpow2.f32 %v2106_v52 }
 0x42b   :  { %v1943_v42 = vmul.f32 %v2131_v11, %v1942_v30 }
 0x42d   :  { %v1944_v36 = vadd.f32 %v2131_v11, %v1943_v42 }
 0x42f   :  { %v2133_v17 = vpop.eup %2132  ;;  %v1948_v24 = vsel %vm1947_vm6, %v2131_v11, %v1944_v36 }
 0x430   :  { %v1939_v59 = vadd.f32 1.0, %v2133_v17  ;;  %v1953_v14 = vsel %vm1950_vm7, %v1952_v6, %v1948_v24 }
 0x431   :  { %v1975_v50 = vperm.slane %v1953_v14, 1  ;;  %v1974_v37 = vperm.slane %v1953_v14, 0 }
 0x432   :  { %2134 = vrcp.f32 %v1939_v59  ;;  %v1966_v51 = vand.u32 2147483648, %v1939_v59  ;;  %v1964_v55 = vand.u32 2147483647, %v1939_v59  ;;  %vm1960_vm9 = vweird.f32 %v1939_v59 }
 0x433   :  { %v1978_v38 = vrot.slane %v1975_v50, 4 }
 0x434   :  { %v1967_v46 = vor.u32 1.1754944e-38, %v1966_v51  ;;  %vm1965_vm11 = vcmp.eq.f32.partialorder %v1964_v55, 8.507059e+37 }
 0x435   :  { %v1980_v20 = vsel %vm70_vm0, %v1974_v37, %v1978_v38 }
 0x436   :  { %v1984_v58 = vmul.f32 %v1980_v20, %v1970_v47 }
 0x438   :  { %v2135_v63 = vpop.eup %2134  ;;  %1986 = vst [vmem:[#allocation11] sm:$0xff] %v1984_v58 }
 0x439   :  { %v1956_v44 = vmul.f32 %v2135_v63, %v1939_v59  ;;  %vm1961_vm8 = vweird.f32 %v2135_v63 }
 0x43a   :  { %vm1962_vm10 = vmor %vm1960_vm9, %vm1961_vm8 }
 0x43b   :  { %v1957_v40 = vsub.f32 1.0, %v1956_v44 }
 0x43d   :  { %v1958_v48 = vmul.f32 %v2135_v63, %v1957_v40 }
 0x43f   :  { %v1959_v23 = vadd.f32 %v2135_v63, %v1958_v48 }
 0x441   :  { %v1963_v7 = vsel %vm1962_vm10, %v2135_v63, %v1959_v23 }
 0x442   :  { %v1968_v16 = vsel %vm1965_vm11, %v1967_v46, %v1963_v7 }
 0x443   :  { %v1977_v33 = vperm.slane %v1968_v16, 1  ;;  %v1976_v62 = vperm.slane %v1968_v16, 0 }
 0x445   :  { %v1979_v32 = vrot.slane %v1977_v33, 4 }
 0x447   :  { %v1981_v4 = vsel %vm70_vm0, %v1976_v62, %v1979_v32 }
 0x448   :  { %v1985_v28 = vmul.f32 %v1981_v4, %v1971_v1 }
 0x44a   :  { %1987 = vst [vmem:[#allocation11 + $0x8] sm:$0xff] %v1985_v28 }
 0x44b   :  { %2000 = dma.vmem_to_hbm [thread:$0]  %s1993_s29, 256, %s1995_s1, [#allocation8], %s2239_s30, %s2239_s30, %s2240_s5  }
 0x44c   :  { %2232 = dma.done.wait [#allocation8], 256  }
 0x44d   :  { %2233 = vsyncadd [#allocation8], 4294967040 }
 0x44e   :  { %2005 = vsyncpa [#allocation7], 1 }
 0x44f   :  { %2006 = vsyncpa [#allocation10], 1 }
 0x450   :  { %2007 = vsyncpa [#allocation8], 1 }

</bundles_post_ra>
